<compile_context>
chip_gen: v6e
topology: v6e:2x2x1
jax: 0.10.0
libtpu: 0.0.40
codegen_flags: <defaults>
</compile_context>

<pallas_src>
import numpy as np
import jax
import jax.numpy as jnp
from jax.experimental import pallas as pl
from jax.experimental.pallas import tpu as pltpu


# ----------------------------- Pallas kernel --------------------------------
def measurement_probs_kernel(xc_ref, ecs_ref, ubd_ref, o_ref):
    # xc_ref : (TB, Kp)   packed half-angle slab [x/2 | x/2 - pi/2 | 0-pad];
    #                     cos() of it yields [cos(x/2) | sin(x/2) | dont-care]
    # ecs_ref: (Kp, n*P)  merged constant 0/1 select table (cos rows | sin rows
    #                     | zero rows for the K padding)
    # ubd_ref: (P, P)     block-diag fused circuit unitary (transposed), P=G*D
    # o_ref  : (TB, P)    packed output probabilities (lane-dense store)
    P = o_ref.shape[-1]
    n = ecs_ref.shape[-1] // P

    cs = jnp.cos(xc_ref[...])                      # single EUP stream
    # one merged select matmul (was 2): amp[:, i*P + l] = wire-i factor, lane l
    amp = jnp.dot(cs, ecs_ref[...],
                  precision=jax.lax.Precision.HIGHEST,
                  preferred_element_type=jnp.float32)      # (TB, n*P)

    # product state: psi[r, g*D + j] = prod_i amp_i(sample g of row r, basis j)
    psi = amp[:, :P]
    for i in range(1, n):                          # n tiny and static -> unrolled
        psi = psi * amp[:, i * P:(i + 1) * P]

    # fused circuit unitary (entangler + trainable layer): one MXU matmul
    psi = jnp.dot(psi, ubd_ref[...],
                  precision=jax.lax.Precision.HIGHEST,
                  preferred_element_type=jnp.float32)

    # probability measurement (real amplitudes)
    o_ref[...] = psi * psi


def _probs_packed_call(xc, ecs, ubd_t, tile_rows, cost_estimate):
    bp, kp = xc.shape
    p = ubd_t.shape[0]
    grid = (bp // tile_rows,)
    return pl.pallas_call(
        measurement_probs_kernel,
        out_shape=jax.ShapeDtypeStruct((bp, p), jnp.float32),
        grid_spec=pltpu.PrefetchScalarGridSpec(
            num_scalar_prefetch=0,
            grid=grid,
            in_specs=[
                pl.BlockSpec((tile_rows, kp), lambda i: (i, 0)),
                pl.BlockSpec(ecs.shape, lambda i: (0, 0)),     # grid-invariant
                pl.BlockSpec((p, p), lambda i: (0, 0)),        # grid-invariant
            ],
            out_specs=pl.BlockSpec((tile_rows, p), lambda i: (i, 0)),
        ),
        compiler_params=pltpu.CompilerParams(
            dimension_semantics=("parallel",),      # megacore batch split (v7x)
            vmem_limit_bytes=32 * 1024 * 1024,      # safe on v7x's 64 MiB VMEM
        ),
        cost_estimate=cost_estimate,
    )(xc, ecs, ubd_t)


# --------------------------- constant construction ---------------------------
def ry_matrix(theta):
    c, s = np.cos(theta / 2.0), np.sin(theta / 2.0)
    return np.array([[c, -s], [s, c]], dtype=np.float32)


def cnot_matrix(control, target, n):
    D = 1 << n
    idx = np.arange(D)
    ctrl_bit = (idx >> (n - 1 - control)) & 1
    new_idx = np.where(ctrl_bit == 1, idx ^ (1 << (n - 1 - target)), idx)
    M = np.zeros((D, D), dtype=np.float32)
    M[new_idx, idx] = 1.0
    return M


def build_circuit_matrices(n_wires, weights):
    D = 1 << n_wires
    ent = np.eye(D, dtype=np.float32)
    for i in range(n_wires):                       # CNOT ring (0,1)...(n-1,0)
        ent = cnot_matrix(i, (i + 1) % n_wires, n_wires) @ ent
    rot = np.array([[1.0]], dtype=np.float32)
    for i in range(n_wires):                       # kron over wires, wire0 = left
        rot = np.kron(rot, ry_matrix(float(weights[i])))
    return ent, rot.astype(np.float32)


def build_embedding_table(n_wires, group, k_pad):
    """Merged constant 0/1 table: one lane-dense matmul produces
    amp[:, i*P+l] = (bit_i==0 ? cos : sin)(half-angle of the sample owning lane l).
    Rows [0, G*n) select cos factors, rows [G*n, 2*G*n) select sin factors,
    remaining rows (K padding to k_pad) are zero."""
    D = 1 << n_wires
    P = group * D
    K = group * n_wires
    j = np.arange(P) % D          # basis index within a sample's D-lane group
    g = np.arange(P) // D         # which packed sample owns lane l
    ecs = np.zeros((k_pad, n_wires * P), dtype=np.float32)
    cols = np.arange(P)
    for i in range(n_wires):
        bit = (j >> (n_wires - 1 - i)) & 1          # wire 0 = MSB
        k = g * n_wires + i                         # source packed-angle column
        ecs[k, i * P + cols] = (bit == 0).astype(np.float32)       # cos rows
        ecs[K + k, i * P + cols] = (bit == 1).astype(np.float32)   # sin rows
    return ecs


def block_diag_tiles(mat, copies):
    D = mat.shape[0]
    out = np.zeros((copies * D, copies * D), dtype=np.float32)
    for g in range(copies):
        out[g * D:(g + 1) * D, g * D:(g + 1) * D] = mat
    return out


def _round_up(x, m):
    return ((x + m - 1) // m) * m


def _mxu_lane_width():
    # v6e / v7x have a 256-wide MXU; v5e/v5p/v4 (and unknown) are 128-wide.
    try:
        kind = jax.devices()[0].device_kind.lower()
    except Exception:
        return 128
    return 256 if ("v6" in kind or "v7" in kind) else 128


def make_measurement_layer(n_wires, weights, *, max_tile_rows=512, lane_width=None):
    """Build the (jitted) forward pass of MeasurementLayer(Probabilities)."""
    D = 1 << n_wires
    if lane_width is None:
        lane_width = _mxu_lane_width()
    group = max(1, lane_width // D)                 # samples packed per P lanes
    P = group * D
    gn = group * n_wires
    k_pad = _round_up(2 * gn, 128)                  # lane-dense, aligned MXU K

    ent, rot = build_circuit_matrices(n_wires, weights)
    U = (rot @ ent).astype(np.float32)              # fused circuit unitary
    ubd_t = jnp.asarray(block_diag_tiles(U.T, group))            # (P, P)
    ecs = jnp.asarray(build_embedding_table(n_wires, group, k_pad))

    @jax.jit
    def forward(x):
        x = x.astype(jnp.float32)
        B = x.shape[0]
        bp = pl.cdiv(B, group)                                   # packed rows
        # adaptive tile: amortize per-step overhead, keep grid length >= 2
        tb = min(max_tile_rows, _round_up(max(pl.cdiv(bp, 2), 1), 8))
        bp_pad = _round_up(bp, tb)
        b_pad = bp_pad * group
        if b_pad != B:
            x = jnp.pad(x, ((0, b_pad - B), (0, 0)))
        half = x.reshape(bp_pad, gn) * 0.5                       # row-major pack
        # [x/2 | x/2 - pi/2 | 0]: cos of this slab = [cos | sin | (zero rows)]
        xc = jnp.concatenate(
            [half, half - (np.pi / 2.0),
             jnp.zeros((bp_pad, k_pad - 2 * gn), jnp.float32)], axis=-1)
        ce = pl.CostEstimate(
            flops=int(2 * bp_pad * k_pad * n_wires * P
                      + 2 * bp_pad * P * P
                      + n_wires * bp_pad * P),
            transcendentals=int(bp_pad * k_pad),
            bytes_accessed=int(4 * (bp_pad * k_pad + bp_pad * P
                                    + ecs.size + P * P)),
        )
        out = _probs_packed_call(xc, ecs, ubd_t, tb, ce)         # (bp_pad, P)
        return out.reshape(b_pad, D)[:B]                         # (B, 2**n)

    return forward, ent, rot


# ----------------------------- reference (numpy) -----------------------------
def reference_probs(x_np, ent, rot, n_wires):
    D = 1 << n_wires
    j = np.arange(D)
    x64 = np.asarray(x_np, dtype=np.float64)
    psi = np.ones((x64.shape[0], D), dtype=np.float64)
    for i in range(n_wires):
        bit = (j >> (n_wires - 1 - i)) & 1
        half = x64[:, i:i + 1] * 0.5
        amp = np.where(bit[None, :] == 1, np.sin(half), np.cos(half))
        psi = psi * amp
    psi = psi @ np.asarray(ent, np.float64).T     # unfused on purpose: checks fusion
    psi = psi @ np.asarray(rot, np.float64).T
    return (psi * psi).astype(np.float32)


# ----------------------------------- main ------------------------------------
if __name__ == "__main__":
    n_wires = 5        # state dim 32; 8 (v6e/v7x) or 4 (v5e) samples per packed row
    batch = 300        # non-multiple of group/tile: exercises padding + 2-step grid

    key = jax.random.PRNGKey(0)
    x = jax.random.uniform(key, (batch, n_wires), jnp.float32,
                           minval=-np.pi, maxval=np.pi)
    weights = np.linspace(0.1, 1.5, n_wires).astype(np.float32)

    forward, ent, rot = make_measurement_layer(n_wires, weights)

    probs = jax.block_until_ready(forward(x))

    ref = reference_probs(np.asarray(x), ent, rot, n_wires)
    assert probs.shape == (batch, 1 << n_wires)
    assert np.allclose(np.asarray(probs).sum(axis=-1), 1.0, atol=1e-5)
    assert np.allclose(np.asarray(probs), ref, atol=1e-5)

    print("KERNEL_OK")
</pallas_src>

<mosaic_0001>
module attributes {stable_mosaic.version = 11 : i64} {
  func.func @measurement_probs_kernel(%arg0: i32, %arg1: memref<40x128xf32, #tpu.memory_space<vmem>>, %arg2: memref<128x640xf32, #tpu.memory_space<vmem>>, %arg3: memref<128x128xf32, #tpu.memory_space<vmem>>, %arg4: memref<40x128xf32, #tpu.memory_space<vmem>>) attributes {dimension_semantics = [#tpu.dimension_semantics<parallel>], iteration_bounds = array<i64: 2>, scalar_prefetch = 0 : i64, scratch_operands = 0 : i64, tpu.core_type = #tpu.core_type<tc>, window_params = [{transform_indices = @transform_0, window_bounds = array<i64: 40, 128>}, {pipeline_mode = #tpu.pipeline_mode<synchronous>, transform_indices = @transform_1, window_bounds = array<i64: 128, 640>}, {pipeline_mode = #tpu.pipeline_mode<synchronous>, transform_indices = @transform_2, window_bounds = array<i64: 128, 128>}, {transform_indices = @transform_3, window_bounds = array<i64: 40, 128>}]} {
    %c0 = arith.constant 0 : index
    %c0_0 = arith.constant 0 : index
    %0 = vector.load %arg1[%c0, %c0_0] : memref<40x128xf32, #tpu.memory_space<vmem>>, vector<40x128xf32>
    %1 = math.cos %0 : vector<40x128xf32>
    %c0_1 = arith.constant 0 : index
    %c0_2 = arith.constant 0 : index
    %2 = vector.load %arg2[%c0_1, %c0_2] : memref<128x640xf32, #tpu.memory_space<vmem>>, vector<128x640xf32>
    %cst = arith.constant dense<0.000000e+00> : vector<40x640xf32>
    %3 = tpu.matmul %1, %2, %cst {dimension_numbers = #tpu.dot_dimension_numbers<[1], [0], [0], [1], [0, 0, 1, 1], [], []>, precision = #tpu.contract_precision<fp32>} : vector<40x128xf32>, vector<128x640xf32>, vector<40x640xf32> -> vector<40x640xf32>
    %4 = vector.extract_strided_slice %3 {offsets = [0, 0], sizes = [40, 128], strides = [1, 1]} : vector<40x640xf32> to vector<40x128xf32>
    %5 = vector.extract_strided_slice %3 {offsets = [0, 128], sizes = [40, 128], strides = [1, 1]} : vector<40x640xf32> to vector<40x128xf32>
    %6 = arith.mulf %4, %5 : vector<40x128xf32>
    %7 = vector.extract_strided_slice %3 {offsets = [0, 256], sizes = [40, 128], strides = [1, 1]} : vector<40x640xf32> to vector<40x128xf32>
    %8 = arith.mulf %6, %7 : vector<40x128xf32>
    %9 = vector.extract_strided_slice %3 {offsets = [0, 384], sizes = [40, 128], strides = [1, 1]} : vector<40x640xf32> to vector<40x128xf32>
    %10 = arith.mulf %8, %9 : vector<40x128xf32>
    %11 = vector.extract_strided_slice %3 {offsets = [0, 512], sizes = [40, 128], strides = [1, 1]} : vector<40x640xf32> to vector<40x128xf32>
    %12 = arith.mulf %10, %11 : vector<40x128xf32>
    %c0_3 = arith.constant 0 : index
    %c0_4 = arith.constant 0 : index
    %13 = vector.load %arg3[%c0_3, %c0_4] : memref<128x128xf32, #tpu.memory_space<vmem>>, vector<128x128xf32>
    %cst_5 = arith.constant dense<0.000000e+00> : vector<40x128xf32>
    %14 = tpu.matmul %12, %13, %cst_5 {dimension_numbers = #tpu.dot_dimension_numbers<[1], [0], [0], [1], [0, 0, 1, 1], [], []>, precision = #tpu.contract_precision<fp32>} : vector<40x128xf32>, vector<128x128xf32>, vector<40x128xf32> -> vector<40x128xf32>
    %15 = arith.mulf %14, %14 : vector<40x128xf32>
    %c0_6 = arith.constant 0 : index
    %c0_7 = arith.constant 0 : index
    %16 = vector.load %arg4[%c0_6, %c0_7] : memref<40x128xf32, #tpu.memory_space<vmem>>, vector<40x128xf32>
    tpu.vector_store %arg4[%c0_6, %c0_7], %15 {strides = array<i32>} : memref<40x128xf32, #tpu.memory_space<vmem>>, vector<40x128xf32>,
    return
  }
  func.func @transform_0(%arg0: i32) -> (i32, i32) {
    %c0_i32 = arith.constant 0 : i32
    %c0_i32_0 = arith.constant 0 : i32
    return %arg0, %c0_i32 : i32, i32
  }
  func.func @transform_1(%arg0: i32) -> (i32, i32) {
    %c0_i32 = arith.constant 0 : i32
    %c0_i32_0 = arith.constant 0 : i32
    %c0_i32_1 = arith.constant 0 : i32
    return %c0_i32, %c0_i32_0 : i32, i32
  }
  func.func @transform_2(%arg0: i32) -> (i32, i32) {
    %c0_i32 = arith.constant 0 : i32
    %c0_i32_0 = arith.constant 0 : i32
    %c0_i32_1 = arith.constant 0 : i32
    return %c0_i32, %c0_i32_0 : i32, i32
  }
  func.func @transform_3(%arg0: i32) -> (i32, i32) {
    %c0_i32 = arith.constant 0 : i32
    %c0_i32_0 = arith.constant 0 : i32
    return %arg0, %c0_i32 : i32, i32
  }
}

</mosaic_0001>

<bundles_post_ra>
// kernel: forward.1
= control target key start
LH: loop header
LB: loop body
LE: loop exit
PB: predicated region body
PF: predicated region fallthrough
CT: control target
= control target key end

     0   :  { %s5541_s12 = smov 0   ;;  %s8504_s0 = inlined_call_operand.vmem [shape: f32[80,128], index: 0, kind: input, shape index: {}]   ;;  %s8505_s1 = inlined_call_operand.vmem [shape: f32[128,640], index: 1, kind: input, shape index: {}]   ;;  %s8506_s2 = inlined_call_operand.vmem [shape: f32[128,128], index: 2, kind: input, shape index: {}]   ;;  %s8507_s3 = inlined_call_operand.vmem [shape: f32[80,128], index: 3, kind: output, shape index: {}]  }
   0x1 LB: > { %s4604_s13 = sadd.s32 4294967295, %s5511_s12   ;;  %p4608_p0 = scmp.ge.s32.totalorder %s5511_s12, 1  ;;  %s5511_s12 = sphi %s5541_s12, %s13_s12  }
   0x2   : > { %p138_p1 = scmp.lt.s32.totalorder %s5511_s12, 3 }
   0x4   : > { %p139_p2 = pnand %p4608_p0, %p138_p1 }
   0x6   : > { %142 = sbr.rel (%p139_p2) target bundleno = 1032 (0x408), region = 32 }
   0xb   : > { %v770_v0 = vld [vmem:[%s8505_s1 + $0x260] sm:$0xff]  ;;  %v769_v1 = vld [vmem:[%s8505_s1 + $0x258] sm:$0xff]  ;;  %v764_v6 = vld [vmem:[%s8505_s1 + $0x230] sm:$0xff]  ;;  %v8530_v9 = vmov 0.0   ;;  %s5782_s8 = smul.u32 5, %s4604_s13 }
   0xc   : > { %v765_v2 = vld [vmem:[%s8505_s1 + $0x238] sm:$0xff]  ;;  %v5558_v3 = vand.u32 4294901760, %v770_v0  ;;  %v5560_v4 = vand.u32 4294901760, %v769_v1  ;;  %v760_v7 = vld [vmem:[%s8505_s1 + $0x210] sm:$0xff]  ;;  %v759_v8 = vld [vmem:[%s8505_s1 + $0x208] sm:$0xff]  ;;  %870 = vmatprep.mubr.f32.mxu0 %v8530_v9  ;;  %1150 = vmatprep.mubr.f32.mxu1 %v8530_v9  ;;  %v5575_v10 = vand.u32 4294901760, %v764_v6 }
   0xd   : > { %v5562_v5 = vand.u32 4294901760, %v765_v2  ;;  %v5577_v11 = vand.u32 4294901760, %v760_v7  ;;  %v5579_v12 = vand.u32 4294901760, %v759_v8  ;;  %v755_v13 = vld [vmem:[%s8505_s1 + $0x1e8] sm:$0xff]  ;;  %v754_v14 = vld [vmem:[%s8505_s1 + $0x1e0] sm:$0xff]  ;;  %v749_v40 = vld [vmem:[%s8505_s1 + $0x1b8] sm:$0xff] }
   0xe   : > { %8789 = vst [vmem:[#allocation2_spill] sm:$0xff] %v5558_v3  ;;  %775 = vmatprep.subr.mxu0 %v5558_v3  ;;  %v5589_v15 = vsub.f32 %v770_v0, %v5558_v3  ;;  %v5592_v16 = vsub.f32 %v769_v1, %v5560_v4  ;;  %v5597_v18 = vand.u32 4294901760, %v755_v13  ;;  %v5601_v19 = vsub.f32 %v764_v6, %v5575_v10  ;;  %v750_v39 = vld [vmem:[%s8505_s1 + $0x1c0] sm:$0xff]  ;;  %v745_v41 = vld [vmem:[%s8505_s1 + $0x198] sm:$0xff]  ;;  %v744_v46 = vld [vmem:[%s8505_s1 + $0x190] sm:$0xff]  ;;  %p163_p3 = scmp.lt.s32.totalorder %s5782_s8, 9 }
   0xf   : > { %v5595_v17 = vsub.f32 %v765_v2, %v5562_v5  ;;  %777 = vmatpush1.msra.mxu0 %v5560_v4  ;;  %v5604_v20 = vsub.f32 %v760_v7, %v5577_v11  ;;  %v5607_v21 = vsub.f32 %v759_v8, %v5579_v12  ;;  %v5609_v22 = vand.u32 4294901760, %v754_v14  ;;  %v740_v47 = vld [vmem:[%s8505_s1 + $0x170] sm:$0xff]  ;;  %v739_v48 = vld [vmem:[%s8505_s1 + $0x168] sm:$0xff]  ;;  %v734_v58 = vld [vmem:[%s8505_s1 + $0x140] sm:$0xff] }
  0x10   : > { %8790 = vst [vmem:[#allocation3_spill] sm:$0xff] %v5589_v15  ;;  %v8529_v23 = vand.u32 4294901760, %v5589_v15  ;;  %v8527_v24 = vand.u32 4294901760, %v5592_v16  ;;  %779 = vmatprep.subr.mxu0 %v5562_v5  ;;  %v5616_v26 = vsub.f32 %v755_v13, %v5597_v18  ;;  %v8520_v27 = vand.u32 4294901760, %v5601_v19  ;;  %v735_v53 = vld [vmem:[%s8505_s1 + $0x148] sm:$0xff]  ;;  %s9200_s8 = smov (!%p163_p3, %s5782_s8), 9 }
  0x11   : > { %v8526_v25 = vand.u32 4294901760, %v5595_v17  ;;  %781 = vmatpush1.msra.mxu0 %v5575_v10  ;;  %v8519_v28 = vand.u32 4294901760, %v5604_v20  ;;  %v8518_v29 = vand.u32 4294901760, %v5607_v21  ;;  %v5623_v30 = vsub.f32 %v754_v14, %v5609_v22  ;;  %v704_v9 = vld [vmem:[%s8505_s1 + $0x50] sm:$0xff]  ;;  %s4609_s28 = sshll.u32 %s9200_s8, 3 }
  0x12   : > { %v929_v31 = vsub.f32 %v5589_v15, %v8529_v23  ;;  %v935_v32 = vsub.f32 %v5592_v16, %v8527_v24  ;;  %783 = vmatprep.subr.mxu0 %v5577_v11  ;;  %v8517_v34 = vand.u32 4294901760, %v5616_v26  ;;  %v947_v35 = vsub.f32 %v5601_v19, %v8520_v27  ;;  %s5946_s4 = scalar_lea.vmem %s8504_s0, %s4609_s28  ;;  %s8494_s17 = scalar_lea.vmem %s8507_s3, %s4609_s28 }
  0x13   : > { %v941_v33 = vsub.f32 %v5595_v17, %v8526_v25  ;;  %v953_v36 = vsub.f32 %v5604_v20, %v8519_v28  ;;  %785 = vmatpush1.msra.mxu0 %v5579_v12  ;;  %v959_v37 = vsub.f32 %v5607_v21, %v8518_v29  ;;  %v8516_v38 = vand.u32 4294901760, %v5623_v30 }
  0x14   : > { %v930_v42 = vand.u32 4294901760, %v929_v31  ;;  %v936_v43 = vand.u32 4294901760, %v935_v32  ;;  %787 = vmatprep.subr.mxu0 %v5597_v18  ;;  %v965_v45 = vsub.f32 %v5616_v26, %v8517_v34  ;;  %v948_v49 = vand.u32 4294901760, %v947_v35 }
  0x15   : > { %v942_v44 = vand.u32 4294901760, %v941_v33  ;;  %v954_v50 = vand.u32 4294901760, %v953_v36  ;;  %v960_v51 = vand.u32 4294901760, %v959_v37  ;;  %789 = vmatpush1.msra.mxu0 %v5609_v22  ;;  %v971_v52 = vsub.f32 %v5623_v30, %v8516_v38 }
  0x16   : > { %931 = vmatprep.subr.mxu1 %v930_v42  ;;  %v966_v54 = vand.u32 4294901760, %v965_v45  ;;  %v5676_v55 = vand.u32 4294901760, %v750_v39  ;;  %v5678_v56 = vand.u32 4294901760, %v749_v40  ;;  %v5680_v57 = vand.u32 4294901760, %v745_v41 }
  0x17   : > { %937 = vmatpush1.msra.mxu1 %v936_v43  ;;  %v972_v59 = vand.u32 4294901760, %v971_v52  ;;  %v5685_v60 = vand.u32 4294901760, %v744_v46  ;;  %v5687_v61 = vand.u32 4294901760, %v740_v47  ;;  %v5689_v62 = vand.u32 4294901760, %v739_v48 }
  0x18   : > { %943 = vmatprep.subr.mxu1 %v942_v44  ;;  %791 = vmatprep.subr.mxu0 %v5676_v55  ;;  %v5693_v63 = vsub.f32 %v750_v39, %v5676_v55  ;;  %v5696_v0 = vsub.f32 %v749_v40, %v5678_v56  ;;  %v5699_v1 = vsub.f32 %v745_v41, %v5680_v57  ;;  %v5701_v2 = vand.u32 4294901760, %v735_v53 }
  0x19   : > { %949 = vmatpush1.msra.mxu1 %v948_v49  ;;  %793 = vmatpush1.msra.mxu0 %v5678_v56  ;;  %v5705_v6 = vsub.f32 %v744_v46, %v5685_v60  ;;  %v5708_v7 = vsub.f32 %v740_v47, %v5687_v61  ;;  %v5711_v8 = vsub.f32 %v739_v48, %v5689_v62  ;;  %v5713_v13 = vand.u32 4294901760, %v734_v58  ;;  %v730_v48 = vld [vmem:[%s8505_s1 + $0x120] sm:$0xff]  ;;  %v729_v49 = vld [vmem:[%s8505_s1 + $0x118] sm:$0xff] }
  0x1a   : > { %8791 = vst [vmem:[#allocation4_spill] sm:$0xff] %v5696_v0  ;;  %8792 = vst [vmem:[#allocation5_spill] sm:$0xff] %v5699_v1  ;;  %955 = vmatprep.subr.mxu1 %v954_v50  ;;  %v8515_v14 = vand.u32 4294901760, %v5693_v63  ;;  %v8514_v31 = vand.u32 4294901760, %v5696_v0  ;;  %795 = vmatprep.subr.mxu0 %v5680_v57  ;;  %v8512_v32 = vand.u32 4294901760, %v5699_v1  ;;  %v5720_v33 = vsub.f32 %v735_v53, %v5701_v2  ;;  %v725_v50 = vld [vmem:[%s8505_s1 + $0xf8] sm:$0xff] }
  0x1b   : > { %8793 = vst [vmem:[#allocation6_spill] sm:$0xff] %v5705_v6  ;;  %8794 = vst [vmem:[#allocation7_spill] sm:$0xff] %v5708_v7  ;;  %961 = vmatpush1.msra.mxu1 %v960_v51  ;;  %797 = vmatpush1.msra.mxu0 %v5685_v60  ;;  %v8511_v35 = vand.u32 4294901760, %v5705_v6  ;;  %v8510_v36 = vand.u32 4294901760, %v5708_v7  ;;  %v8508_v37 = vand.u32 4294901760, %v5711_v8  ;;  %v5727_v39 = vsub.f32 %v734_v58, %v5713_v13  ;;  %v724_v58 = vld [vmem:[%s8505_s1 + $0xf0] sm:$0xff] }
  0x1c   : > { %8795 = vst [vmem:[#allocation8_spill] sm:$0xff] %v5711_v8  ;;  %8796 = vst [vmem:[#allocation9_spill] sm:$0xff] %v5713_v13  ;;  %967 = vmatprep.subr.mxu1 %v966_v54  ;;  %v977_v40 = vsub.f32 %v5693_v63, %v8515_v14  ;;  %v983_v41 = vsub.f32 %v5696_v0, %v8514_v31  ;;  %v989_v42 = vsub.f32 %v5699_v1, %v8512_v32 }
  0x1d   : > { %8797 = vst [vmem:[#allocation10_spill] sm:$0xff] %v5720_v33  ;;  %8798 = vst [vmem:[#allocation11_spill] sm:$0xff] %v5727_v39  ;;  %799 = vmatprep.subr.mxu0 %v5687_v61  ;;  %v8509_v43 = vand.u32 4294901760, %v5720_v33  ;;  %973 = vmatpush1.msra.mxu1 %v972_v59  ;;  %v995_v44 = vsub.f32 %v5705_v6, %v8511_v35  ;;  %v1001_v45 = vsub.f32 %v5708_v7, %v8510_v36  ;;  %v720_v59 = vld [vmem:[%s8505_s1 + $0xd0] sm:$0xff]  ;;  %v715_v36 = vld [vmem:[%s8505_s1 + $0xa8] sm:$0xff] }
  0x1e   : > { %801 = vmatpush1.msra.mxu0 %v5689_v62  ;;  %v1007_v46 = vsub.f32 %v5711_v8, %v8508_v37  ;;  %v8513_v47 = vand.u32 4294901760, %v5727_v39  ;;  %v978_v51 = vand.u32 4294901760, %v977_v40  ;;  %v984_v52 = vand.u32 4294901760, %v983_v41  ;;  %v719_v40 = vld [vmem:[%s8505_s1 + $0xc8] sm:$0xff] }
  0x1f   : > { %v990_v53 = vand.u32 4294901760, %v989_v42  ;;  %803 = vmatprep.subr.mxu0 %v5701_v2  ;;  %v1013_v54 = vsub.f32 %v5720_v33, %v8509_v43  ;;  %v996_v41 = vand.u32 4294901760, %v995_v44  ;;  %v1002_v42 = vand.u32 4294901760, %v1001_v45 }
  0x20   : > { %v1008_v37 = vand.u32 4294901760, %v1007_v46  ;;  %805 = vmatpush1.msra.mxu0 %v5713_v13  ;;  %v1019_v43 = vsub.f32 %v5727_v39, %v8513_v47  ;;  %979 = vmatprep.subr.mxu1 %v978_v51  ;;  %v5784_v32 = vand.u32 4294901760, %v730_v48  ;;  %v5786_v44 = vand.u32 4294901760, %v729_v49  ;;  %v714_v46 = vld [vmem:[%s8505_s1 + $0xa0] sm:$0xff] }
  0x21   : > { %v1014_v35 = vand.u32 4294901760, %v1013_v54  ;;  %v5788_v45 = vand.u32 4294901760, %v725_v50  ;;  %985 = vmatpush1.msra.mxu1 %v984_v52  ;;  %v5793_v31 = vand.u32 4294901760, %v724_v58  ;;  %v5795_v14 = vand.u32 4294901760, %v720_v59 }
  0x22   : > { %8799 = vst [vmem:[#allocation12_spill] sm:$0xff] %v5784_v32  ;;  %8800 = vst [vmem:[#allocation13_spill] sm:$0xff] %v5786_v44  ;;  %v1020_v47 = vand.u32 4294901760, %v1019_v43  ;;  %v5797_v38 = vand.u32 4294901760, %v719_v40  ;;  %991 = vmatprep.subr.mxu1 %v990_v53  ;;  %807 = vmatprep.subr.mxu0 %v5784_v32  ;;  %v5801_v51 = vsub.f32 %v730_v48, %v5784_v32  ;;  %v5809_v43 = vand.u32 4294901760, %v715_v36 }
  0x23   : > { %8801 = vst [vmem:[#allocation14_spill] sm:$0xff] %v5788_v45  ;;  %8802 = vst [vmem:[#allocation15_spill] sm:$0xff] %v5793_v31  ;;  %v5804_v54 = vsub.f32 %v729_v49, %v5786_v44  ;;  %v5807_v34 = vsub.f32 %v725_v50, %v5788_v45  ;;  %997 = vmatpush1.msra.mxu1 %v996_v41  ;;  %809 = vmatpush1.msra.mxu0 %v5786_v44  ;;  %v5821_v29 = vand.u32 4294901760, %v714_v46 }
  0x24   : > { %8803 = vst [vmem:[#allocation16_spill] sm:$0xff] %v5795_v14  ;;  %8804 = vst [vmem:[#allocation17_spill] sm:$0xff] %v5797_v38  ;;  %v5813_v52 = vsub.f32 %v724_v58, %v5793_v31  ;;  %v5816_v53 = vsub.f32 %v720_v59, %v5795_v14  ;;  %v5819_v48 = vsub.f32 %v719_v40, %v5797_v38  ;;  %1003 = vmatprep.subr.mxu1 %v1002_v42 }
  0x25   : > { %8805 = vst [vmem:[#allocation18_spill] sm:$0xff] %v5801_v51  ;;  %8806 = vst [vmem:[#allocation19_spill] sm:$0xff] %v5804_v54  ;;  %v8521_v49 = vand.u32 4294901760, %v5801_v51  ;;  %v8522_v50 = vand.u32 4294901760, %v5804_v54  ;;  %811 = vmatprep.subr.mxu0 %v5788_v45  ;;  %v8523_v41 = vand.u32 4294901760, %v5807_v34  ;;  %v5829_v58 = vsub.f32 %v715_v36, %v5809_v43  ;;  %1009 = vmatpush1.msra.mxu1 %v1008_v37 }
  0x26   : > { %8807 = vst [vmem:[#allocation20_spill] sm:$0xff] %v5807_v34  ;;  %8808 = vst [vmem:[#allocation21_spill] sm:$0xff] %v5809_v43  ;;  %813 = vmatpush1.msra.mxu0 %v5793_v31  ;;  %v8524_v59 = vand.u32 4294901760, %v5813_v52  ;;  %v8525_v40 = vand.u32 4294901760, %v5816_v53  ;;  %v8528_v42 = vand.u32 4294901760, %v5819_v48  ;;  %v5836_v28 = vsub.f32 %v714_v46, %v5821_v29  ;;  %1015 = vmatprep.subr.mxu1 %v1014_v35 }
  0x27   : > { %8809 = vst [vmem:[#allocation22_spill] sm:$0xff] %v5813_v52  ;;  %8810 = vst [vmem:[#allocation23_spill] sm:$0xff] %v5816_v53  ;;  %v1025_v36 = vsub.f32 %v5801_v51, %v8521_v49  ;;  %v1031_v37 = vsub.f32 %v5804_v54, %v8522_v50  ;;  %v1037_v27 = vsub.f32 %v5807_v34, %v8523_v41  ;;  %815 = vmatprep.subr.mxu0 %v5795_v14  ;;  %v700_v41 = vld [vmem:[%s8505_s1 + $0x30] sm:$0xff] }
  0x28   : > { %8811 = vst [vmem:[#allocation24_spill] sm:$0xff] %v5819_v48  ;;  %8812 = vst [vmem:[#allocation25_spill] sm:$0xff] %v5821_v29  ;;  %v8534_v46 = vand.u32 4294901760, %v5829_v58  ;;  %1021 = vmatpush1.msra.mxu1 %v1020_v47  ;;  %v1043_v35 = vsub.f32 %v5813_v52, %v8524_v59  ;;  %v1049_v49 = vsub.f32 %v5816_v53, %v8525_v40  ;;  %817 = vmatpush1.msra.mxu0 %v5797_v38  ;;  %v710_v47 = vld [vmem:[%s8505_s1 + $0x80] sm:$0xff]  ;;  %v709_v59 = vld [vmem:[%s8505_s1 + $0x78] sm:$0xff] }
  0x29   : > { %8813 = vst [vmem:[#allocation26_spill] sm:$0xff] %v5829_v58  ;;  %8814 = vst [vmem:[#allocation27_spill] sm:$0xff] %v5836_v28  ;;  %v1055_v50 = vsub.f32 %v5819_v48, %v8528_v42  ;;  %v705_v40 = vld [vmem:[%s8505_s1 + $0x58] sm:$0xff]  ;;  %v1026_v25 = vand.u32 4294901760, %v1025_v36  ;;  %v1032_v24 = vand.u32 4294901760, %v1031_v37  ;;  %v1038_v42 = vand.u32 4294901760, %v1037_v27  ;;  %819 = vmatprep.subr.mxu0 %v5809_v43 }
  0x2a   : > { %v1061_v23 = vsub.f32 %v5829_v58, %v8534_v46  ;;  %v699_v36 = vld [vmem:[%s8505_s1 + $0x28] sm:$0xff]  ;;  %v1044_v37 = vand.u32 4294901760, %v1043_v35  ;;  %v1050_v27 = vand.u32 4294901760, %v1049_v49  ;;  %821 = vmatpush1.msra.mxu0 %v5821_v29  ;;  %v8815_v46 = vand.u32 4294901760, %v5836_v28  ;;  %v694_v49 = vld [vmem:[%s8505_s1] sm:$0xff] }
  0x2b   : > { %v1056_v48 = vand.u32 4294901760, %v1055_v50  ;;  %v695_v53 = vld [vmem:[%s8505_s1 + $0x8] sm:$0xff]  ;;  %1027 = vmatprep.subr.mxu1 %v1026_v25  ;;  %v5894_v52 = vand.u32 4294901760, %v710_v47  ;;  %v5896_v38 = vand.u32 4294901760, %v709_v59  ;;  %v5898_v35 = vand.u32 4294901760, %v705_v40 }
  0x2c   : > { %v1067_v58 = vsub.f32 %v5836_v28, %v8815_v46  ;;  %v1062_v43 = vand.u32 4294901760, %v1061_v23  ;;  %1033 = vmatpush1.msra.mxu1 %v1032_v24  ;;  %v5903_v29 = vand.u32 4294901760, %v704_v9  ;;  %v5905_v46 = vand.u32 4294901760, %v700_v41 }
  0x2d   : > { %8816 = vst [vmem:[#allocation28_spill] sm:$0xff] %v5894_v52  ;;  %8817 = vst [vmem:[#allocation29_spill] sm:$0xff] %v5896_v38  ;;  %v5907_v28 = vand.u32 4294901760, %v699_v36  ;;  %1039 = vmatprep.subr.mxu1 %v1038_v42  ;;  %823 = vmatprep.subr.mxu0 %v5894_v52  ;;  %v5912_v23 = vsub.f32 %v710_v47, %v5894_v52  ;;  %v5915_v25 = vsub.f32 %v709_v59, %v5896_v38 }
  0x2e   : > { %8818 = vst [vmem:[#allocation30_spill] sm:$0xff] %v5898_v35  ;;  %v1068_v50 = vand.u32 4294901760, %v1067_v58  ;;  %8819 = vst [vmem:[#allocation31_spill] sm:$0xff] %v5903_v29  ;;  %v5918_v24 = vsub.f32 %v705_v40, %v5898_v35  ;;  %v5920_v58 = vand.u32 4294901760, %v695_v53  ;;  %1045 = vmatpush1.msra.mxu1 %v1044_v37  ;;  %825 = vmatpush1.msra.mxu0 %v5896_v38  ;;  %v5932_v52 = vand.u32 4294901760, %v694_v49 }
  0x2f   : > { %8820 = vst [vmem:[#allocation32_spill] sm:$0xff] %v5905_v46  ;;  %8821 = vst [vmem:[#allocation33_spill] sm:$0xff] %v5907_v28  ;;  %v5924_v34 = vsub.f32 %v704_v9, %v5903_v29  ;;  %v5927_v42 = vsub.f32 %v700_v41, %v5905_v46  ;;  %v5930_v47 = vsub.f32 %v699_v36, %v5907_v28  ;;  %1051 = vmatprep.subr.mxu1 %v1050_v27  ;;  %v8613_v38 = vmov 1326507024  }
  0x30   : > { %8822 = vst [vmem:[#allocation34_spill] sm:$0xff] %v5912_v23  ;;  %8823 = vst [vmem:[#allocation35_spill] sm:$0xff] %v5915_v25  ;;  %v8555_v59 = vand.u32 4294901760, %v5912_v23  ;;  %v8556_v40 = vand.u32 4294901760, %v5915_v25  ;;  %827 = vmatprep.subr.mxu0 %v5898_v35  ;;  %v5939_v9 = vsub.f32 %v695_v53, %v5920_v58  ;;  %1057 = vmatpush1.msra.mxu1 %v1056_v48 }
  0x31   : > { %8824 = vst [vmem:[#allocation36_spill] sm:$0xff] %v5918_v24  ;;  %8825 = vst [vmem:[#allocation37_spill] sm:$0xff] %v5920_v58  ;;  %829 = vmatpush1.msra.mxu0 %v5903_v29  ;;  %v8563_v36 = vand.u32 4294901760, %v5927_v42  ;;  %v5953_v37 = vsub.f32 %v694_v49, %v5932_v52  ;;  %1063 = vmatprep.subr.mxu1 %v1062_v43  ;;  %v8832_v29 = vand.u32 4294901760, %v5918_v24  ;;  %v8833_v49 = vand.u32 4294901760, %v5924_v34 }
  0x32   : > { %8826 = vst [vmem:[#allocation38_spill] sm:$0xff] %v5924_v34  ;;  %8827 = vst [vmem:[#allocation39_spill] sm:$0xff] %v5927_v42  ;;  %v1073_v53 = vsub.f32 %v5912_v23, %v8555_v59  ;;  %v1079_v48 = vsub.f32 %v5915_v25, %v8556_v40  ;;  %831 = vmatprep.subr.mxu0 %v5905_v46  ;;  %1069 = vmatpush1.msra.mxu1 %v1068_v50  ;;  %v8834_v40 = vand.u32 4294901760, %v5930_v47  ;;  %v5978_v46 = vld [vmem:[%s5946_s4] sm:$0xff] }
  0x33   : > { %8828 = vst [vmem:[#allocation40_spill] sm:$0xff] %v5930_v47  ;;  %8829 = vst [vmem:[#allocation41_spill] sm:$0xff] %v5932_v52  ;;  %v1085_v41 = vsub.f32 %v5918_v24, %v8832_v29  ;;  %v1091_v43 = vsub.f32 %v5924_v34, %v8833_v49  ;;  %v1097_v59 = vsub.f32 %v5927_v42, %v8563_v36  ;;  %833 = vmatpush1.msra.mxu0 %v5907_v28  ;;  %v8605_v34 = vmov 2102212464  }
  0x34   : > { %8830 = vst [vmem:[#allocation42_spill] sm:$0xff] %v5939_v9  ;;  %8831 = vst [vmem:[#allocation43_spill] sm:$0xff] %v5953_v37  ;;  %v1103_v25 = vsub.f32 %v5930_v47, %v8834_v40  ;;  %v8574_v29 = vand.u32 4294901760, %v5953_v37  ;;  %v1074_v27 = vand.u32 4294901760, %v1073_v53  ;;  %v1080_v50 = vand.u32 4294901760, %v1079_v48  ;;  %835 = vmatprep.subr.mxu0 %v5920_v58 }
  0x35   : > { %v1086_v24 = vand.u32 4294901760, %v1085_v41  ;;  %v8835_v49 = vand.u32 4294901760, %v5939_v9  ;;  %v1092_v28 = vand.u32 4294901760, %v1091_v43  ;;  %837 = vmatpush1.msra.mxu0 %v5932_v52  ;;  %v1098_v47 = vand.u32 4294901760, %v1097_v59  ;;  %v5992_v43 = vld [vmem:[%s5946_s4 + $0x8] sm:$0xff]  ;;  %v5995_v52 = vld [vmem:[%s5946_s4 + $0x10] sm:$0xff] }
  0x36   : > { %v1115_v40 = vsub.f32 %v5953_v37, %v8574_v29  ;;  %1075 = vmatprep.subr.mxu1 %v1074_v27  ;;  %1188 = vmatprep.subr.mxu0 %v5589_v15  ;;  %v8575_v41 = vand.u32 2147483647, %v5978_v46  ;;  %v182_v53 = vand.u32 2139095040, %v5978_v46  ;;  %v1104_v48 = vand.u32 4294901760, %v1103_v25 }
  0x37   : > { %v1109_v36 = vsub.f32 %v5939_v9, %v8835_v49  ;;  %1081 = vmatpush1.msra.mxu1 %v1080_v50  ;;  %v8581_v29 = vand.u32 2147483647, %v5992_v43  ;;  %v285_v50 = vand.u32 2139095040, %v5992_v43  ;;  %v388_v25 = vand.u32 2139095040, %v5995_v52 }
  0x38   : > { %1087 = vmatprep.subr.mxu1 %v1086_v24  ;;  %v183_v49 = vshrl.u32 %v182_v53, 23  ;;  %v1116_v9 = vand.u32 4294901760, %v1115_v40  ;;  %v186_v59 = vand.u32 8388607, %v8575_v41 }
  0x39   : > { %v1110_v58 = vand.u32 4294901760, %v1109_v36  ;;  %1093 = vmatpush1.msra.mxu1 %v1092_v28  ;;  %v286_v53 = vshrl.u32 %v285_v50, 23  ;;  %v289_v28 = vand.u32 8388607, %v8581_v29  ;;  %v389_v40 = vshrl.u32 %v388_v25, 23 }
  0x3a   : > { %1099 = vmatprep.subr.mxu1 %v1098_v47  ;;  %v4611_v27 = vadd.s32 4294967169, %v183_v49  ;;  %v187_v36 = vor.u32 8388608, %v186_v59  ;;  %v8601_v50 = vmov 2475754826   ;;  %v8603_v25 = vmov 2131351028  }
  0x3b   : > { %1105 = vmatpush1.msra.mxu1 %v1104_v48  ;;  %v4615_v49 = vadd.s32 4294967169, %v286_v53  ;;  %v4619_v41 = vadd.s32 4294967169, %v389_v40  ;;  %v290_v42 = vor.u32 8388608, %v289_v28  ;;  %v8607_v53 = vmov 920167782  }
  0x3c   : > { %1111 = vmatprep.subr.mxu1 %v1110_v58  ;;  %v189_v24 = vadd.s32 1, %v4611_v27  ;;  %v6005_v37 = vshll.u32 %v187_v36, 8 }
  0x3d   : > { %1117 = vmatpush1.msra.mxu1 %v1116_v9  ;;  %v292_v58 = vadd.s32 1, %v4615_v49  ;;  %v8599_v9 = vmov 683565275   ;;  %v6012_v36 = vadd.s32 1, %v4619_v41 }
  0x3e   : > { %1356 = vmatprep.subr.mxu1 %v5558_v3  ;;  %vm190_vm0 = vcmp.gt.s32.totalorder %v189_v24, 0 }
  0x3f   : > { %v191_v47 = vsel %vm190_vm0, %v189_v24, 0  ;;  %vm293_vm4 = vcmp.gt.s32.totalorder %v292_v58, 0  ;;  %vm396_vm6 = vcmp.gt.s32.totalorder %v6012_v36, 0 }
  0x40   : > { %v192_v48 = vshrl.u32 %v191_v47, 5  ;;  %v193_v15 = vand.u32 31, %v191_v47 }
  0x42   : > { %v194_v27 = vsub.s32 32, %v193_v15  ;;  %v196_v59 = vshll.u32 %v8599_v9, %v193_v15  ;;  %v199_v29 = vshll.u32 %v8601_v50, %v193_v15  ;;  %v202_v3 = vshll.u32 %v8603_v25, %v193_v15 }
  0x43   : > { %v205_v24 = vshll.u32 %v8605_v34, %v193_v15  ;;  %v208_v40 = vshll.u32 %v8607_v53, %v193_v15  ;;  %vm211_vm1 = vcmp.lt.s32.totalorder %v192_v48, 1  ;;  %vm212_vm2 = vcmp.lt.s32.totalorder %v192_v48, 2 }
  0x44   : > { %v195_v28 = vshrl.u32 %v8599_v9, %v194_v27  ;;  %v197_v47 = vshrl.u32 %v8601_v50, %v194_v27  ;;  %v200_v49 = vshrl.u32 %v8603_v25, %v194_v27  ;;  %v203_v23 = vshrl.u32 %v8605_v34, %v194_v27 }
  0x45   : > { %v206_v35 = vshrl.u32 %v8607_v53, %v194_v27  ;;  %v209_v14 = vshrl.u32 %v8613_v38, %v194_v27  ;;  %vm214_vm3 = vcmp.lt.s32.totalorder %v192_v48, 4  ;;  %vm213_vm5 = vcmp.lt.s32.totalorder %v192_v48, 3 }
  0x46   : > { %v198_v54 = vor.u32 %v197_v47, %v196_v59  ;;  %v201_v15 = vor.u32 %v200_v49, %v199_v29  ;;  %v204_v31 = vor.u32 %v203_v23, %v202_v3  ;;  %v294_v9 = vsel %vm293_vm4, %v292_v58, 0 }
  0x47   : > { %v207_v41 = vor.u32 %v206_v35, %v205_v24  ;;  %v210_v51 = vor.u32 %v209_v14, %v208_v40  ;;  %v6023_v38 = vshll.u32 %v290_v42, 8  ;;  %v295_v3 = vshrl.u32 %v294_v9, 5 }
  0x48   : > { %v215_v50 = vsel %vm211_vm1, %v195_v28, %v198_v54  ;;  %v216_v25 = vsel %vm214_vm3, %v204_v31, 2102212464  ;;  %v219_v34 = vsel %vm211_vm1, %v198_v54, %v201_v15  ;;  %v223_v53 = vsel %vm211_vm1, %v201_v15, %v204_v31 }
  0x49   : > { %v217_v45 = vsel %vm213_vm5, %v201_v15, %v216_v25  ;;  %v220_v39 = vsel %vm214_vm3, %v207_v41, 920167782  ;;  %v224_v27 = vsel %vm214_vm3, %v210_v51, 1326507024  ;;  %v296_v23 = vand.u32 31, %v294_v9 }
  0x4a   : > { %v221_v59 = vsel %vm213_vm5, %v204_v31, %v220_v39  ;;  %v225_v29 = vsel %vm213_vm5, %v207_v41, %v224_v27  ;;  %v218_v14 = vsel %vm212_vm2, %v215_v50, %v217_v45  ;;  %v8836_v39 = vmov 683565275  }
  0x4b   : > { %v222_v35 = vsel %vm212_vm2, %v219_v34, %v221_v59  ;;  %v226_v58 = vsel %vm212_vm2, %v223_v53, %v225_v29  ;;  %v297_v31 = vsub.s32 32, %v296_v23  ;;  %v299_v9 = vshll.u32 %v8836_v39, %v296_v23 }
  0x4c   : > { %v6030_v54 = vmul.u32.u64.low %v6005_v37, %v226_v58  ;;  %v6031_v24 = vmul.u32.u64.high %v6005_v37, %v226_v58, %v6030_v54  ;;  %v6034_v51 = vmul.u32.u64.low %v6005_v37, %v222_v35  ;;  %v6035_v42 = vmul.u32.u64.high %v6005_v37, %v222_v35, %v6034_v51 }
  0x4d   : > { %v8837_v25 = vmov 2475754826   ;;  %v8838_v50 = vmov 2131351028   ;;  %v234_v48 = vmul.u32 %v6005_v37, %v218_v14  ;;  %v8839_v53 = vmov 2102212464  }
  0x4e   : > { %v302_v45 = vshll.u32 %v8837_v25, %v296_v23  ;;  %v305_v34 = vshll.u32 %v8838_v50, %v296_v23  ;;  %v308_v40 = vshll.u32 %v8839_v53, %v296_v23  ;;  %v8840_v28 = vmov 920167782  }
  0x4f   : > { %v311_v47 = vshll.u32 %v8840_v28, %v296_v23  ;;  %vm314_vm7 = vcmp.lt.s32.totalorder %v295_v3, 1  ;;  %v298_v49 = vshrl.u32 %v8836_v39, %v297_v31  ;;  %v300_v15 = vshrl.u32 %v8837_v25, %v297_v31 }
  0x50   : > { %v303_v41 = vshrl.u32 %v8838_v50, %v297_v31  ;;  %v306_v27 = vshrl.u32 %v8839_v53, %v297_v31  ;;  %vm236_vm8 = vc.u32 %v6031_v24, %v6034_v51  ;;  %v237_v59 = vadd.s32 1, %v6035_v42 }
  0x51   : > { %v309_v37 = vshrl.u32 %v8840_v28, %v297_v31  ;;  %vm315_vm9 = vcmp.lt.s32.totalorder %v295_v3, 2  ;;  %v301_v29 = vor.u32 %v300_v15, %v299_v9  ;;  %v8841_v35 = vmov 1326507024  }
  0x52   : > { %v304_v14 = vor.u32 %v303_v41, %v302_v45  ;;  %v307_v23 = vor.u32 %v306_v27, %v305_v34  ;;  %v312_v58 = vshrl.u32 %v8841_v35, %v297_v31  ;;  %v238_v54 = vsel %vm236_vm8, %v237_v59, %v6035_v42 }
  0x53   : > { %v310_v33 = vor.u32 %v309_v37, %v308_v40  ;;  %vm316_vm10 = vcmp.lt.s32.totalorder %v295_v3, 3  ;;  %vm317_vm11 = vcmp.lt.s32.totalorder %v295_v3, 4  ;;  %v239_v8 = vadd.s32 %v238_v54, %v234_v48 }
  0x54   : > { %v313_v7 = vor.u32 %v312_v58, %v311_v47  ;;  %v318_v44 = vsel %vm314_vm7, %v298_v49, %v301_v29  ;;  %v319_v6 = vsel %vm317_vm11, %v307_v23, 2102212464  ;;  %v322_v1 = vsel %vm314_vm7, %v301_v29, %v304_v14 }
  0x55   : > { %v320_v32 = vsel %vm316_vm10, %v304_v14, %v319_v6  ;;  %v323_v13 = vsel %vm317_vm11, %v310_v33, 920167782  ;;  %v326_v9 = vsel %vm314_vm7, %v304_v14, %v307_v23  ;;  %v240_v45 = vadd.s32 536870912, %v239_v8 }
  0x56   : > { %v324_v31 = vsel %vm316_vm10, %v307_v23, %v323_v13  ;;  %v327_v34 = vsel %vm317_vm11, %v313_v7, 1326507024  ;;  %v397_v42 = vsel %vm396_vm6, %v6012_v36, 0  ;;  %v321_v48 = vsel %vm315_vm9, %v318_v44, %v320_v32 }
  0x57   : > { %v325_v40 = vsel %vm315_vm9, %v322_v1, %v324_v31  ;;  %v328_v47 = vsel %vm316_vm10, %v310_v33, %v327_v34  ;;  %v8631_v6 = vand.u32 2147483647, %v5995_v52  ;;  %v6066_v49 = vshrl.u32 %v240_v45, 30 }
  0x58   : > { %v329_v15 = vsel %vm315_vm9, %v326_v9, %v328_v47  ;;  %v6070_v41 = vmul.u32.u64.low %v6023_v38, %v325_v40  ;;  %v6071_v13 = vmul.u32.u64.high %v6023_v38, %v325_v40, %v6070_v41  ;;  %v399_v32 = vand.u32 31, %v397_v42 }
  0x59   : > { %v6075_v7 = vmul.u32.u64.low %v6023_v38, %v329_v15  ;;  %v6076_v36 = vmul.u32.u64.high %v6023_v38, %v329_v15, %v6075_v7  ;;  %v242_v1 = vshll.u32 %v6066_v49, 30  ;;  %v337_v33 = vmul.u32 %v6023_v38, %v321_v48 }
  0x5a   : > { %v400_v44 = vsub.s32 32, %v399_v32  ;;  %v340_v3 = vadd.s32 1, %v6071_v13  ;;  %v392_v59 = vand.u32 8388607, %v8631_v6  ;;  %v6085_v37 = vshrl.u32 %v397_v42, 5 }
  0x5b   : > { %v6080_v27 = vsub.s32 %v239_v8, %v242_v1  ;;  %vm339_vm12 = vc.u32 %v6076_v36, %v6070_v41  ;;  %v402_v29 = vshll.u32 %v8836_v39, %v399_v32  ;;  %v405_v14 = vshll.u32 %v8837_v25, %v399_v32 }
  0x5c   : > { %v408_v23 = vshll.u32 %v8838_v50, %v399_v32  ;;  %v341_v8 = vsel %vm339_vm12, %v340_v3, %v6071_v13  ;;  %v403_v58 = vshrl.u32 %v8837_v25, %v400_v44  ;;  %v411_v54 = vshll.u32 %v8839_v53, %v399_v32 }
  0x5d   : > { %v245_v38 = vsub.s32 0, %v6080_v27  ;;  %v342_v9 = vadd.s32 %v341_v8, %v337_v33  ;;  %v406_v45 = vshrl.u32 %v8838_v50, %v400_v44  ;;  %v409_v31 = vshrl.u32 %v8839_v53, %v400_v44 }
  0x5e   : > { %v412_v34 = vshrl.u32 %v8840_v28, %v400_v44  ;;  %v393_v48 = vor.u32 8388608, %v392_v59  ;;  %v401_v40 = vshrl.u32 %v8836_v39, %v400_v44  ;;  %v404_v15 = vor.u32 %v403_v58, %v402_v29 }
  0x5f   : > { %v4612_v42 = vmin.u32 %v245_v38, %v6080_v27  ;;  %v343_v47 = vadd.s32 536870912, %v342_v9  ;;  %v407_v7 = vor.u32 %v406_v45, %v405_v14  ;;  %v410_v13 = vor.u32 %v409_v31, %v408_v23 }
  0x60   : > { %v413_v3 = vor.u32 %v412_v34, %v411_v54  ;;  %v414_v6 = vshll.u32 %v8840_v28, %v399_v32  ;;  %v415_v33 = vshrl.u32 %v8841_v35, %v400_v44  ;;  %vm417_vm13 = vcmp.lt.s32.totalorder %v6085_v37, 1  ;;  %v6129_v34 = vld [vmem:[%s5946_s4 + $0x18] sm:$0xff] }
  0x61   : > { %v247_v1 = vclz %v4612_v42  ;;  %v344_v8 = vshrl.u32 %v343_v47, 30  ;;  %vm419_vm14 = vcmp.lt.s32.totalorder %v6085_v37, 3  ;;  %vm420_vm15 = vcmp.lt.s32.totalorder %v6085_v37, 4 }
  0x62   : > { %v416_v38 = vor.u32 %v415_v33, %v414_v6  ;;  %v426_v29 = vsel %vm420_vm15, %v413_v3, 920167782  ;;  %v6108_v14 = vshll.u32 %v393_v48, 8  ;;  %v235_v32 = vadd.s32 %v6034_v51, %v6031_v24 }
  0x63   : > { %v4613_v59 = vadd.s32 4294967294, %v247_v1  ;;  %v345_v23 = vshll.u32 %v344_v8, 30  ;;  %vm418_vm0 = vcmp.lt.s32.totalorder %v6085_v37, 2  ;;  %v422_v44 = vsel %vm420_vm15, %v410_v13, 2102212464 }
  0x64   : > { %vm181_vm1 = vcmp.lt.s32.totalorder %v5978_v46, 0  ;;  %v421_v6 = vsel %vm417_vm13, %v401_v40, %v404_v15  ;;  %v425_v58 = vsel %vm417_vm13, %v404_v15, %v407_v7  ;;  %v427_v54 = vsel %vm419_vm14, %v410_v13, %v426_v29 }
  0x65   : > { %vm4614_vm2 = vcmp.lt.s32.totalorder %v4613_v59, 0  ;;  %v6122_v24 = vsub.s32 %v342_v9, %v345_v23  ;;  %v429_v51 = vsel %vm417_vm13, %v407_v7, %v410_v13  ;;  %v430_v31 = vsel %vm420_vm15, %v416_v38, 1326507024 }
  0x66   : > { %v250_v45 = vsel %vm4614_vm2, 0, %v4613_v59  ;;  %v423_v47 = vsel %vm419_vm14, %v407_v7, %v422_v44  ;;  %v8842_v15 = vand.u32 2147483647, %v5978_v46  ;;  %v428_v1 = vsel %vm418_vm0, %v425_v58, %v427_v54 }
  0x67   : > { %v251_v42 = vsub.s32 32, %v250_v45  ;;  %v252_v48 = vshll.u32 %v6080_v27, %v250_v45  ;;  %v255_v40 = vsub.s32 4294967266, %v250_v45  ;;  %v348_v13 = vsub.s32 0, %v6122_v24 }
  0x68   : > { %vm6136_vm3 = vcmp.le.f32.partialorder %v8842_v15, 0.7853982  ;;  %v431_v33 = vsel %vm419_vm14, %v413_v3, %v430_v31  ;;  %v491_v7 = vand.u32 2139095040, %v6129_v34  ;;  %v265_v29 = vsub.s32 4, %v6066_v49 }
  0x69   : > { %v253_v59 = vshrl.u32 %v235_v32, %v251_v42  ;;  %v256_v27 = vadd.s32 127, %v255_v40  ;;  %v432_v38 = vsel %vm418_vm0, %v429_v51, %v431_v33  ;;  %v4616_v23 = vmin.u32 %v348_v13, %v6122_v24 }
  0x6a   : > { %v368_v44 = vsub.s32 4, %v344_v8  ;;  %v424_v45 = vsel %vm418_vm0, %v421_v6, %v423_v47  ;;  %v6153_v54 = vmul.u32.u64.low %v6108_v14, %v432_v38  ;;  %v6154_v3 = vmul.u32.u64.high %v6108_v14, %v432_v38, %v6153_v54 }
  0x6b   : > { %v254_v15 = vor.u32 %v253_v59, %v252_v48  ;;  %v257_v58 = vshll.u32 %v256_v27, 23  ;;  %v350_v32 = vclz %v4616_v23  ;;  %v492_v42 = vshrl.u32 %v491_v7, 23 }
  0x6c   : > { %v6157_v31 = vmul.u32.u64.low %v6108_v14, %v428_v1  ;;  %v6158_v51 = vmul.u32.u64.high %v6108_v14, %v428_v1, %v6157_v31  ;;  %v8845_v13 = vand.u32 2147483647, %v5992_v43  ;;  %vm284_vm5 = vcmp.lt.s32.totalorder %v5992_v43, 0 }
  0x6d   : > { %v258_v40 = vor.u32 4788187, %v257_v58  ;;  %v261_v33 = vcvt.s32.f32 %v254_v15  ;;  %v266_v37 = vsel %vm181_vm1, %v265_v29, %v6066_v49  ;;  %v4617_v6 = vadd.s32 4294967294, %v350_v32 }
  0x6e   : > { %vm6162_vm4 = vcmp.le.f32.partialorder %v8845_v13, 0.7853982  ;;  %v369_v48 = vsel %vm284_vm5, %v368_v44, %v344_v8  ;;  %v4623_v47 = vadd.s32 4294967169, %v492_v42  ;;  %v440_v59 = vmul.u32 %v6108_v14, %v424_v45 }
  0x6f   : > { %v259_v1 = vand.u32 2147483647, %v258_v40  ;;  %vm442_vm6 = vc.u32 %v6154_v3, %v6157_v31  ;;  %v8634_v27 = vand.u32 2147483647, %v6129_v34  ;;  %v338_v38 = vadd.s32 %v6070_v41, %v6076_v36 }
  0x70   : > { %vm4618_vm7 = vcmp.lt.s32.totalorder %v4617_v6, 0  ;;  %v443_v7 = vadd.s32 1, %v6158_v51  ;;  %v498_v23 = vadd.s32 1, %v4623_v47  ;;  %v268_v29 = vsel %vm6136_vm3, 0, %v266_v37 }
  0x71   : > { %v262_v49 = vmul.f32 %v261_v33, %v259_v1  ;;  %v353_v8 = vsel %vm4618_vm7, 0, %v4617_v6  ;;  %v371_v44 = vsel %vm6162_vm4, 0, %v369_v48  ;;  %v495_v54 = vand.u32 8388607, %v8634_v27 }
  0x72   : > { %v354_v14 = vsub.s32 32, %v353_v8  ;;  %v355_v45 = vshll.u32 %v6122_v24, %v353_v8  ;;  %v358_v15 = vsub.s32 4294967266, %v353_v8  ;;  %v444_v58 = vsel %vm442_vm6, %v443_v7, %v6158_v51  ;;  %v6191_v24 = vld [vmem:[%s5946_s4 + $0x20] sm:$0xff] }
  0x73   : > { %v263_v41 = vxor.u32 2147483648, %v262_v49  ;;  %v445_v36 = vadd.s32 %v444_v58, %v440_v59  ;;  %vm499_vm8 = vcmp.gt.s32.totalorder %v498_v23, 0  ;;  %v6188_v13 = vand.u32 3, %v268_v29  ;;  %8848 = vst [vmem:[#allocation44_spill] sm:$0xff] %v6191_v24 }
  0x74   : > { %v356_v32 = vshrl.u32 %v338_v38, %v354_v14  ;;  %v359_v42 = vadd.s32 127, %v358_v15  ;;  %v500_v40 = vsel %vm499_vm8, %v498_v23, 0  ;;  %v6196_v1 = vand.u32 3, %v371_v44 }
  0x75   : > { %v264_v33 = vsel %vm181_vm1, %v263_v41, %v262_v49  ;;  %v446_v37 = vadd.s32 536870912, %v445_v36  ;;  %v502_v6 = vand.u32 31, %v500_v40  ;;  %v496_v38 = vor.u32 8388608, %v495_v54 }
  0x76   : > { %v267_v51 = vsel %vm6136_vm3, %v5978_v46, %v264_v33  ;;  %v357_v48 = vor.u32 %v356_v32, %v355_v45  ;;  %v360_v47 = vshll.u32 %v359_v42, 23  ;;  %v594_v29 = vand.u32 2139095040, %v6191_v24 }
  0x77   : > { %5485 = vcosq.f32 %v267_v51  ;;  %v6198_v59 = vshrl.u32 %v446_v37, 30  ;;  %v503_v7 = vsub.s32 32, %v502_v6  ;;  %v6202_v8 = vadd.s32 %v6157_v31, %v6154_v3 }
  0x78   : > { %5487 = vsinq.f32 %v267_v51  ;;  %v361_v23 = vor.u32 4788187, %v360_v47  ;;  %v364_v49 = vcvt.s32.f32 %v357_v48  ;;  %v6205_v14 = vshrl.u32 %v500_v40, 5 }
  0x79   : > { %v448_v9 = vshll.u32 %v6198_v59, 30  ;;  %v8635_v44 = vand.u32 2147483647, %v6191_v24  ;;  %v505_v15 = vshll.u32 %v8836_v39, %v502_v6  ;;  %v506_v58 = vshrl.u32 %v8837_v25, %v503_v7 }
  0x7a   : > { %v362_v45 = vand.u32 2147483647, %v361_v23  ;;  %v508_v41 = vshll.u32 %v8837_v25, %v502_v6  ;;  %v509_v32 = vshrl.u32 %v8838_v50, %v503_v7  ;;  %v511_v3 = vshll.u32 %v8838_v50, %v502_v6 }
  0x7b   : > { %v6211_v54 = vsub.s32 %v445_v36, %v448_v9  ;;  %v512_v31 = vshrl.u32 %v8839_v53, %v503_v7  ;;  %vm277_vm9 = vcmp.eq.s32.totalorder %v6188_v13, 2  ;;  %v514_v40 = vshll.u32 %v8839_v53, %v502_v6 }
  0x7c   : > { %v365_v42 = vmul.f32 %v364_v49, %v362_v45  ;;  %v6218_v33 = vshll.u32 %v496_v38, 8  ;;  %v595_v37 = vshrl.u32 %v594_v29, 23  ;;  %vm274_vm10 = vcmp.eq.s32.totalorder %v6188_v13, 0 }
  0x7d   : > { %v451_v51 = vsub.s32 0, %v6211_v54  ;;  %v515_v36 = vshrl.u32 %v8840_v28, %v503_v7  ;;  %v517_v48 = vshll.u32 %v8840_v28, %v502_v6  ;;  %v6226_v47 = vand.u32 8388607, %v8635_v44 }
  0x7e   : > { %vm273_vm11 = vcmp.lt.s32.totalorder %v6188_v13, 2  ;;  %v366_v23 = vxor.u32 2147483648, %v365_v42  ;;  %v504_v49 = vshrl.u32 %v8836_v39, %v503_v7  ;;  %v507_v38 = vor.u32 %v506_v58, %v505_v15 }
  0x7f   : > { %v518_v29 = vshrl.u32 %v8841_v35, %v503_v7  ;;  %vm271_vm12 = vweird.f32 %v5978_v46  ;;  %v4620_v9 = vmin.u32 %v451_v51, %v6211_v54  ;;  %v510_v45 = vor.u32 %v509_v32, %v508_v41 }
  0x80   : > { %v513_v27 = vor.u32 %v512_v31, %v511_v3  ;;  %vm520_vm13 = vcmp.lt.s32.totalorder %v6205_v14, 1  ;;  %v367_v6 = vsel %vm284_vm5, %v366_v23, %v365_v42  ;;  %v516_v44 = vor.u32 %v515_v36, %v514_v40 }
  0x81   : > { %v519_v24 = vor.u32 %v518_v29, %v517_v48  ;;  %vm522_vm14 = vcmp.lt.s32.totalorder %v6205_v14, 3  ;;  %v370_v15 = vsel %vm6162_vm4, %v5992_v43, %v367_v6  ;;  %v453_v7 = vclz %v4620_v9 }
  0x82   : > { %vm523_vm15 = vcmp.lt.s32.totalorder %v6205_v14, 4  ;;  %v4627_v58 = vadd.s32 4294967169, %v595_v37  ;;  %5489 = vcosq.f32 %v370_v15  ;;  %vm521_vm0 = vcmp.lt.s32.totalorder %v6205_v14, 2 }
  0x83   : > { %v525_v41 = vsel %vm523_vm15, %v513_v27, 2102212464  ;;  %v529_v32 = vsel %vm523_vm15, %v516_v44, 920167782  ;;  %5491 = vsinq.f32 %v370_v15  ;;  %v4621_v3 = vadd.s32 4294967294, %v453_v7 }
  0x84   : > { %v528_v31 = vsel %vm520_vm13, %v507_v38, %v510_v45  ;;  %v530_v42 = vsel %vm522_vm14, %v513_v27, %v529_v32  ;;  %v5486_v40 = vpop.eup %5485  ;;  %v471_v0 = vsub.s32 4, %v6198_v59  ;;  %v524_v51 = vsel %vm520_vm13, %v504_v49, %v507_v38 }
  0x85   : > { %v532_v37 = vsel %vm520_vm13, %v510_v45, %v513_v27  ;;  %v533_v36 = vsel %vm523_vm15, %v519_v24, 1326507024  ;;  %v5488_v48 = vpop.eup %5487  ;;  %v278_v23 = vxor.u32 2147483648, %v5486_v40  ;;  %vm4622_vm1 = vcmp.lt.s32.totalorder %v4621_v3, 0 }
  0x86   : > { %v526_v29 = vsel %vm522_vm14, %v510_v45, %v525_v41  ;;  %v534_v9 = vsel %vm522_vm14, %v516_v44, %v533_v36  ;;  %v275_v6 = vxor.u32 2147483648, %v5488_v48  ;;  %vm387_vm2 = vcmp.lt.s32.totalorder %v5995_v52, 0 }
  0x87   : > { %v456_v15 = vsel %vm4622_vm1, 0, %v4621_v3  ;;  %v531_v49 = vsel %vm521_vm0, %v528_v31, %v530_v42  ;;  %v535_v27 = vsel %vm521_vm0, %v532_v37, %v534_v9  ;;  %v279_v24 = vsel %vm277_vm9, %v278_v23, %v5488_v48 }
  0x88   : > { %v457_v38 = vsub.s32 32, %v456_v15  ;;  %v458_v7 = vshll.u32 %v6211_v54, %v456_v15  ;;  %v461_v45 = vsub.s32 4294967266, %v456_v15  ;;  %v276_v44 = vsel %vm274_vm10, %v5486_v40, %v275_v6 }
  0x89   : > { %v6266_v41 = vmul.u32.u64.low %v6218_v33, %v535_v27  ;;  %v6267_v32 = vmul.u32.u64.high %v6218_v33, %v535_v27, %v6266_v41  ;;  %v601_v3 = vadd.s32 1, %v4627_v58  ;;  %v280_v31 = vsel %vm273_vm11, %v276_v44, %v279_v24 }
  0x8a   : > { %v459_v42 = vshrl.u32 %v6202_v8, %v457_v38  ;;  %v462_v37 = vadd.s32 127, %v461_v45  ;;  %v527_v36 = vsel %vm521_vm0, %v524_v51, %v526_v29  ;;  %v281_v54 = vsel %vm271_vm12, nan, %v280_v31 }
  0x8b   : > { %vm374_vm3 = vweird.f32 %v5992_v43  ;;  %v6278_v40 = vmul.u32.u64.low %v6218_v33, %v531_v49  ;;  %v6279_v48 = vmul.u32.u64.high %v6218_v33, %v531_v49, %v6278_v40  ;;  %vm602_vm4 = vcmp.gt.s32.totalorder %v601_v3, 0 }
  0x8c   : > { %v6282_v58 = vand.u32 4294901760, %v281_v54  ;;  %v460_v13 = vor.u32 %v459_v42, %v458_v7  ;;  %v463_v23 = vshll.u32 %v462_v37, 23  ;;  %v603_v8 = vsel %vm602_vm4, %v601_v3, 0 }
  0x8d   : > { %vm376_vm5 = vcmp.lt.s32.totalorder %v6196_v1, 2  ;;  %v8850_v14 = vand.u32 2147483647, %v5995_v52  ;;  %v543_v51 = vmul.u32 %v6218_v33, %v527_v36  ;;  %v605_v29 = vand.u32 31, %v603_v8 }
  0x8e   : > { %8849 = vst [vmem:[#allocation45_spill] sm:$0xff] %v6282_v58  ;;  %v6293_v9 = vsub.f32 %v281_v54, %v6282_v58  ;;  %1152 = vmatmul.mubr.f32.vlgmr.msra.gmra.mxu1 %v6282_v58  ;;  %v464_v6 = vor.u32 4788187, %v463_v23  ;;  %v467_v15 = vcvt.s32.f32 %v460_v13  ;;  %vm545_vm7 = vc.u32 %v6267_v32, %v6278_v40  ;;  %v8877_v58 = vld [vmem:[#allocation17_spill] sm:$0xff] }
  0x8f   : > { %vm6287_vm6 = vcmp.le.f32.partialorder %v8850_v14, 0.7853982  ;;  %1358 = vmatpush1.msra.mxu1 %v5560_v4  ;;  %v8854_v49 = vmov 0.0   ;;  %vm377_vm8 = vcmp.eq.s32.totalorder %v6196_v1, 0  ;;  %vm380_vm9 = vcmp.eq.s32.totalorder %v6196_v1, 2  ;;  %v5490_v24 = vpop.eup %5489 }
  0x90   : > { %8853 = vst [vmem:[#allocation46_spill] sm:$0xff] %v6293_v9  ;;  %1157 = vmatprep.mubr.f32.mxu1 %v8854_v49  ;;  %v546_v33 = vadd.s32 1, %v6279_v48  ;;  %v606_v27 = vsub.s32 32, %v605_v29  ;;  %v6304_v38 = vand.u32 4294901760, %v6293_v9  ;;  %1360 = vmatprep.subr.mxu1 %v5562_v5  ;;  %v465_v7 = vand.u32 2147483647, %v464_v6  ;;  %v5492_v41 = vpop.eup %5491 }
  0x91   : > { %v6310_v45 = vsel %vm387_vm2, %v471_v0, %v6198_v59  ;;  %v599_v44 = vor.u32 8388608, %v6226_v47  ;;  %1362 = vmatpush1.msra.mxu1 %v5575_v10  ;;  %v381_v3 = vxor.u32 2147483648, %v5490_v24  ;;  %v6318_v42 = vshrl.u32 %v603_v8, 5 }
  0x92   : > { %8855 = vst [vmem:[#allocation47_spill] sm:$0xff] %v6304_v38  ;;  %v547_v31 = vsel %vm545_vm7, %v546_v33, %v6279_v48  ;;  %v608_v37 = vshll.u32 %v8836_v39, %v605_v29  ;;  %v874_v36 = vsub.f32 %v6293_v9, %v6304_v38  ;;  %1364 = vmatprep.subr.mxu1 %v5577_v11  ;;  %v378_v59 = vxor.u32 2147483648, %v5492_v41 }
  0x93   : > { %v468_v0 = vmul.f32 %v467_v15, %v465_v7  ;;  %v548_v54 = vadd.s32 %v547_v31, %v543_v51  ;;  %1366 = vmatpush1.msra.mxu1 %v5579_v12  ;;  %v382_v13 = vsel %vm380_vm9, %v381_v3, %v5492_v41  ;;  %v609_v23 = vshrl.u32 %v8837_v25, %v606_v27 }
  0x94   : > { %v611_v48 = vshll.u32 %v8837_v25, %v605_v29  ;;  %v614_v8 = vshll.u32 %v8838_v50, %v605_v29  ;;  %v6330_v14 = vand.u32 4294901760, %v874_v36  ;;  %1368 = vmatprep.subr.mxu1 %v5597_v18  ;;  %v379_v6 = vsel %vm377_vm8, %v5490_v24, %v378_v59 }
  0x95   : > { %v469_v15 = vxor.u32 2147483648, %v468_v0  ;;  %v549_v51 = vadd.s32 536870912, %v548_v54  ;;  %1370 = vmatpush1.msra.mxu1 %v5609_v22  ;;  %v383_v33 = vsel %vm376_vm5, %v379_v6, %v382_v13  ;;  %v612_v7 = vshrl.u32 %v8838_v50, %v606_v27 }
  0x96   : > { %8856 = vst [vmem:[#allocation48_spill] sm:$0xff] %v6330_v14  ;;  %v617_v25 = vshll.u32 %v8839_v53, %v605_v29  ;;  %v618_v41 = vshrl.u32 %v8840_v28, %v606_v27  ;;  %876 = vmatmul.mubr.f32.vlgmr.msra.gmra.mxu0 %v6330_v14  ;;  %1372 = vmatprep.subr.mxu1 %v5676_v55  ;;  %v384_v24 = vsel %vm374_vm3, nan, %v383_v33  ;;  %vm623_vm10 = vcmp.lt.s32.totalorder %v6318_v42, 1  ;;  %v8860_v33 = vld [vmem:[#allocation4_spill] sm:$0xff]  ;;  %v8874_v14 = vld [vmem:[#allocation19_spill] sm:$0xff] }
  0x97   : > { %v470_v3 = vsel %vm387_vm2, %v469_v15, %v468_v0  ;;  %v6347_v31 = vshrl.u32 %v549_v51, 30  ;;  %v615_v1 = vshrl.u32 %v8839_v53, %v606_v27  ;;  %1191 = vmatpush1.msra.mxu0 %v5592_v16  ;;  %1374 = vmatpush1.msra.mxu1 %v5678_v56  ;;  %v6352_v50 = vand.u32 4294901760, %v384_v24 }
  0x98   : > { %v473_v36 = vsel %vm6287_vm6, %v5995_v52, %v470_v3  ;;  %v620_v43 = vshll.u32 %v8840_v28, %v605_v29  ;;  %v621_v59 = vshrl.u32 %v8841_v35, %v606_v27  ;;  %1194 = vmatprep.subr.mxu0 %v5595_v17  ;;  %1376 = vmatprep.subr.mxu1 %v5680_v57  ;;  %vm626_vm11 = vcmp.lt.s32.totalorder %v6318_v42, 4 }
  0x99   : > { %8857 = vst [vmem:[#allocation49_spill] sm:$0xff] %v6352_v50  ;;  %5493 = vcosq.f32 %v473_v36  ;;  %v551_v53 = vshll.u32 %v6347_v31, 30  ;;  %v607_v0 = vshrl.u32 %v8836_v39, %v606_v27  ;;  %v610_v13 = vor.u32 %v609_v23, %v608_v37  ;;  %1197 = vmatpush1.msra.mxu0 %v5601_v19  ;;  %1378 = vmatpush1.msra.mxu1 %v5685_v60 }
  0x9a   : > { %v6366_v6 = vsub.f32 %v384_v24, %v6352_v50  ;;  %5495 = vsinq.f32 %v473_v36  ;;  %v613_v28 = vor.u32 %v612_v7, %v611_v48  ;;  %v619_v35 = vor.u32 %v618_v41, %v617_v25  ;;  %1200 = vmatprep.subr.mxu0 %v5604_v20  ;;  %1380 = vmatprep.subr.mxu1 %v5687_v61  ;;  %v8862_v25 = vld [vmem:[#allocation9_spill] sm:$0xff]  ;;  %v8864_v36 = vld [vmem:[#allocation12_spill] sm:$0xff] }
  0x9b   : > { %v6370_v29 = vsub.s32 %v548_v54, %v551_v53  ;;  %v616_v15 = vor.u32 %v615_v1, %v614_v8  ;;  %1203 = vmatpush1.msra.mxu0 %v5607_v21  ;;  %1382 = vmatpush1.msra.mxu1 %v5689_v62  ;;  %v474_v27 = vsel %vm6287_vm6, 0, %v6310_v45  ;;  %v622_v37 = vor.u32 %v621_v59, %v620_v43  ;;  %v8863_v1 = vld [vmem:[#allocation5_spill] sm:$0xff] }
  0x9c   : > { %8858 = vst [vmem:[#allocation50_spill] sm:$0xff] %v6366_v6  ;;  %v6377_v39 = vand.u32 4294901760, %v6366_v6  ;;  %1206 = vmatprep.subr.mxu0 %v5616_v26  ;;  %881 = vmatprep.mubr.f32.mxu0 %v8854_v49  ;;  %vm625_vm12 = vcmp.lt.s32.totalorder %v6318_v42, 3  ;;  %v6390_v48 = vshll.u32 %v599_v44, 8  ;;  %vm624_vm13 = vcmp.lt.s32.totalorder %v6318_v42, 2  ;;  %v8870_v42 = vld [vmem:[#allocation11_spill] sm:$0xff] }
  0x9d   : > { %v554_v54 = vsub.s32 0, %v6370_v29  ;;  %v628_v23 = vsel %vm626_vm11, %v616_v15, 2102212464  ;;  %1209 = vmatpush1.msra.mxu0 %v5623_v30  ;;  %1384 = vmatprep.subr.mxu1 %v5701_v2  ;;  %v631_v45 = vsel %vm623_vm10, %v610_v13, %v613_v28  ;;  %v632_v8 = vsel %vm626_vm11, %v619_v35, 920167782 }
  0x9e   : > { %8859 = vst [vmem:[#allocation51_spill] sm:$0xff] %v6377_v39  ;;  %v885_v46 = vsub.f32 %v6366_v6, %v6377_v39  ;;  %1212 = vmatprep.subr.mxu0 %v5693_v63  ;;  %1159 = vmatmul.mubr.f32.gmra.mxu1 %v6352_v50  ;;  %v627_v44 = vsel %vm623_vm10, %v607_v0, %v610_v13  ;;  %v636_v3 = vsel %vm626_vm11, %v622_v37, 1326507024  ;;  %v478_v43 = vand.u32 3, %v474_v27  ;;  %v8865_v13 = vld [vmem:[#allocation6_spill] sm:$0xff]  ;;  %v8867_v27 = vld [vmem:[#allocation7_spill] sm:$0xff] }
  0x9f   : > { %v4624_v47 = vmin.u32 %v554_v54, %v6370_v29  ;;  %v635_v51 = vsel %vm623_vm10, %v613_v28, %v616_v15  ;;  %1215 = vmatpush1.msra.mxu0 %v8860_v33  ;;  %1386 = vmatpush1.msra.mxu1 %v8862_v25  ;;  %v629_v41 = vsel %vm625_vm12, %v613_v28, %v628_v23  ;;  %v8866_v28 = vld [vmem:[#allocation13_spill] sm:$0xff]  ;;  %vm477_vm1 = vweird.f32 %v5995_v52  ;;  %v8875_v50 = vld [vmem:[#allocation16_spill] sm:$0xff] }
  0xa0   : > { %v6409_v7 = vand.u32 4294901760, %v885_v46  ;;  %v633_v24 = vsel %vm625_vm12, %v616_v15, %v632_v8  ;;  %1218 = vmatprep.subr.mxu0 %v8863_v1  ;;  %1388 = vmatprep.subr.mxu1 %v8864_v36  ;;  %v637_v0 = vsel %vm625_vm12, %v619_v35, %v636_v3  ;;  %v630_v35 = vsel %vm624_vm13, %v627_v44, %v629_v41  ;;  %v8868_v8 = vld [vmem:[#allocation8_spill] sm:$0xff]  ;;  %v8871_v44 = vld [vmem:[#allocation14_spill] sm:$0xff] }
  0xa1   : > { %v556_v59 = vclz %v4624_v47  ;;  %v634_v53 = vsel %vm624_vm13, %v631_v45, %v633_v24  ;;  %1221 = vmatpush1.msra.mxu0 %v8865_v13  ;;  %1390 = vmatpush1.msra.mxu1 %v8866_v28  ;;  %v638_v15 = vsel %vm624_vm13, %v635_v51, %v637_v0  ;;  %v8869_v47 = vld [vmem:[#allocation10_spill] sm:$0xff]  ;;  %vm480_vm14 = vcmp.eq.s32.totalorder %v478_v43, 0 }
  0xa2   : > { %8861 = vst [vmem:[#allocation4_spill] sm:$0xff] %v6409_v7  ;;  %v6429_v37 = vmul.u32.u64.low %v6390_v48, %v634_v53  ;;  %v6430_v54 = vmul.u32.u64.high %v6390_v48, %v634_v53, %v6429_v37  ;;  %1224 = vmatprep.subr.mxu0 %v8867_v27  ;;  %887 = vmatmul.mubr.f32.gmra.mxu0 %v6409_v7  ;;  %v6438_v46 = vmul.u32.u64.low %v6390_v48, %v638_v15  ;;  %v6439_v45 = vmul.u32.u64.high %v6390_v48, %v638_v15, %v6438_v46  ;;  %v8872_v0 = vld [vmem:[#allocation18_spill] sm:$0xff] }
  0xa3   : > { %v4625_v23 = vadd.s32 4294967294, %v556_v59  ;;  %1227 = vmatpush1.msra.mxu0 %v8868_v8  ;;  %892 = vmatprep.mubr.f32.mxu0 %v8854_v49  ;;  %v544_v51 = vadd.s32 %v6278_v40, %v6267_v32  ;;  %vm483_vm0 = vcmp.eq.s32.totalorder %v478_v43, 2  ;;  %v646_v3 = vmul.u32 %v6390_v48, %v630_v35  ;;  %v8873_v46 = vld [vmem:[#allocation15_spill] sm:$0xff]  ;;  %v8876_v48 = vld [vmem:[#allocation20_spill] sm:$0xff]  ;;  %v8878_v28 = vld [vmem:[#allocation22_spill] sm:$0xff] }
  0xa4   : > { %1230 = vmatprep.subr.mxu0 %v8869_v47  ;;  %1164 = vmatprep.mubr.f32.mxu1 %v8854_v49  ;;  %v649_v59 = vadd.s32 1, %v6430_v54  ;;  %vm479_vm2 = vcmp.lt.s32.totalorder %v478_v43, 2  ;;  %vm648_vm3 = vc.u32 %v6439_v45, %v6429_v37  ;;  %vm490_vm4 = vcmp.lt.s32.totalorder %v6129_v34, 0 }
  0xa5   : > { %vm4626_vm15 = vcmp.lt.s32.totalorder %v4625_v23, 0  ;;  %1233 = vmatpush1.msra.mxu0 %v8870_v42  ;;  %1392 = vmatprep.subr.mxu1 %v8871_v44  ;;  %v8881_v42 = vld [vmem:[#allocation25_spill] sm:$0xff]  ;;  %vm580_vm10 = vweird.f32 %v6129_v34 }
  0xa6   : > { %v5494_v24 = vpop.eup %5493  ;;  %v559_v41 = vsel %vm4626_vm15, 0, %v4625_v23  ;;  %1236 = vmatprep.subr.mxu0 %v8872_v0  ;;  %1394 = vmatpush1.msra.mxu1 %v8873_v46  ;;  %v8880_v0 = vld [vmem:[#allocation23_spill] sm:$0xff] }
  0xa7   : > { %v5496_v53 = vpop.eup %5495  ;;  %v484_v15 = vxor.u32 2147483648, %v5494_v24  ;;  %v560_v7 = vsub.s32 32, %v559_v41  ;;  %v561_v32 = vshll.u32 %v6370_v29, %v559_v41  ;;  %v564_v40 = vsub.s32 4294967266, %v559_v41  ;;  %1239 = vmatpush1.msra.mxu0 %v8874_v14  ;;  %1396 = vmatprep.subr.mxu1 %v8875_v50  ;;  %v8879_v14 = vld [vmem:[#allocation21_spill] sm:$0xff] }
  0xa8   : > { %v481_v23 = vxor.u32 2147483648, %v5496_v53  ;;  %1242 = vmatprep.subr.mxu0 %v8876_v48  ;;  %1398 = vmatpush1.msra.mxu1 %v8877_v58  ;;  %v650_v41 = vsel %vm648_vm3, %v649_v59, %v6430_v54  ;;  %v8883_v54 = vld [vmem:[#allocation28_spill] sm:$0xff]  ;;  %v8885_v59 = vld [vmem:[#allocation26_spill] sm:$0xff] }
  0xa9   : > { %v485_v35 = vsel %vm483_vm0, %v484_v15, %v5496_v53  ;;  %v562_v46 = vshrl.u32 %v544_v51, %v560_v7  ;;  %v565_v29 = vadd.s32 127, %v564_v40  ;;  %1245 = vmatpush1.msra.mxu0 %v8878_v28  ;;  %1400 = vmatprep.subr.mxu1 %v8879_v14  ;;  %v651_v50 = vadd.s32 %v650_v41, %v646_v3  ;;  %v8882_v51 = vld [vmem:[#allocation24_spill] sm:$0xff]  ;;  %v8886_v53 = vld [vmem:[#allocation29_spill] sm:$0xff]  ;;  %v8887_v15 = vld [vmem:[#allocation27_spill] sm:$0xff] }
  0xaa   : > { %v482_v44 = vsel %vm480_vm14, %v5494_v24, %v481_v23  ;;  %1248 = vmatprep.subr.mxu0 %v8880_v0  ;;  %1402 = vmatpush1.msra.mxu1 %v8881_v42  ;;  %v8890_v40 = vld [vmem:[#allocation34_spill] sm:$0xff]  ;;  %v8891_v23 = vld [vmem:[#allocation35_spill] sm:$0xff] }
  0xab   : > { %v486_v36 = vsel %vm479_vm2, %v482_v44, %v485_v35  ;;  %v563_v25 = vor.u32 %v562_v46, %v561_v32  ;;  %v566_v48 = vshll.u32 %v565_v29, 23  ;;  %1251 = vmatpush1.msra.mxu0 %v8882_v51  ;;  %1404 = vmatprep.subr.mxu1 %v8883_v54  ;;  %v652_v43 = vadd.s32 536870912, %v651_v50  ;;  %v8888_v46 = vld [vmem:[#allocation30_spill] sm:$0xff]  ;;  %v8893_v29 = vld [vmem:[#allocation36_spill] sm:$0xff]  ;;  %v8894_v41 = vld [vmem:[#allocation31_spill] sm:$0xff] }
  0xac   : > { %v487_v7 = vsel %vm477_vm1, nan, %v486_v36  ;;  %1254 = vmatprep.subr.mxu0 %v8885_v59  ;;  %1406 = vmatpush1.msra.mxu1 %v8886_v53  ;;  %v574_v54 = vsub.s32 4, %v6347_v31  ;;  %vm5520_vm1 = vmmov 0  }
  0xad   : > { %v6472_v24 = vand.u32 4294901760, %v487_v7  ;;  %v567_v3 = vor.u32 4788187, %v566_v48  ;;  %v570_v44 = vcvt.s32.f32 %v563_v25  ;;  %1257 = vmatpush1.msra.mxu0 %v8887_v15  ;;  %1408 = vmatprep.subr.mxu1 %v8888_v46  ;;  %v6478_v32 = vshrl.u32 %v652_v43, 30  ;;  %v8895_v43 = vld [vmem:[#allocation38_spill] sm:$0xff] }
  0xae   : > { %1260 = vmatprep.subr.mxu0 %v8890_v40  ;;  %1410 = vmatpush1.msra.mxu1 %v8894_v41  ;;  %v8897_v46 = vand.u32 2147483647, %v6129_v34  ;;  %v8901_v41 = vld [vmem:[#allocation33_spill] sm:$0xff]  ;;  %v8907_v40 = vld [vmem:[#allocation43_spill] sm:$0xff] }
  0xaf   : > { %8884 = vst [vmem:[#allocation5_spill] sm:$0xff] %v6472_v24  ;;  %v6481_v52 = vsub.f32 %v487_v7, %v6472_v24  ;;  %1166 = vmatmul.mubr.f32.gmra.mxu1 %v6472_v24  ;;  %v568_v36 = vand.u32 2147483647, %v567_v3  ;;  %1263 = vmatpush1.msra.mxu0 %v8891_v23  ;;  %v654_v25 = vshll.u32 %v6478_v32, 30  ;;  %v8896_v3 = vld [vmem:[#allocation32_spill] sm:$0xff]  ;;  %v8905_v23 = vld [vmem:[#allocation42_spill] sm:$0xff] }
  0xb0   : > { %1171 = vmatprep.mubr.f32.mxu1 %v8854_v49  ;;  %1266 = vmatprep.subr.mxu0 %v8893_v29  ;;  %vm6500_vm5 = vcmp.le.f32.partialorder %v8897_v46, 0.7853982  ;;  %v8906_v46 = vld [vmem:[#allocation41_spill] sm:$0xff] }
  0xb1   : > { %8889 = vst [vmem:[#allocation6_spill] sm:$0xff] %v6481_v52  ;;  %v6489_v48 = vand.u32 4294901760, %v6481_v52  ;;  %v571_v35 = vmul.f32 %v570_v44, %v568_v36  ;;  %v655_v7 = vsub.s32 %v651_v50, %v654_v25  ;;  %1269 = vmatpush1.msra.mxu0 %v8895_v43  ;;  %1412 = vmatprep.subr.mxu1 %v8896_v3  ;;  %v8900_v36 = vld [vmem:[#allocation39_spill] sm:$0xff]  ;;  %v8902_v50 = vld [vmem:[#allocation40_spill] sm:$0xff]  ;;  %v8903_v25 = vld [vmem:[#allocation37_spill] sm:$0xff] }
  0xb2   : > { %1272 = vmatprep.subr.mxu0 %v8900_v36  ;;  %1414 = vmatpush1.msra.mxu1 %v8901_v41 }
  0xb3   : > { %8892 = vst [vmem:[#allocation7_spill] sm:$0xff] %v6489_v48  ;;  %v896_v24 = vsub.f32 %v6481_v52, %v6489_v48  ;;  %v572_v44 = vxor.u32 2147483648, %v571_v35  ;;  %v657_v29 = vsub.s32 0, %v655_v7  ;;  %1275 = vmatpush1.msra.mxu0 %v8902_v50  ;;  %1416 = vmatprep.subr.mxu1 %v8903_v25  ;;  %v8908_v50 = vld [vmem:[#allocation2_spill] sm:$0xff] }
  0xb4   : > { %1278 = vmatprep.subr.mxu0 %v8905_v23  ;;  %1418 = vmatpush1.msra.mxu1 %v8906_v46  ;;  %v575_v46 = vsel %vm490_vm4, %v574_v54, %v6347_v31 }
  0xb5   : > { %v6508_v3 = vand.u32 4294901760, %v896_v24  ;;  %v573_v43 = vsel %vm490_vm4, %v572_v44, %v571_v35  ;;  %v4628_v36 = vmin.u32 %v657_v29, %v655_v7  ;;  %1281 = vmatpush1.msra.mxu0 %v8907_v40  ;;  %1694 = vmatprep.subr.mxu1 %v8908_v50  ;;  %v8909_v24 = vld [vmem:[#allocation3_spill] sm:$0xff]  ;;  %v647_v29 = vadd.s32 %v6429_v37, %v6439_v45 }
  0xb6   : > { %v576_v41 = vsel %vm6500_vm5, %v6129_v34, %v573_v43  ;;  %v8910_v35 = vand.u32 4294901760, %v8909_v24  ;;  %v577_v50 = vsel %vm6500_vm5, 0, %v575_v46  ;;  %v677_v34 = vsub.s32 4, %v6478_v32 }
  0xb7   : > { %8904 = vst [vmem:[#allocation8_spill] sm:$0xff] %v6508_v3  ;;  %898 = vmatmul.mubr.f32.gmra.mxu0 %v6508_v3  ;;  %5497 = vcosq.f32 %v576_v41  ;;  %v659_v44 = vclz %v4628_v36  ;;  %v581_v25 = vand.u32 3, %v577_v50 }
  0xb8   : > { %1500 = vmatprep.subr.mxu0 %v8910_v35  ;;  %903 = vmatprep.mubr.f32.mxu0 %v8854_v49  ;;  %5499 = vsinq.f32 %v576_v41 }
  0xb9   : > { %v4629_v43 = vadd.s32 4294967294, %v659_v44  ;;  %vm586_vm7 = vcmp.eq.s32.totalorder %v581_v25, 2  ;;  %vm583_vm8 = vcmp.eq.s32.totalorder %v581_v25, 0  ;;  %vm582_vm9 = vcmp.lt.s32.totalorder %v581_v25, 2 }
  0xbb   : > { %vm4630_vm6 = vcmp.lt.s32.totalorder %v4629_v43, 0 }
  0xbc   : > { %v662_v3 = vsel %vm4630_vm6, 0, %v4629_v43 }
  0xbd   : > { %v663_v40 = vsub.s32 32, %v662_v3  ;;  %v664_v24 = vshll.u32 %v655_v7, %v662_v3  ;;  %v667_v35 = vsub.s32 4294967266, %v662_v3 }
  0xbf   : > { %v665_v23 = vshrl.u32 %v647_v29, %v663_v40  ;;  %v668_v41 = vadd.s32 127, %v667_v35  ;;  %v8911_v40 = vld [vmem:[#allocation44_spill] sm:$0xff] }
  0xc0   : > { %vm593_vm11 = vcmp.lt.s32.totalorder %v8911_v40, 0  ;;  %v8912_v29 = vand.u32 2147483647, %v8911_v40  ;;  %vm683_vm0 = vweird.f32 %v8911_v40 }
  0xc1   : > { %v666_v36 = vor.u32 %v665_v23, %v664_v24  ;;  %v669_v42 = vshll.u32 %v668_v41, 23 }
  0xc2   : > { %vm6535_vm12 = vcmp.le.f32.partialorder %v8912_v29, 0.7853982 }
  0xc3   : > { %v670_v31 = vor.u32 4788187, %v669_v42  ;;  %v673_v54 = vcvt.s32.f32 %v666_v36 }
  0xc4   : > { %v5498_v15 = vpop.eup %5497 }
  0xc5   : > { %v5500_v44 = vpop.eup %5499  ;;  %v587_v37 = vxor.u32 2147483648, %v5498_v15  ;;  %v671_v53 = vand.u32 2147483647, %v670_v31  ;;  %v678_v31 = vsel %vm593_vm11, %v677_v34, %v6478_v32  ;;  %v8945_v34 = vld [vmem:[#allocation13_spill] sm:$0xff] }
  0xc6   : > { %v584_v45 = vxor.u32 2147483648, %v5500_v44 }
  0xc7   : > { %v588_v46 = vsel %vm586_vm7, %v587_v37, %v5500_v44  ;;  %v674_v3 = vmul.f32 %v673_v54, %v671_v53  ;;  %v680_v44 = vsel %vm6535_vm12, 0, %v678_v31  ;;  %v8946_v31 = vld [vmem:[#allocation20_spill] sm:$0xff] }
  0xc8   : > { %v585_v7 = vsel %vm583_vm8, %v5498_v15, %v584_v45  ;;  %v684_v37 = vand.u32 3, %v680_v44  ;;  %v8947_v44 = vand.u32 4294901760, %v8946_v31 }
  0xc9   : > { %v589_v43 = vsel %vm582_vm9, %v585_v7, %v588_v46  ;;  %v675_v50 = vxor.u32 2147483648, %v674_v3 }
  0xca   : > { %v590_v23 = vsel %vm580_vm10, nan, %v589_v43  ;;  %vm689_vm13 = vcmp.eq.s32.totalorder %v684_v37, 2  ;;  %vm686_vm14 = vcmp.eq.s32.totalorder %v684_v37, 0  ;;  %vm685_vm15 = vcmp.lt.s32.totalorder %v684_v37, 2 }
  0xcb   : > { %v6539_v24 = vand.u32 4294901760, %v590_v23  ;;  %v676_v25 = vsel %vm593_vm11, %v675_v50, %v674_v3 }
  0xcc   : > { %v679_v15 = vsel %vm6535_vm12, %v8911_v40, %v676_v25 }
  0xcd   : > { %8915 = vst [vmem:[#allocation10_spill] sm:$0xff] %v6539_v24  ;;  %v6542_v35 = vsub.f32 %v590_v23, %v6539_v24  ;;  %1173 = vmatmul.mubr.f32.gmra.mxu1 %v6539_v24  ;;  %5501 = vcosq.f32 %v679_v15 }
  0xce   : > { %1178 = vmatprep.mubr.f32.mxu1 %v8854_v49  ;;  %5503 = vsinq.f32 %v679_v15 }
  0xcf   : > { %8916 = vst [vmem:[#allocation17_spill] sm:$0xff] %v6542_v35  ;;  %v6551_v41 = vand.u32 4294901760, %v6542_v35 }
  0xd1   : > { %8917 = vst [vmem:[#allocation22_spill] sm:$0xff] %v6551_v41  ;;  %v907_v36 = vsub.f32 %v6542_v35, %v6551_v41 }
  0xd3   : > { %v6556_v54 = vand.u32 4294901760, %v907_v36  ;;  %v762_v36 = vld [vmem:[%s8505_s1 + $0x220] sm:$0xff] }
  0xd5   : > { %8918 = vst [vmem:[#allocation21_spill] sm:$0xff] %v6556_v54  ;;  %909 = vmatmul.mubr.f32.gmra.mxu0 %v6556_v54 }
  0xd6   : > { %914 = vmatprep.mubr.f32.mxu0 %v8854_v49 }
  0xda   : > { %v5502_v45 = vpop.eup %5501 }
  0xdb   : > { %v5504_v53 = vpop.eup %5503  ;;  %v690_v46 = vxor.u32 2147483648, %v5502_v45 }
  0xdc   : > { %v687_v7 = vxor.u32 2147483648, %v5504_v53 }
  0xdd   : > { %v691_v32 = vsel %vm689_vm13, %v690_v46, %v5504_v53  ;;  %v761_v53 = vld [vmem:[%s8505_s1 + $0x218] sm:$0xff]  ;;  %v8948_v46 = vld [vmem:[#allocation14_spill] sm:$0xff] }
  0xde   : > { %v688_v3 = vsel %vm686_vm14, %v5502_v45, %v687_v7  ;;  %v8949_v7 = vand.u32 4294901760, %v8878_v28 }
  0xdf   : > { %v692_v43 = vsel %vm685_vm15, %v688_v3, %v691_v32  ;;  %v8950_v32 = vld [vmem:[#allocation15_spill] sm:$0xff]  ;;  %v8951_v3 = vand.u32 4294901760, %v8880_v0  ;;  %v756_v0 = vld [vmem:[%s8505_s1 + $0x1f0] sm:$0xff] }
  0xe0   : > { %v693_v23 = vsel %vm683_vm0, nan, %v692_v43 }
  0xe1   : > { %v6563_v29 = vand.u32 4294901760, %v693_v23 }
  0xe3   : > { %8919 = vst [vmem:[#allocation23_spill] sm:$0xff] %v6563_v29  ;;  %v6566_v42 = vsub.f32 %v693_v23, %v6563_v29  ;;  %1180 = vmatmul.mubr.f32.gmra.mxu1 %v6563_v29  ;;  %v6688_v23 = vand.u32 4294901760, %v762_v36 }
  0xe4   : > { %1451 = vmatprep.mubr.f32.mxu1 %v8854_v49 }
  0xe5   : > { %8920 = vst [vmem:[#allocation24_spill] sm:$0xff] %v6566_v42  ;;  %v6571_v50 = vand.u32 4294901760, %v6566_v42 }
  0xe7   : > { %8921 = vst [vmem:[#allocation26_spill] sm:$0xff] %v6571_v50  ;;  %v918_v25 = vsub.f32 %v6566_v42, %v6571_v50  ;;  %1455 = vmatmul.mubr.f32.vlgmr.msra.gmra.mxu1 %v6304_v38 }
  0xe8   : > { %1696 = vmatpush1.msra.mxu1 %v5560_v4  ;;  %1460 = vmatprep.mubr.f32.mxu1 %v8854_v49  ;;  %v8923_v4 = vand.u32 4294901760, %v5592_v16  ;;  %v8928_v16 = vand.u32 4294901760, %v5616_v26  ;;  %v8935_v26 = vand.u32 4294901760, %v8868_v8  ;;  %v8943_v8 = vld [vmem:[#allocation19_spill] sm:$0xff] }
  0xe9   : > { %v6578_v40 = vand.u32 4294901760, %v918_v25  ;;  %1698 = vmatprep.subr.mxu1 %v5562_v5  ;;  %v8924_v5 = vand.u32 4294901760, %v5595_v17  ;;  %v8929_v17 = vand.u32 4294901760, %v5623_v30  ;;  %v772_v30 = vld [vmem:[%s8505_s1 + $0x270] sm:$0xff]  ;;  %v757_v25 = vld [vmem:[%s8505_s1 + $0x1f8] sm:$0xff] }
  0xea   : > { %1700 = vmatpush1.msra.mxu1 %v5575_v10  ;;  %v8925_v10 = vand.u32 4294901760, %v5601_v19  ;;  %v8931_v19 = vand.u32 4294901760, %v8860_v33 }
  0xeb   : > { %8922 = vst [vmem:[#allocation2_spill] sm:$0xff] %v6578_v40  ;;  %920 = vmatmul.mubr.f32.gmra.mxu0 %v6578_v40  ;;  %1702 = vmatprep.subr.mxu1 %v5577_v11  ;;  %v8926_v11 = vand.u32 4294901760, %v5604_v20  ;;  %v8932_v20 = vand.u32 4294901760, %v8863_v1  ;;  %v766_v1 = vld [vmem:[%s8505_s1 + $0x240] sm:$0xff] }
  0xec   : > { %1314 = vmatprep.mubr.f32.mxu0 %v8854_v49  ;;  %1704 = vmatpush1.msra.mxu1 %v5579_v12  ;;  %v8927_v12 = vand.u32 4294901760, %v5607_v21  ;;  %v8933_v21 = vand.u32 4294901760, %v8865_v13  ;;  %v8942_v13 = vld [vmem:[#allocation12_spill] sm:$0xff]  ;;  %v6674_v45 = vand.u32 4294901760, %v766_v1 }
  0xed   : > { %1464 = vmatmul.mubr.f32.gmra.mxu1 %v6377_v39  ;;  %1706 = vmatprep.subr.mxu1 %v5597_v18  ;;  %v8930_v18 = vand.u32 4294901760, %v5693_v63  ;;  %v767_v63 = vld [vmem:[%s8505_s1 + $0x248] sm:$0xff] }
  0xee   : > { %1708 = vmatpush1.msra.mxu1 %v5609_v22  ;;  %1469 = vmatprep.mubr.f32.mxu1 %v8854_v49  ;;  %v8934_v22 = vand.u32 4294901760, %v8867_v27  ;;  %v6663_v15 = vand.u32 4294901760, %v767_v63 }
  0xef   : > { %1317 = vmatmul.mubr.f32.vlgmr.msra.gmra.mxu0 %v6293_v9  ;;  %1710 = vmatprep.subr.mxu1 %v5676_v55  ;;  %v8936_v55 = vand.u32 4294901760, %v8869_v47  ;;  %v8944_v47 = vand.u32 4294901760, %v8943_v8  ;;  %v747_v8 = vld [vmem:[%s8505_s1 + $0x1a8] sm:$0xff] }
  0xf0   : > { %1504 = vmatpush1.msra.mxu0 %v8923_v4  ;;  %1322 = vmatprep.mubr.f32.mxu0 %v8854_v49  ;;  %v8952_v4 = vld [vmem:[#allocation16_spill] sm:$0xff]  ;;  %v6697_v28 = vsub.f32 %v767_v63, %v6663_v15 }
  0xf1   : > { %1508 = vmatprep.subr.mxu0 %v8924_v5  ;;  %1712 = vmatpush1.msra.mxu1 %v5678_v56  ;;  %v771_v56 = vld [vmem:[%s8505_s1 + $0x268] sm:$0xff]  ;;  %v8953_v5 = vand.u32 4294901760, %v8882_v51  ;;  %v8964_v63 = vld [vmem:[#allocation36_spill] sm:$0xff] }
  0xf2   : > { %1512 = vmatpush1.msra.mxu0 %v8925_v10  ;;  %1473 = vmatmul.mubr.f32.gmra.mxu1 %v6489_v48  ;;  %v6658_v27 = vand.u32 4294901760, %v771_v56  ;;  %v6699_v10 = vand.u32 4294901760, %v761_v53  ;;  %v8955_v51 = vld [vmem:[#allocation27_spill] sm:$0xff] }
  0xf3   : > { %1325 = vmatmul.mubr.f32.gmra.mxu0 %v6366_v6  ;;  %1516 = vmatprep.subr.mxu0 %v8926_v11  ;;  %v8954_v11 = vand.u32 4294901760, %v8885_v59  ;;  %v8958_v59 = vld [vmem:[#allocation34_spill] sm:$0xff]  ;;  %v9008_v6 = vld [vmem:[#allocation5_spill] sm:$0xff] }
  0xf4   : > { %1520 = vmatpush1.msra.mxu0 %v8927_v12  ;;  %1330 = vmatprep.mubr.f32.mxu0 %v8854_v49  ;;  %v6686_v43 = vsub.f32 %v771_v56, %v6658_v27 }
  0xf5   : > { %1524 = vmatprep.subr.mxu0 %v8928_v16  ;;  %1714 = vmatprep.subr.mxu1 %v5680_v57  ;;  %v8937_v57 = vld [vmem:[#allocation11_spill] sm:$0xff]  ;;  %v6709_v16 = vsub.f32 %v766_v1, %v6674_v45 }
  0xf6   : > { %1528 = vmatpush1.msra.mxu0 %v8929_v17  ;;  %1716 = vmatpush1.msra.mxu1 %v5685_v60  ;;  %v8938_v60 = vand.u32 4294901760, %v8937_v57  ;;  %v8956_v17 = vand.u32 4294901760, %v8955_v51  ;;  %v8653_v57 = vand.u32 4294901760, %v6697_v28  ;;  %v8975_v51 = vld [vmem:[#allocation40_spill] sm:$0xff] }
  0xf7   : > { %1333 = vmatmul.mubr.f32.gmra.mxu0 %v6481_v52  ;;  %1532 = vmatprep.subr.mxu0 %v8930_v18  ;;  %v6714_v18 = vand.u32 4294901760, %v757_v25  ;;  %v8651_v1 = vand.u32 4294901760, %v6709_v16 }
  0xf8   : > { %1536 = vmatpush1.msra.mxu0 %v8931_v19  ;;  %1338 = vmatprep.mubr.f32.mxu0 %v8854_v49  ;;  %v752_v19 = vld [vmem:[%s8505_s1 + $0x1d0] sm:$0xff] }
  0xf9   : > { %1540 = vmatprep.subr.mxu0 %v8932_v20  ;;  %1718 = vmatprep.subr.mxu1 %v5687_v61  ;;  %v8939_v61 = vld [vmem:[#allocation9_spill] sm:$0xff]  ;;  %v8959_v20 = vand.u32 4294901760, %v8958_v59  ;;  %v6754_v31 = vsub.f32 %v757_v25, %v6714_v18 }
  0xfa   : > { %1544 = vmatpush1.msra.mxu0 %v8933_v21  ;;  %1478 = vmatprep.mubr.f32.mxu1 %v8854_v49  ;;  %v8654_v21 = vand.u32 4294901760, %v6686_v43 }
  0xfb   : > { %1341 = vmatmul.mubr.f32.gmra.mxu0 %v6542_v35  ;;  %1548 = vmatprep.subr.mxu0 %v8934_v22  ;;  %v6724_v22 = vsub.f32 %v762_v36, %v6688_v23 }
  0xfc   : > { %1552 = vmatpush1.msra.mxu0 %v8935_v26  ;;  %1720 = vmatpush1.msra.mxu1 %v5689_v62  ;;  %v6645_v62 = vand.u32 4294901760, %v772_v30  ;;  %v751_v26 = vld [vmem:[%s8505_s1 + $0x1c8] sm:$0xff] }
  0xfd   : > { %1482 = vmatmul.mubr.f32.gmra.mxu1 %v6551_v41  ;;  %1556 = vmatprep.subr.mxu0 %v8936_v55  ;;  %v8961_v55 = vld [vmem:[#allocation35_spill] sm:$0xff] }
  0xfe   : > { %1722 = vmatprep.subr.mxu1 %v5701_v2  ;;  %1346 = vmatprep.mubr.f32.mxu0 %v8854_v49  ;;  %v8940_v2 = vld [vmem:[#allocation18_spill] sm:$0xff]  ;;  %v6672_v37 = vsub.f32 %v772_v30, %v6645_v62  ;;  %v8960_v30 = vld [vmem:[#allocation28_spill] sm:$0xff]  ;;  %v8962_v56 = vand.u32 4294901760, %v8961_v55 }
  0xff   : > { %1560 = vmatpush1.msra.mxu0 %v8938_v60  ;;  %1724 = vmatpush1.msra.mxu1 %v8939_v61  ;;  %v8941_v33 = vand.u32 4294901760, %v8940_v2  ;;  %v6736_v60 = vsub.f32 %v761_v53, %v6699_v10  ;;  %v8963_v61 = vld [vmem:[#allocation29_spill] sm:$0xff]  ;;  %v8965_v2 = vand.u32 4294901760, %v8964_v63  ;;  %v746_v53 = vld [vmem:[%s8505_s1 + $0x1a0] sm:$0xff]  ;;  %v1998_v63 = vsub.f32 %v6709_v16, %v8651_v1 }
 0x100   : > { %1349 = vmatmul.mubr.f32.gmra.mxu0 %v6566_v42  ;;  %1726 = vmatprep.subr.mxu1 %v8942_v13  ;;  %v8655_v12 = vand.u32 4294901760, %v6672_v37  ;;  %v6745_v13 = vand.u32 4294901760, %v752_v19  ;;  %v8979_v55 = vld [vmem:[#allocation42_spill] sm:$0xff] }
 0x101   : > { %1564 = vmatprep.subr.mxu0 %v8941_v33  ;;  %1487 = vmatprep.mubr.f32.mxu1 %v8854_v49  ;;  %v8652_v59 = vand.u32 4294901760, %v6736_v60 }
 0x102   : > { %1568 = vmatpush1.msra.mxu0 %v8944_v47  ;;  %1728 = vmatpush1.msra.mxu1 %v8945_v34  ;;  %v1980_v33 = vsub.f32 %v6672_v37, %v8655_v12  ;;  %8966 = vst [vmem:[#allocation3_spill] sm:$0xff] %v6745_v13  ;;  %v8967_v47 = vld [vmem:[#allocation30_spill] sm:$0xff] }
 0x103   : > { %1491 = vmatmul.mubr.f32.gmra.mxu1 %v6571_v50  ;;  %1572 = vmatprep.subr.mxu0 %v8947_v44  ;;  %v8968_v34 = vld [vmem:[#allocation38_spill] sm:$0xff]  ;;  %v6756_v44 = vand.u32 4294901760, %v751_v26 }
 0x104   : > { %1730 = vmatprep.subr.mxu1 %v8948_v46  ;;  %1576 = vmatpush1.msra.mxu0 %v8949_v7  ;;  %v8969_v36 = vand.u32 4294901760, %v8968_v34  ;;  %v8971_v46 = vld [vmem:[#allocation31_spill] sm:$0xff]  ;;  %v8982_v34 = vld [vmem:[#allocation37_spill] sm:$0xff] }
 0x105   : > { %1732 = vmatpush1.msra.mxu1 %v8950_v32  ;;  %1580 = vmatprep.subr.mxu0 %v8951_v3  ;;  %8970 = vst [vmem:[#allocation44_spill] sm:$0xff] %v6756_v44  ;;  %v8972_v7 = vld [vmem:[#allocation39_spill] sm:$0xff]  ;;  %v1986_v3 = vsub.f32 %v6686_v43, %v8654_v21 }
 0x106   : > { %1734 = vmatprep.subr.mxu1 %v8952_v4  ;;  %1584 = vmatpush1.msra.mxu0 %v8953_v5  ;;  %v8973_v32 = vand.u32 4294901760, %v8972_v7  ;;  %v8650_v4 = vand.u32 4294901760, %v6724_v22  ;;  %v742_v5 = vld [vmem:[%s8505_s1 + $0x180] sm:$0xff]  ;;  %v8656_v7 = vand.u32 4294901760, %v6754_v31 }
 0x107   : > { %1736 = vmatpush1.msra.mxu1 %v8877_v58  ;;  %1588 = vmatprep.subr.mxu0 %v8954_v11  ;;  %v8957_v58 = vld [vmem:[#allocation25_spill] sm:$0xff]  ;;  %v8974_v11 = vld [vmem:[#allocation32_spill] sm:$0xff] }
 0x108   : > { %1738 = vmatprep.subr.mxu1 %v8879_v14  ;;  %1592 = vmatpush1.msra.mxu0 %v8956_v17  ;;  %v6726_v14 = vand.u32 4294901760, %v756_v0  ;;  %v8976_v17 = vand.u32 4294901760, %v8975_v51  ;;  %v1987_v51 = vand.u32 4294901760, %v1986_v3  ;;  %v2010_v3 = vsub.f32 %v6736_v60, %v8652_v59 }
 0x109   : > { %1740 = vmatpush1.msra.mxu1 %v8957_v58  ;;  %1596 = vmatprep.subr.mxu0 %v8959_v20  ;;  %v1992_v58 = vsub.f32 %v6697_v28, %v8653_v57  ;;  %v6781_v20 = vand.u32 4294901760, %v747_v8 }
 0x10a   : > { %1742 = vmatprep.subr.mxu1 %v8960_v30  ;;  %1600 = vmatpush1.msra.mxu0 %v8962_v56  ;;  %v6769_v25 = vsub.f32 %v756_v0, %v6726_v14  ;;  %v741_v0 = vld [vmem:[%s8505_s1 + $0x178] sm:$0xff]  ;;  %v8980_v56 = vand.u32 4294901760, %v8979_v55 }
 0x10b   : > { %1744 = vmatpush1.msra.mxu1 %v8963_v61  ;;  %1604 = vmatprep.subr.mxu0 %v8965_v2  ;;  %8977 = vst [vmem:[#allocation11_spill] sm:$0xff] %v6781_v20  ;;  %v8978_v30 = vld [vmem:[#allocation33_spill] sm:$0xff]  ;;  %v1981_v61 = vand.u32 4294901760, %v1980_v33  ;;  %v6793_v2 = vsub.f32 %v752_v19, %v6745_v13  ;;  %v6804_v33 = vand.u32 4294901760, %v742_v5  ;;  %v6815_v55 = vand.u32 4294901760, %v741_v0 }
 0x10c   : > { %1746 = vmatprep.subr.mxu1 %v8967_v47  ;;  %1608 = vmatpush1.msra.mxu0 %v8969_v36  ;;  %v6795_v47 = vand.u32 4294901760, %v746_v53  ;;  %v8983_v36 = vld [vmem:[#allocation43_spill] sm:$0xff]  ;;  %v8987_v19 = vld [vmem:[#allocation41_spill] sm:$0xff] }
 0x10d   : > { %1748 = vmatpush1.msra.mxu1 %v8971_v46  ;;  %1612 = vmatprep.subr.mxu0 %v8973_v32  ;;  %v8984_v46 = vand.u32 4294901760, %v8983_v36  ;;  %v6802_v32 = vsub.f32 %v751_v26, %v6756_v44  ;;  %8986 = vst [vmem:[#allocation12_spill] sm:$0xff] %v6804_v33  ;;  %8988 = vst [vmem:[#allocation19_spill] sm:$0xff] %v6815_v55  ;;  %v736_v26 = vld [vmem:[%s8505_s1 + $0x150] sm:$0xff]  ;;  %v6826_v36 = vsub.f32 %v747_v8, %v6781_v20  ;;  %v731_v8 = vld [vmem:[%s8505_s1 + $0x128] sm:$0xff] }
 0x10e   : > { %1750 = vmatprep.subr.mxu1 %v8974_v11  ;;  %1616 = vmatpush1.msra.mxu0 %v8976_v17  ;;  %8981 = vst [vmem:[#allocation9_spill] sm:$0xff] %v6795_v47  ;;  %v737_v11 = vld [vmem:[%s8505_s1 + $0x158] sm:$0xff]  ;;  %v2004_v17 = vsub.f32 %v6724_v22, %v8650_v4  ;;  %v6834_v1 = vsub.f32 %v746_v53, %v6795_v47  ;;  %v6850_v53 = vand.u32 4294901760, %v736_v26 }
 0x10f   : > { %1752 = vmatpush1.msra.mxu1 %v8978_v30  ;;  %1620 = vmatprep.subr.mxu0 %v8980_v56  ;;  %8985 = vst [vmem:[#allocation18_spill] sm:$0xff] %v6802_v32  ;;  %v8657_v30 = vand.u32 4294901760, %v6769_v25  ;;  %v8989_v56 = vld [vmem:[#allocation45_spill] sm:$0xff]  ;;  %8990 = vst [vmem:[#allocation13_spill] sm:$0xff] %v6826_v36  ;;  %v6848_v59 = vsub.f32 %v742_v5, %v6804_v33  ;;  %v6857_v12 = vsub.f32 %v741_v0, %v6815_v55 }
 0x110   : > { %1754 = vmatprep.subr.mxu1 %v8982_v34  ;;  %1624 = vmatpush1.msra.mxu0 %v8984_v46  ;;  %v1993_v34 = vand.u32 4294901760, %v1992_v58  ;;  %v732_v46 = vld [vmem:[%s8505_s1 + $0x130] sm:$0xff]  ;;  %8991 = vst [vmem:[#allocation20_spill] sm:$0xff] %v6834_v1  ;;  %v6836_v58 = vand.u32 4294901760, %v737_v11  ;;  %v2005_v57 = vand.u32 4294901760, %v2004_v17  ;;  %v2011_v5 = vand.u32 4294901760, %v2010_v3 }
 0x111   : > { %1657 = vmatprep.mubr.f32.mxu0 %v8854_v49  ;;  %1756 = vmatpush1.msra.mxu1 %v8987_v19  ;;  %v1999_v19 = vand.u32 4294901760, %v1998_v63  ;;  %8993 = vst [vmem:[#allocation15_spill] sm:$0xff] %v6848_v59  ;;  %v2022_v21 = vsub.f32 %v6769_v25, %v8657_v30  ;;  %8994 = vst [vmem:[#allocation16_spill] sm:$0xff] %v6857_v12  ;;  %v6859_v4 = vand.u32 4294901760, %v732_v46  ;;  %v6863_v63 = vand.u32 4294901760, %v731_v8  ;;  %v8998_v3 = vld [vmem:[#allocation49_spill] sm:$0xff] }
 0x112   : > { %1659 = vmatmul.mubr.f32.vlgmr.msra.gmra.mxu0 %v8989_v56  ;;  %1789 = vmatprep.mubr.f32.mxu1 %v8854_v49  ;;  %8992 = vst [vmem:[#allocation14_spill] sm:$0xff] %v6836_v58  ;;  %v6871_v30 = vsub.f32 %v737_v11, %v6836_v58  ;;  %v6883_v0 = vsub.f32 %v736_v26, %v6850_v53  ;;  %v726_v11 = vld [vmem:[%s8505_s1 + $0x100] sm:$0xff]  ;;  %v9002_v26 = vand.u32 4294901760, %v6826_v36  ;;  %v9006_v39 = vand.u32 4294901760, %v6848_v59 }
 0x113   : > { %1826 = vmatprep.subr.mxu0 %v6645_v62  ;;  %1982 = vmatprep.subr.mxu1 %v1981_v61  ;;  %v2016_v61 = vsub.f32 %v6754_v31, %v8656_v7  ;;  %8995 = vst [vmem:[#allocation27_spill] sm:$0xff] %v6863_v63  ;;  %v2023_v42 = vand.u32 4294901760, %v2022_v21  ;;  %v6914_v48 = vand.u32 4294901760, %v726_v11 }
 0x114   : > { %1791 = vmatmul.mubr.f32.vlgmr.msra.gmra.mxu1 %v8989_v56  ;;  %1828 = vmatpush1.msra.mxu0 %v6658_v27  ;;  %8997 = vst [vmem:[#allocation25_spill] sm:$0xff] %v6871_v30  ;;  %9000 = vst [vmem:[#allocation34_spill] sm:$0xff] %v6883_v0 }
 0x115   : > { %1988 = vmatpush1.msra.mxu1 %v1987_v51  ;;  %1830 = vmatprep.subr.mxu0 %v6663_v15  ;;  %v8996_v51 = vand.u32 4294901760, %v6793_v2  ;;  %v2017_v7 = vand.u32 4294901760, %v2016_v61  ;;  %v6891_v61 = vsub.f32 %v732_v46, %v6859_v4  ;;  %v721_v46 = vld [vmem:[%s8505_s1 + $0xd8] sm:$0xff] }
 0x116   : > { %1994 = vmatprep.subr.mxu1 %v1993_v34  ;;  %1664 = vmatprep.mubr.f32.mxu0 %v8854_v49  ;;  %v727_v34 = vld [vmem:[%s8505_s1 + $0x108] sm:$0xff]  ;;  %v6934_v9 = vand.u32 4294901760, %v721_v46 }
 0x117   : > { %1832 = vmatpush1.msra.mxu0 %v6674_v45  ;;  %2000 = vmatpush1.msra.mxu1 %v1999_v19  ;;  %v2028_v17 = vsub.f32 %v6793_v2, %v8996_v51  ;;  %v8999_v19 = vand.u32 4294901760, %v6802_v32  ;;  %9001 = vst [vmem:[#allocation28_spill] sm:$0xff] %v6891_v61  ;;  %v2040_v51 = vsub.f32 %v6826_v36, %v9002_v26  ;;  %v6903_v21 = vand.u32 4294901760, %v727_v34 }
 0x118   : > { %1666 = vmatmul.mubr.f32.gmra.mxu0 %v8998_v3  ;;  %1834 = vmatprep.subr.mxu0 %v6688_v23 }
 0x119   : > { %v2034_v50 = vsub.f32 %v6802_v32, %v8999_v19  ;;  %2006 = vmatprep.subr.mxu1 %v2005_v57  ;;  %1796 = vmatprep.mubr.f32.mxu1 %v8854_v49  ;;  %v722_v19 = vld [vmem:[%s8505_s1 + $0xe0] sm:$0xff]  ;;  %v6901_v57 = vsub.f32 %v731_v8, %v6863_v63  ;;  %9004 = vst [vmem:[#allocation29_spill] sm:$0xff] %v6903_v21  ;;  %v2029_v41 = vand.u32 4294901760, %v2028_v17  ;;  %v717_v8 = vld [vmem:[%s8505_s1 + $0xb8] sm:$0xff]  ;;  %v2041_v40 = vand.u32 4294901760, %v2040_v51 }
 0x11a   : > { %1836 = vmatpush1.msra.mxu0 %v6699_v10  ;;  %2012 = vmatpush1.msra.mxu1 %v2011_v5  ;;  %v9005_v5 = vand.u32 4294901760, %v6834_v1  ;;  %v2052_v17 = vsub.f32 %v6848_v59, %v9006_v39  ;;  %v6924_v38 = vand.u32 4294901760, %v722_v19  ;;  %v712_v39 = vld [vmem:[%s8505_s1 + $0x90] sm:$0xff]  ;;  %v6955_v51 = vsub.f32 %v726_v11, %v6914_v48  ;;  %v706_v11 = vld [vmem:[%s8505_s1 + $0x60] sm:$0xff] }
 0x11b   : > { %9003 = vst [vmem:[#allocation35_spill] sm:$0xff] %v6901_v57  ;;  %1798 = vmatmul.mubr.f32.gmra.mxu1 %v8998_v3  ;;  %1838 = vmatprep.subr.mxu0 %v6714_v18  ;;  %v2035_v52 = vand.u32 4294901760, %v2034_v50  ;;  %v6945_v3 = vand.u32 4294901760, %v717_v8 }
 0x11c   : > { %v2046_v35 = vsub.f32 %v6834_v1, %v9005_v5  ;;  %2018 = vmatprep.subr.mxu1 %v2017_v7  ;;  %1671 = vmatprep.mubr.f32.mxu0 %v8854_v49  ;;  %v716_v5 = vld [vmem:[%s8505_s1 + $0xb0] sm:$0xff]  ;;  %v9007_v7 = vand.u32 4294901760, %v6857_v12  ;;  %v9011_v1 = vand.u32 4294901760, %v6883_v0  ;;  %v6967_v36 = vsub.f32 %v722_v19, %v6924_v38 }
 0x11d   : > { %1840 = vmatpush1.msra.mxu0 %v6726_v14  ;;  %2024 = vmatpush1.msra.mxu1 %v2023_v42  ;;  %v6943_v42 = vsub.f32 %v727_v34, %v6903_v21  ;;  %v6957_v54 = vand.u32 4294901760, %v716_v5  ;;  %v707_v34 = vld [vmem:[%s8505_s1 + $0x68] sm:$0xff] }
 0x11e   : > { %v2058_v26 = vsub.f32 %v6857_v12, %v9007_v7  ;;  %1673 = vmatmul.mubr.f32.gmra.mxu0 %v9008_v6  ;;  %1842 = vmatprep.subr.mxu0 %v6745_v13  ;;  %v711_v7 = vld [vmem:[%s8505_s1 + $0x88] sm:$0xff]  ;;  %v2047_v50 = vand.u32 4294901760, %v2046_v35  ;;  %v9010_v12 = vand.u32 4294901760, %v6871_v30  ;;  %v2070_v35 = vsub.f32 %v6883_v0, %v9011_v1  ;;  %v702_v0 = vld [vmem:[%s8505_s1 + $0x40] sm:$0xff] }
 0x11f   : > { %9009 = vst [vmem:[#allocation36_spill] sm:$0xff] %v6943_v42  ;;  %2030 = vmatprep.subr.mxu1 %v2029_v41  ;;  %1803 = vmatprep.mubr.f32.mxu1 %v8854_v49  ;;  %v2053_v41 = vand.u32 4294901760, %v2052_v17  ;;  %v6980_v1 = vsub.f32 %v721_v46, %v6934_v9  ;;  %v6982_v19 = vand.u32 4294901760, %v711_v7  ;;  %v6995_v46 = vand.u32 4294901760, %v707_v34 }
 0x120   : > { %v2064_v59 = vsub.f32 %v6871_v30, %v9010_v12  ;;  %1844 = vmatpush1.msra.mxu0 %v6756_v44  ;;  %2036 = vmatpush1.msra.mxu1 %v2035_v52  ;;  %v6969_v12 = vand.u32 4294901760, %v712_v39  ;;  %v2059_v30 = vand.u32 4294901760, %v2058_v26  ;;  %v9012_v52 = vand.u32 4294901760, %v6891_v61 }
 0x121   : > { %1805 = vmatmul.mubr.f32.gmra.mxu1 %v9008_v6  ;;  %1846 = vmatprep.subr.mxu0 %v6781_v20  ;;  %9013 = vst [vmem:[#allocation30_spill] sm:$0xff] %v6980_v1  ;;  %v9014_v6 = vand.u32 4294901760, %v6901_v57  ;;  %9015 = vst [vmem:[#allocation38_spill] sm:$0xff] %v6995_v46  ;;  %v7003_v32 = vsub.f32 %v716_v5, %v6957_v54  ;;  %v2071_v20 = vand.u32 4294901760, %v2070_v35  ;;  %v696_v5 = vld [vmem:[%s8505_s1 + $0x10] sm:$0xff]  ;;  %v9018_v13 = vand.u32 4294901760, %v6967_v36 }
 0x122   : > { %v2076_v17 = vsub.f32 %v6891_v61, %v9012_v52  ;;  %2042 = vmatprep.subr.mxu1 %v2041_v40  ;;  %1678 = vmatprep.mubr.f32.mxu0 %v8854_v49  ;;  %v6993_v52 = vsub.f32 %v717_v8, %v6945_v3  ;;  %v701_v61 = vld [vmem:[%s8505_s1 + $0x38] sm:$0xff]  ;;  %v2065_v40 = vand.u32 4294901760, %v2064_v59  ;;  %v7014_v59 = vsub.f32 %v712_v39, %v6969_v12 }
 0x123   : > { %v2082_v26 = vsub.f32 %v6901_v57, %v9014_v6  ;;  %1848 = vmatpush1.msra.mxu0 %v6795_v47  ;;  %2048 = vmatpush1.msra.mxu1 %v2047_v50  ;;  %v7005_v6 = vand.u32 4294901760, %v706_v11  ;;  %v697_v8 = vld [vmem:[%s8505_s1 + $0x18] sm:$0xff]  ;;  %v7016_v50 = vand.u32 4294901760, %v702_v0  ;;  %v7026_v35 = vand.u32 4294901760, %v701_v61 }
 0x124   : > { %1680 = vmatmul.mubr.f32.gmra.mxu0 %v6539_v24  ;;  %1850 = vmatprep.subr.mxu0 %v6804_v33  ;;  %v2077_v44 = vand.u32 4294901760, %v2076_v17  ;;  %v7024_v33 = vsub.f32 %v711_v7, %v6982_v19  ;;  %v9016_v39 = vand.u32 4294901760, %v6943_v42  ;;  %v7036_v17 = vand.u32 4294901760, %v697_v8 }
 0x125   : > { %2054 = vmatprep.subr.mxu1 %v2053_v41  ;;  %1810 = vmatprep.mubr.f32.mxu1 %v8854_v49  ;;  %v7034_v41 = vsub.f32 %v707_v34, %v6995_v46  ;;  %v9017_v7 = vand.u32 4294901760, %v6955_v51  ;;  %v2083_v34 = vand.u32 4294901760, %v2082_v26  ;;  %v7063_v26 = vsub.f32 %v701_v61, %v7026_v35 }
 0x126   : > { %1852 = vmatpush1.msra.mxu0 %v6815_v55  ;;  %2060 = vmatpush1.msra.mxu1 %v2059_v30  ;;  %v2088_v57 = vsub.f32 %v6943_v42, %v9016_v39  ;;  %v7045_v55 = vsub.f32 %v706_v11, %v7005_v6  ;;  %v7047_v39 = vand.u32 4294901760, %v696_v5  ;;  %v9019_v11 = vand.u32 4294901760, %v6980_v1 }
 0x127   : > { %1812 = vmatmul.mubr.f32.gmra.mxu1 %v6539_v24  ;;  %1854 = vmatprep.subr.mxu0 %v6836_v58  ;;  %v2094_v47 = vsub.f32 %v6955_v51, %v9017_v7  ;;  %v2100_v24 = vsub.f32 %v6967_v36, %v9018_v13  ;;  %v7055_v58 = vsub.f32 %v702_v0, %v7016_v50  ;;  %v9020_v0 = vand.u32 4294901760, %v6993_v52 }
 0x128   : > { %2066 = vmatprep.subr.mxu1 %v2065_v40  ;;  %1685 = vmatprep.mubr.f32.mxu0 %v8854_v49  ;;  %v2106_v7 = vsub.f32 %v6980_v1, %v9019_v11  ;;  %v2089_v13 = vand.u32 4294901760, %v2088_v57  ;;  %v7072_v30 = vsub.f32 %v697_v8, %v7036_v17  ;;  %v9021_v61 = vand.u32 4294901760, %v7003_v32 }
 0x129   : > { %1856 = vmatpush1.msra.mxu0 %v6850_v53  ;;  %2072 = vmatpush1.msra.mxu1 %v2071_v20  ;;  %v2112_v42 = vsub.f32 %v6993_v52, %v9020_v0  ;;  %v2095_v11 = vand.u32 4294901760, %v2094_v47  ;;  %v7080_v57 = vsub.f32 %v696_v5, %v7047_v39  ;;  %v2101_v0 = vand.u32 4294901760, %v2100_v24 }
 0x12a   : > { %1687 = vmatmul.mubr.f32.gmra.mxu0 %v6563_v29  ;;  %1858 = vmatprep.subr.mxu0 %v6859_v4  ;;  %v2118_v40 = vsub.f32 %v7003_v32, %v9021_v61  ;;  %v9022_v8 = vand.u32 4294901760, %v7014_v59  ;;  %v2107_v47 = vand.u32 4294901760, %v2106_v7  ;;  %v9023_v61 = vand.u32 4294901760, %v7024_v33 }
 0x12b   : > { %2078 = vmatprep.subr.mxu1 %v2077_v44  ;;  %1817 = vmatprep.mubr.f32.mxu1 %v8854_v49  ;;  %v2113_v24 = vand.u32 4294901760, %v2112_v42  ;;  %v8724_v1 = vand.u32 4294901760, %v7080_v57 }
 0x12c   : > { %1860 = vmatpush1.msra.mxu0 %v6863_v63  ;;  %2084 = vmatpush1.msra.mxu1 %v2083_v34  ;;  %v2124_v44 = vsub.f32 %v7014_v59, %v9022_v8  ;;  %v2130_v5 = vsub.f32 %v7024_v33, %v9023_v61  ;;  %v9024_v34 = vand.u32 4294901760, %v7034_v41  ;;  %v2119_v7 = vand.u32 4294901760, %v2118_v40 }
 0x12d   : > { %1819 = vmatmul.mubr.f32.gmra.mxu1 %v6563_v29  ;;  %1862 = vmatprep.subr.mxu0 %v6903_v21  ;;  %v9025_v29 = vand.u32 4294901760, %v7045_v55  ;;  %v9027_v40 = vand.u32 4294901760, %v7063_v26 }
 0x12e   : > { %2090 = vmatprep.subr.mxu1 %v2089_v13  ;;  %1864 = vmatpush1.msra.mxu0 %v6914_v48  ;;  %v2136_v8 = vsub.f32 %v7034_v41, %v9024_v34  ;;  %v2125_v42 = vand.u32 4294901760, %v2124_v44  ;;  %v9026_v13 = vand.u32 4294901760, %v7055_v58 }
 0x12f   : > { %2096 = vmatpush1.msra.mxu1 %v2095_v11  ;;  %1866 = vmatprep.subr.mxu0 %v6924_v38  ;;  %v2142_v61 = vsub.f32 %v7045_v55, %v9025_v29  ;;  %v2131_v11 = vand.u32 4294901760, %v2130_v5  ;;  %v2154_v20 = vsub.f32 %v7063_v26, %v9027_v40  ;;  %v9034_v40 = vld [vmem:[#allocation11_spill] sm:$0xff] }
 0x130   : > { %2102 = vmatprep.subr.mxu1 %v2101_v0  ;;  %1868 = vmatpush1.msra.mxu0 %v6934_v9  ;;  %v2148_v34 = vsub.f32 %v7055_v58, %v9026_v13  ;;  %v2137_v29 = vand.u32 4294901760, %v2136_v8  ;;  %v9028_v0 = vand.u32 4294901760, %v7072_v30 }
 0x131   : > { %2108 = vmatpush1.msra.mxu1 %v2107_v47  ;;  %1870 = vmatprep.subr.mxu0 %v6945_v3  ;;  %v2143_v13 = vand.u32 4294901760, %v2142_v61  ;;  %v2166_v47 = vsub.f32 %v7080_v57, %v8724_v1  ;;  %v9030_v61 = vld [vmem:[#allocation3_spill] sm:$0xff]  ;;  %v9044_v1 = vld [vmem:[#allocation49_spill] sm:$0xff] }
 0x132   : > { %2114 = vmatprep.subr.mxu1 %v2113_v24  ;;  %1872 = vmatpush1.msra.mxu0 %v6957_v54  ;;  %v2160_v44 = vsub.f32 %v7072_v30, %v9028_v0  ;;  %v2149_v5 = vand.u32 4294901760, %v2148_v34  ;;  %v2155_v24 = vand.u32 4294901760, %v2154_v20  ;;  %v9029_v20 = vld [vmem:[#allocation48_spill] sm:$0xff]  ;;  %v9036_v0 = vld [vmem:[#allocation9_spill] sm:$0xff] }
 0x133   : > { %2120 = vmatpush1.msra.mxu1 %v2119_v7  ;;  %1874 = vmatprep.subr.mxu0 %v6969_v12  ;;  %v2167_v7 = vand.u32 4294901760, %v2166_v47  ;;  %v9032_v34 = vld [vmem:[#allocation44_spill] sm:$0xff] }
 0x134   : > { %2126 = vmatprep.subr.mxu1 %v2125_v42  ;;  %1876 = vmatpush1.msra.mxu0 %v6982_v19  ;;  %v2161_v8 = vand.u32 4294901760, %v2160_v44  ;;  %v9031_v42 = vld [vmem:[#allocation18_spill] sm:$0xff]  ;;  %v9037_v44 = vld [vmem:[#allocation15_spill] sm:$0xff]  ;;  %v9039_v47 = vld [vmem:[#allocation16_spill] sm:$0xff] }
 0x135   : > { %2132 = vmatpush1.msra.mxu1 %v2131_v11  ;;  %1878 = vmatprep.subr.mxu0 %v6995_v46  ;;  %v9033_v11 = vld [vmem:[#allocation13_spill] sm:$0xff] }
 0x136   : > { %2138 = vmatprep.subr.mxu1 %v2137_v29  ;;  %1880 = vmatpush1.msra.mxu0 %v7005_v6  ;;  %v9035_v29 = vld [vmem:[#allocation20_spill] sm:$0xff] }
 0x137   : > { %2144 = vmatpush1.msra.mxu1 %v2143_v13  ;;  %1882 = vmatprep.subr.mxu0 %v7016_v50  ;;  %v9038_v13 = vld [vmem:[#allocation12_spill] sm:$0xff] }
 0x138   : > { %2150 = vmatprep.subr.mxu1 %v2149_v5  ;;  %1884 = vmatpush1.msra.mxu0 %v7026_v35  ;;  %v9040_v5 = vld [vmem:[#allocation19_spill] sm:$0xff] }
 0x139   : > { %2156 = vmatpush1.msra.mxu1 %v2155_v24  ;;  %1886 = vmatprep.subr.mxu0 %v7036_v17  ;;  %v9041_v24 = vld [vmem:[#allocation25_spill] sm:$0xff] }
 0x13a   : > { %2162 = vmatprep.subr.mxu1 %v2161_v8  ;;  %1888 = vmatpush1.msra.mxu0 %v7047_v39  ;;  %v9042_v8 = vld [vmem:[#allocation14_spill] sm:$0xff] }
 0x13b   : > { %1921 = vmatprep.mubr.f32.mxu0 %v8854_v49  ;;  %2168 = vmatpush1.msra.mxu1 %v2167_v7  ;;  %v9043_v7 = vld [vmem:[#allocation4_spill] sm:$0xff] }
 0x13c   : > { %2201 = vmatprep.mubr.f32.mxu1 %v8854_v49  ;;  %1927 = vmatmul.mubr.f32.vlgmr.msra.gmra.mxu0 %v9029_v20  ;;  %v9045_v20 = vld [vmem:[#allocation34_spill] sm:$0xff] }
 0x13d   : > { %2203 = vmatmul.mubr.f32.vlgmr.msra.gmra.mxu1 %v8989_v56  ;;  %2239 = vmatprep.subr.mxu0 %v6672_v37  ;;  %v9046_v56 = vld [vmem:[#allocation28_spill] sm:$0xff] }
 0x13e   : > { %2407 = vmatprep.subr.mxu1 %v6645_v62  ;;  %2242 = vmatpush1.msra.mxu0 %v6686_v43 }
 0x13f   : > { %2409 = vmatpush1.msra.mxu1 %v6658_v27  ;;  %2245 = vmatprep.subr.mxu0 %v6697_v28 }
 0x140   : > { %2411 = vmatprep.subr.mxu1 %v6663_v15  ;;  %2248 = vmatpush1.msra.mxu0 %v6709_v16 }
 0x141   : > { %2413 = vmatpush1.msra.mxu1 %v6674_v45  ;;  %2251 = vmatprep.subr.mxu0 %v6724_v22 }
 0x142   : > { %2415 = vmatprep.subr.mxu1 %v6688_v23  ;;  %2254 = vmatpush1.msra.mxu0 %v6736_v60 }
 0x143   : > { %2417 = vmatpush1.msra.mxu1 %v6699_v10  ;;  %2257 = vmatprep.subr.mxu0 %v6754_v31 }
 0x144   : > { %2419 = vmatprep.subr.mxu1 %v6714_v18  ;;  %2260 = vmatpush1.msra.mxu0 %v6769_v25 }
 0x145   : > { %2421 = vmatpush1.msra.mxu1 %v6726_v14  ;;  %2263 = vmatprep.subr.mxu0 %v6793_v2 }
 0x146   : > { %2423 = vmatprep.subr.mxu1 %v9030_v61  ;;  %2266 = vmatpush1.msra.mxu0 %v9031_v42 }
 0x147   : > { %2425 = vmatpush1.msra.mxu1 %v9032_v34  ;;  %2269 = vmatprep.subr.mxu0 %v9033_v11 }
 0x148   : > { %2427 = vmatprep.subr.mxu1 %v9034_v40  ;;  %2272 = vmatpush1.msra.mxu0 %v9035_v29 }
 0x149   : > { %2429 = vmatpush1.msra.mxu1 %v9036_v0  ;;  %2275 = vmatprep.subr.mxu0 %v9037_v44 }
 0x14a   : > { %2431 = vmatprep.subr.mxu1 %v9038_v13  ;;  %2278 = vmatpush1.msra.mxu0 %v9039_v47 }
 0x14b   : > { %2433 = vmatpush1.msra.mxu1 %v9040_v5  ;;  %1932 = vmatprep.mubr.f32.mxu0 %v8854_v49  ;;  %v9047_v5 = vld [vmem:[#allocation35_spill] sm:$0xff] }
 0x14c   : > { %2208 = vmatprep.mubr.f32.mxu1 %v8854_v49  ;;  %2281 = vmatprep.subr.mxu0 %v9041_v24 }
 0x14d   : > { %2435 = vmatprep.subr.mxu1 %v9042_v8  ;;  %1938 = vmatmul.mubr.f32.gmra.mxu0 %v9043_v7  ;;  %v9048_v8 = vld [vmem:[#allocation36_spill] sm:$0xff] }
 0x14e   : > { %2210 = vmatmul.mubr.f32.gmra.mxu1 %v9044_v1  ;;  %2284 = vmatpush1.msra.mxu0 %v9045_v20  ;;  %v9049_v7 = vld [vmem:[#allocation8_spill] sm:$0xff]  ;;  %v9050_v1 = vld [vmem:[#allocation5_spill] sm:$0xff] }
 0x14f   : > { %2437 = vmatpush1.msra.mxu1 %v6850_v53  ;;  %2287 = vmatprep.subr.mxu0 %v9046_v56  ;;  %v1153_v56 = vpop.f32.mrf.mxu1 }
 0x150   : > { %2439 = vmatprep.subr.mxu1 %v6859_v4  ;;  %2290 = vmatpush1.msra.mxu0 %v9047_v5 }
 0x151   : > { %2441 = vmatpush1.msra.mxu1 %v6863_v63  ;;  %1943 = vmatprep.mubr.f32.mxu0 %v8854_v49  ;;  %v9051_v63 = vld [vmem:[#allocation30_spill] sm:$0xff] }
 0x152   : > { %2215 = vmatprep.mubr.f32.mxu1 %v8854_v49  ;;  %2293 = vmatprep.subr.mxu0 %v9048_v8 }
 0x153   : > { %2443 = vmatprep.subr.mxu1 %v6903_v21  ;;  %1949 = vmatmul.mubr.f32.gmra.mxu0 %v9049_v7  ;;  %v9053_v7 = vld [vmem:[#allocation21_spill] sm:$0xff] }
 0x154   : > { %2217 = vmatmul.mubr.f32.gmra.mxu1 %v9050_v1  ;;  %2296 = vmatpush1.msra.mxu0 %v6955_v51  ;;  %v9054_v1 = vld [vmem:[#allocation10_spill] sm:$0xff] }
 0x155   : > { %2445 = vmatpush1.msra.mxu1 %v6914_v48  ;;  %2299 = vmatprep.subr.mxu0 %v6967_v36 }
 0x156   : > { %2447 = vmatprep.subr.mxu1 %v6924_v38  ;;  %2302 = vmatpush1.msra.mxu0 %v9051_v63  ;;  %v877_v5 = vpop.f32.mrf.mxu0 }
 0x157   : > { %2449 = vmatpush1.msra.mxu1 %v6934_v9  ;;  %1954 = vmatprep.mubr.f32.mxu0 %v8854_v49  ;;  %v7183_v21 = vadd.f32 %v1153_v56, %v877_v5  ;;  %v9055_v56 = vld [vmem:[#allocation2_spill] sm:$0xff]  ;;  %v9056_v5 = vld [vmem:[#allocation23_spill] sm:$0xff] }
 0x158   : > { %2222 = vmatprep.mubr.f32.mxu1 %v8854_v49  ;;  %2305 = vmatprep.subr.mxu0 %v6993_v52 }
 0x159   : > { %9052 = vst [vmem:[#allocation31_spill] sm:$0xff] %v7183_v21  ;;  %2451 = vmatprep.subr.mxu1 %v6945_v3  ;;  %1960 = vmatmul.mubr.f32.gmra.mxu0 %v9053_v7  ;;  %v7203_v7 = vpop.f32.mrf.mxu0  ;;  %v7205_v21 = vpop.f32.mrf.mxu1 }
 0x15a   : > { %2224 = vmatmul.mubr.f32.gmra.mxu1 %v9054_v1  ;;  %2308 = vmatpush1.msra.mxu0 %v7003_v32  ;;  %9057 = vst [vmem:[#allocation39_spill] sm:$0xff] %v7203_v7  ;;  %9058 = vst [vmem:[#allocation32_spill] sm:$0xff] %v7205_v21  ;;  %v9059_v21 = vld [vmem:[#allocation46_spill] sm:$0xff]  ;;  %v9060_v7 = vand.u32 4294901760, %v6672_v37  ;;  %v9066_v37 = vand.u32 4294901760, %v6724_v22  ;;  %v9074_v22 = vld [vmem:[#allocation7_spill] sm:$0xff] }
 0x15b   : > { %2453 = vmatpush1.msra.mxu1 %v6957_v54  ;;  %2311 = vmatprep.subr.mxu0 %v7014_v59 }
 0x15c   : > { %2455 = vmatprep.subr.mxu1 %v6969_v12  ;;  %2314 = vmatpush1.msra.mxu0 %v7024_v33 }
 0x15d   : > { %2457 = vmatpush1.msra.mxu1 %v6982_v19  ;;  %1965 = vmatprep.mubr.f32.mxu0 %v8854_v49 }
 0x15e   : > { %2229 = vmatprep.mubr.f32.mxu1 %v8854_v49  ;;  %2317 = vmatprep.subr.mxu0 %v7034_v41 }
 0x15f   : > { %2459 = vmatprep.subr.mxu1 %v6995_v46  ;;  %1971 = vmatmul.mubr.f32.gmra.mxu0 %v9055_v56  ;;  %v1160_v46 = vpop.f32.mrf.mxu1 }
 0x160   : > { %2231 = vmatmul.mubr.f32.gmra.mxu1 %v9056_v5  ;;  %2320 = vmatpush1.msra.mxu0 %v7045_v55  ;;  %v9061_v5 = vld [vmem:[#allocation47_spill] sm:$0xff] }
 0x161   : > { %2461 = vmatpush1.msra.mxu1 %v7005_v6  ;;  %2323 = vmatprep.subr.mxu0 %v7055_v58 }
 0x162   : > { %2463 = vmatprep.subr.mxu1 %v7016_v50  ;;  %2326 = vmatpush1.msra.mxu0 %v7063_v26  ;;  %v888_v1 = vpop.f32.mrf.mxu0 }
 0x163   : > { %2465 = vmatpush1.msra.mxu1 %v7026_v35  ;;  %2329 = vmatprep.subr.mxu0 %v7072_v30  ;;  %v7213_v56 = vadd.f32 %v1160_v46, %v888_v1  ;;  %v9062_v1 = vand.u32 4294901760, %v6686_v43  ;;  %v9063_v46 = vand.u32 4294901760, %v6697_v28  ;;  %v9069_v43 = vand.u32 4294901760, %v6754_v31 }
 0x164   : > { %2467 = vmatprep.subr.mxu1 %v7036_v17  ;;  %2332 = vmatpush1.msra.mxu0 %v7080_v57  ;;  %v9072_v28 = vand.u32 4294901760, %v6793_v2 }
 0x165   : > { %2365 = vmatprep.mubr.f32.mxu0 %v8854_v49  ;;  %2469 = vmatpush1.msra.mxu1 %v7047_v39 }
 0x166   : > { %2368 = vmatmul.mubr.f32.vlgmr.msra.gmra.mxu0 %v9059_v21  ;;  %2502 = vmatprep.mubr.f32.mxu1 %v8854_v49  ;;  %v9064_v21 = vand.u32 4294901760, %v6709_v16  ;;  %v7256_v16 = vpop.f32.mrf.mxu1 }
 0x167   : > { %2551 = vmatprep.subr.mxu0 %v9060_v7  ;;  %2745 = vmatprep.subr.mxu1 %v6645_v62  ;;  %v9065_v62 = vld [vmem:[#allocation50_spill] sm:$0xff] }
 0x168   : > { %2506 = vmatmul.mubr.f32.vlgmr.msra.gmra.mxu1 %v9061_v5  ;;  %2555 = vmatpush1.msra.mxu0 %v9062_v1 }
 0x169   : > { %2747 = vmatpush1.msra.mxu1 %v6658_v27  ;;  %2559 = vmatprep.subr.mxu0 %v9063_v46  ;;  %v9067_v27 = vand.u32 4294901760, %v6736_v60  ;;  %v9088_v46 = vld [vmem:[#allocation35_spill] sm:$0xff] }
 0x16a   : > { %2749 = vmatprep.subr.mxu1 %v6663_v15  ;;  %2373 = vmatprep.mubr.f32.mxu0 %v8854_v49  ;;  %v9068_v15 = vld [vmem:[#allocation51_spill] sm:$0xff] }
 0x16b   : > { %2563 = vmatpush1.msra.mxu0 %v9064_v21  ;;  %2751 = vmatpush1.msra.mxu1 %v6674_v45  ;;  %v9070_v45 = vand.u32 4294901760, %v6769_v25  ;;  %v9076_v25 = vand.u32 4294901760, %v9035_v29  ;;  %v9077_v21 = vld [vmem:[#allocation17_spill] sm:$0xff]  ;;  %v9083_v29 = vld [vmem:[#allocation14_spill] sm:$0xff] }
 0x16c   : > { %2376 = vmatmul.mubr.f32.gmra.mxu0 %v9065_v62  ;;  %2567 = vmatprep.subr.mxu0 %v9066_v37  ;;  %v9090_v37 = vld [vmem:[#allocation27_spill] sm:$0xff]  ;;  %v9120_v62 = vld [vmem:[#allocation32_spill] sm:$0xff] }
 0x16d   : > { %2753 = vmatprep.subr.mxu1 %v6688_v23  ;;  %2511 = vmatprep.mubr.f32.mxu1 %v8854_v49  ;;  %v9071_v23 = vld [vmem:[#allocation6_spill] sm:$0xff] }
 0x16e   : > { %2571 = vmatpush1.msra.mxu0 %v9067_v27  ;;  %2755 = vmatpush1.msra.mxu1 %v6699_v10  ;;  %v7254_v10 = vpop.f32.mrf.mxu0  ;;  %v9092_v27 = vand.u32 4294901760, %v9048_v8  ;;  %v9096_v8 = vand.u32 4294901760, %v9051_v63  ;;  %v9099_v63 = vand.u32 4294901760, %v7014_v59  ;;  %v9102_v59 = vld [vmem:[#allocation38_spill] sm:$0xff] }
 0x16f   : > { %2515 = vmatmul.mubr.f32.gmra.mxu1 %v9068_v15  ;;  %2575 = vmatprep.subr.mxu0 %v9069_v43  ;;  %v1167_v31 = vpop.f32.mrf.mxu1 }
 0x170   : > { %2757 = vmatprep.subr.mxu1 %v6714_v18  ;;  %2381 = vmatprep.mubr.f32.mxu0 %v8854_v49  ;;  %v9073_v18 = vand.u32 4294901760, %v9031_v42  ;;  %v9079_v42 = vand.u32 4294901760, %v9039_v47  ;;  %v9086_v47 = vld [vmem:[#allocation28_spill] sm:$0xff] }
 0x171   : > { %2579 = vmatpush1.msra.mxu0 %v9070_v45  ;;  %2759 = vmatpush1.msra.mxu1 %v6726_v14  ;;  %v9075_v14 = vand.u32 4294901760, %v9033_v11  ;;  %v9081_v11 = vld [vmem:[#allocation22_spill] sm:$0xff]  ;;  %v9087_v7 = vand.u32 4294901760, %v9086_v47  ;;  %v9093_v45 = vld [vmem:[#allocation29_spill] sm:$0xff] }
 0x172   : > { %2384 = vmatmul.mubr.f32.gmra.mxu0 %v9071_v23  ;;  %2583 = vmatprep.subr.mxu0 %v9072_v28  ;;  %v9094_v28 = vand.u32 4294901760, %v6955_v51  ;;  %v758_v51 = vld [vmem:[%s8505_s1 + $0x200] sm:$0xff] }
 0x173   : > { %2761 = vmatprep.subr.mxu1 %v9030_v61  ;;  %2520 = vmatprep.mubr.f32.mxu1 %v8854_v49  ;;  %v9078_v61 = vand.u32 4294901760, %v9037_v44  ;;  %v9084_v44 = vand.u32 4294901760, %v9045_v20  ;;  %v9089_v20 = vand.u32 4294901760, %v9088_v46 }
 0x174   : > { %2587 = vmatpush1.msra.mxu0 %v9073_v18  ;;  %2763 = vmatpush1.msra.mxu1 %v9032_v34  ;;  %v9080_v34 = vld [vmem:[#allocation19_spill] sm:$0xff]  ;;  %v9095_v18 = vand.u32 4294901760, %v6967_v36 }
 0x175   : > { %2524 = vmatmul.mubr.f32.gmra.mxu1 %v9074_v22  ;;  %2591 = vmatprep.subr.mxu0 %v9075_v14 }
 0x176   : > { %2765 = vmatprep.subr.mxu1 %v9034_v40  ;;  %2389 = vmatprep.mubr.f32.mxu0 %v8854_v49  ;;  %v9082_v40 = vand.u32 4294901760, %v9041_v24  ;;  %v768_v24 = vld [vmem:[%s8505_s1 + $0x250] sm:$0xff] }
 0x177   : > { %v899_v60 = vpop.f32.mrf.mxu0  ;;  %2595 = vmatpush1.msra.mxu0 %v9076_v25  ;;  %2767 = vmatpush1.msra.mxu1 %v9036_v0  ;;  %v773_v0 = vld [vmem:[%s8505_s1 + $0x278] sm:$0xff]  ;;  %v7308_v43 = vand.u32 4294901760, %v768_v24  ;;  %v7343_v25 = vand.u32 4294901760, %v758_v51 }
 0x178   : > { %v7271_v2 = vadd.f32 %v1167_v31, %v899_v60  ;;  %2392 = vmatmul.mubr.f32.gmra.mxu0 %v9077_v21  ;;  %2599 = vmatprep.subr.mxu0 %v9078_v61  ;;  %v7300_v1 = vand.u32 4294901760, %v773_v0  ;;  %v9103_v61 = vand.u32 4294901760, %v7045_v55  ;;  %v9105_v55 = vand.u32 4294901760, %v7063_v26 }
 0x179   : > { %2769 = vmatprep.subr.mxu1 %v9038_v13  ;;  %2529 = vmatprep.mubr.f32.mxu1 %v8854_v49  ;;  %v9085_v13 = vld [vmem:[#allocation24_spill] sm:$0xff]  ;;  %v7334_v36 = vsub.f32 %v768_v24, %v7308_v43  ;;  %v9107_v26 = vand.u32 4294901760, %v7080_v57  ;;  %v7409_v47 = vpop.f32.mrf.mxu0 }
 0x17a   : > { %2603 = vmatpush1.msra.mxu0 %v9079_v42  ;;  %2771 = vmatpush1.msra.mxu1 %v9080_v34  ;;  %v7320_v14 = vsub.f32 %v773_v0, %v7300_v1  ;;  %v9108_v0 = vld [vmem:[#allocation45_spill] sm:$0xff] }
 0x17b   : > { %2533 = vmatmul.mubr.f32.gmra.mxu1 %v9081_v11  ;;  %2607 = vmatprep.subr.mxu0 %v9082_v40  ;;  %v9115_v11 = vld [vmem:[#allocation23_spill] sm:$0xff] }
 0x17c   : > { %2773 = vmatprep.subr.mxu1 %v9083_v29  ;;  %2397 = vmatprep.mubr.f32.mxu0 %v8854_v49  ;;  %v8737_v31 = vand.u32 4294901760, %v7320_v14 }
 0x17d   : > { %2611 = vmatpush1.msra.mxu0 %v9084_v44  ;;  %2775 = vmatpush1.msra.mxu1 %v6850_v53  ;;  %v9091_v53 = vld [vmem:[#allocation26_spill] sm:$0xff] }
 0x17e   : > { %2400 = vmatmul.mubr.f32.gmra.mxu0 %v9085_v13  ;;  %2615 = vmatprep.subr.mxu0 %v9087_v7  ;;  %v738_v44 = vld [vmem:[%s8505_s1 + $0x160] sm:$0xff] }
 0x17f   : > { %2777 = vmatprep.subr.mxu1 %v6859_v4  ;;  %2538 = vmatprep.mubr.f32.mxu1 %v8854_v49  ;;  %v763_v4 = vld [vmem:[%s8505_s1 + $0x228] sm:$0xff] }
 0x180   : > { %2619 = vmatpush1.msra.mxu0 %v9089_v20  ;;  %2779 = vmatpush1.msra.mxu1 %v9090_v37  ;;  %v7325_v60 = vand.u32 4294901760, %v763_v4  ;;  %v7425_v37 = vand.u32 4294901760, %v738_v44 }
 0x181   : > { %2542 = vmatmul.mubr.f32.gmra.mxu1 %v9091_v53  ;;  %2623 = vmatprep.subr.mxu0 %v9092_v27  ;;  %v733_v27 = vld [vmem:[%s8505_s1 + $0x138] sm:$0xff] }
 0x182   : > { %2781 = vmatprep.subr.mxu1 %v9093_v45  ;;  %2627 = vmatpush1.msra.mxu0 %v9094_v28 }
 0x183   : > { %2783 = vmatpush1.msra.mxu1 %v6914_v48  ;;  %2631 = vmatprep.subr.mxu0 %v9095_v18  ;;  %v9097_v48 = vand.u32 4294901760, %v6993_v52  ;;  %v8736_v52 = vand.u32 4294901760, %v7334_v36 }
 0x184   : > { %2785 = vmatprep.subr.mxu1 %v6924_v38  ;;  %2635 = vmatpush1.msra.mxu0 %v9096_v8  ;;  %v9098_v38 = vand.u32 4294901760, %v7003_v32  ;;  %v7352_v32 = vsub.f32 %v763_v4, %v7325_v60 }
 0x185   : > { %2787 = vmatpush1.msra.mxu1 %v6934_v9  ;;  %2639 = vmatprep.subr.mxu0 %v9097_v48  ;;  %v753_v9 = vld [vmem:[%s8505_s1 + $0x1d8] sm:$0xff] }
 0x186   : > { %2789 = vmatprep.subr.mxu1 %v6945_v3  ;;  %2643 = vmatpush1.msra.mxu0 %v9098_v38  ;;  %v9100_v3 = vand.u32 4294901760, %v7024_v33  ;;  %v7361_v42 = vand.u32 4294901760, %v753_v9  ;;  %v748_v33 = vld [vmem:[%s8505_s1 + $0x1b0] sm:$0xff]  ;;  %v8734_v34 = vand.u32 4294901760, %v7352_v32  ;;  %v9109_v48 = vld [vmem:[#allocation49_spill] sm:$0xff] }
 0x187   : > { %2791 = vmatpush1.msra.mxu1 %v6957_v54  ;;  %2647 = vmatprep.subr.mxu0 %v9099_v63  ;;  %v9101_v54 = vand.u32 4294901760, %v7034_v41  ;;  %v7373_v41 = vsub.f32 %v758_v51, %v7343_v25  ;;  %v7385_v40 = vand.u32 4294901760, %v748_v33  ;;  %v7444_v63 = vand.u32 4294901760, %v733_v27 }
 0x188   : > { %2793 = vmatprep.subr.mxu1 %v6969_v12  ;;  %2651 = vmatpush1.msra.mxu0 %v9100_v3  ;;  %v9104_v12 = vand.u32 4294901760, %v7055_v58  ;;  %v3018_v58 = vsub.f32 %v7334_v36, %v8736_v52 }
 0x189   : > { %2795 = vmatpush1.msra.mxu1 %v6982_v19  ;;  %2655 = vmatprep.subr.mxu0 %v9101_v54  ;;  %v3011_v19 = vsub.f32 %v7320_v14, %v8737_v31  ;;  %v8733_v29 = vand.u32 4294901760, %v7373_v41  ;;  %v7416_v24 = vsub.f32 %v748_v33, %v7385_v40  ;;  %v7452_v54 = vsub.f32 %v738_v44, %v7425_v37 }
 0x18a   : > { %2797 = vmatprep.subr.mxu1 %v9102_v59  ;;  %2659 = vmatpush1.msra.mxu0 %v9103_v61  ;;  %v3019_v7 = vand.u32 4294901760, %v3018_v58  ;;  %v723_v61 = vld [vmem:[%s8505_s1 + $0xe8] sm:$0xff] }
 0x18b   : > { %2799 = vmatpush1.msra.mxu1 %v7005_v6  ;;  %2663 = vmatprep.subr.mxu0 %v9104_v12  ;;  %v9106_v6 = vand.u32 4294901760, %v7072_v30  ;;  %v3012_v30 = vand.u32 4294901760, %v3011_v19  ;;  %v3032_v20 = vsub.f32 %v7373_v41, %v8733_v29  ;;  %v8731_v8 = vand.u32 4294901760, %v7416_v24 }
 0x18c   : > { %2801 = vmatprep.subr.mxu1 %v7016_v50  ;;  %2667 = vmatpush1.msra.mxu0 %v9105_v55  ;;  %v743_v50 = vld [vmem:[%s8505_s1 + $0x188] sm:$0xff]  ;;  %v7469_v55 = vsub.f32 %v733_v27, %v7444_v63  ;;  %v8729_v58 = vand.u32 4294901760, %v7452_v54 }
 0x18d   : > { %2803 = vmatpush1.msra.mxu1 %v7026_v35  ;;  %2671 = vmatprep.subr.mxu0 %v9106_v6  ;;  %v7394_v35 = vsub.f32 %v753_v9, %v7361_v42  ;;  %v7404_v57 = vand.u32 4294901760, %v743_v50  ;;  %v728_v9 = vld [vmem:[%s8505_s1 + $0x110] sm:$0xff]  ;;  %v3033_v3 = vand.u32 4294901760, %v3032_v20  ;;  %v3046_v33 = vsub.f32 %v7416_v24, %v8731_v8  ;;  %v718_v6 = vld [vmem:[%s8505_s1 + $0xc0] sm:$0xff] }
 0x18e   : > { %2805 = vmatprep.subr.mxu1 %v7036_v17  ;;  %2675 = vmatpush1.msra.mxu0 %v9107_v26  ;;  %v3025_v17 = vsub.f32 %v7352_v32, %v8734_v34  ;;  %v7464_v12 = vand.u32 4294901760, %v728_v9  ;;  %v9110_v26 = vld [vmem:[#allocation5_spill] sm:$0xff]  ;;  %v7491_v20 = vand.u32 4294901760, %v718_v6  ;;  %v8735_v27 = vand.u32 4294901760, %v7469_v55  ;;  %v698_v8 = vld [vmem:[%s8505_s1 + $0x20] sm:$0xff] }
 0x18f   : > { %2708 = vmatprep.mubr.f32.mxu0 %v8854_v49  ;;  %2807 = vmatpush1.msra.mxu1 %v7047_v39  ;;  %v7411_v39 = vpop.f32.mrf.mxu1  ;;  %v8732_v46 = vand.u32 4294901760, %v7394_v35  ;;  %v7433_v45 = vsub.f32 %v743_v50, %v7404_v57  ;;  %v7476_v50 = vand.u32 4294901760, %v723_v61  ;;  %v3047_v44 = vand.u32 4294901760, %v3046_v33  ;;  %v703_v33 = vld [vmem:[%s8505_s1 + $0x48] sm:$0xff] }
 0x190   : > { %2710 = vmatmul.mubr.f32.vlgmr.msra.gmra.mxu0 %v9108_v0  ;;  %2840 = vmatprep.mubr.f32.mxu1 %v8854_v49  ;;  %v3026_v4 = vand.u32 4294901760, %v3025_v17  ;;  %v713_v17 = vld [vmem:[%s8505_s1 + $0x98] sm:$0xff]  ;;  %v7536_v29 = vand.u32 4294901760, %v703_v33 }
 0x191   : > { %4885 = vmatprep.subr.mxu0 %v8854_v49  ;;  %4932 = vmatprep.subr.mxu1 %v8854_v49  ;;  %v1174_v18 = vpop.f32.mrf.mxu1  ;;  %v3039_v38 = vsub.f32 %v7394_v35, %v8732_v46  ;;  %v8730_v59 = vand.u32 4294901760, %v7433_v45 }
 0x192   : > { %2842 = vmatmul.mubr.f32.vlgmr.msra.gmra.mxu1 %v9108_v0  ;;  %4886 = vmatpush3.msra.mxu0 %v7300_v1 }
 0x193   : > { %4933 = vmatpush3.msra.mxu1 %v3012_v30  ;;  %4887 = vmatprep.subr.mxu0 %v8854_v49  ;;  %v3040_v19 = vand.u32 4294901760, %v3039_v38  ;;  %v3053_v30 = vsub.f32 %v7433_v45, %v8730_v59  ;;  %v7506_v38 = vand.u32 4294901760, %v713_v17  ;;  %v9111_v59 = vld [vmem:[#allocation10_spill] sm:$0xff] }
 0x194   : > { %4934 = vmatprep.subr.mxu1 %v8854_v49  ;;  %2715 = vmatprep.mubr.f32.mxu0 %v8854_v49 }
 0x195   : > { %v910_v28 = vpop.f32.mrf.mxu0  ;;  %4888 = vmatpush3.msra.mxu0 %v7308_v43  ;;  %4935 = vmatpush3.msra.mxu1 %v3019_v7  ;;  %v7489_v7 = vsub.f32 %v728_v9, %v7464_v12  ;;  %v7508_v9 = vpop.f32.mrf.mxu1  ;;  %v7534_v46 = vsub.f32 %v713_v17, %v7506_v38  ;;  %v7548_v17 = vand.u32 4294901760, %v698_v8 }
 0x196   : > { %v7437_v51 = vadd.f32 %v1174_v18, %v910_v28  ;;  %2717 = vmatmul.mubr.f32.gmra.mxu0 %v9109_v48  ;;  %4889 = vmatprep.subr.mxu0 %v8854_v49  ;;  %v3060_v28 = vsub.f32 %v7452_v54, %v8729_v58  ;;  %v7504_v18 = vsub.f32 %v723_v61, %v7476_v50 }
 0x197   : > { %4936 = vmatprep.subr.mxu1 %v8854_v49  ;;  %2847 = vmatprep.mubr.f32.mxu1 %v8854_v49  ;;  %v7518_v61 = vsub.f32 %v718_v6, %v7491_v20  ;;  %9112 = vst [vmem:[#allocation40_spill] sm:$0xff] %v7534_v46  ;;  %v7560_v53 = vpop.f32.mrf.mxu0 }
 0x198   : > { %4890 = vmatpush3.msra.mxu0 %v7325_v60  ;;  %4937 = vmatpush3.msra.mxu1 %v3026_v4  ;;  %v708_v4 = vld [vmem:[%s8505_s1 + $0x70] sm:$0xff]  ;;  %v3061_v6 = vand.u32 4294901760, %v3060_v28 }
 0x199   : > { %2849 = vmatmul.mubr.f32.gmra.mxu1 %v9109_v48  ;;  %4891 = vmatprep.subr.mxu0 %v8854_v49  ;;  %v7520_v58 = vand.u32 4294901760, %v708_v4 }
 0x19a   : > { %4938 = vmatprep.subr.mxu1 %v8854_v49  ;;  %2722 = vmatprep.mubr.f32.mxu0 %v8854_v49 }
 0x19b   : > { %4892 = vmatpush3.msra.mxu0 %v7343_v25  ;;  %4939 = vmatpush3.msra.mxu1 %v3033_v3  ;;  %v3054_v3 = vand.u32 4294901760, %v3053_v30  ;;  %v3067_v30 = vsub.f32 %v7469_v55, %v8735_v27  ;;  %v7546_v52 = vsub.f32 %v708_v4, %v7520_v58  ;;  %v7558_v4 = vsub.f32 %v703_v33, %v7536_v29 }
 0x19c   : > { %2724 = vmatmul.mubr.f32.gmra.mxu0 %v9110_v26  ;;  %4893 = vmatprep.subr.mxu0 %v8854_v49  ;;  %v7571_v33 = vsub.f32 %v698_v8, %v7548_v17 }
 0x19d   : > { %4940 = vmatprep.subr.mxu1 %v8854_v49  ;;  %2854 = vmatprep.mubr.f32.mxu1 %v8854_v49  ;;  %9113 = vst [vmem:[#allocation33_spill] sm:$0xff] %v7546_v52  ;;  %9114 = vst [vmem:[#allocation42_spill] sm:$0xff] %v7558_v4  ;;  %v8740_v28 = vand.u32 4294901760, %v7546_v52 }
 0x19e   : > { %4894 = vmatpush3.msra.mxu0 %v7361_v42  ;;  %4941 = vmatpush3.msra.mxu1 %v3040_v19  ;;  %v8738_v19 = vand.u32 4294901760, %v7489_v7 }
 0x19f   : > { %2856 = vmatmul.mubr.f32.gmra.mxu1 %v9110_v26  ;;  %4895 = vmatprep.subr.mxu0 %v8854_v49 }
 0x1a0   : > { %4942 = vmatprep.subr.mxu1 %v8854_v49  ;;  %2729 = vmatprep.mubr.f32.mxu0 %v8854_v49  ;;  %v3074_v27 = vsub.f32 %v7489_v7, %v8738_v19 }
 0x1a1   : > { %4896 = vmatpush3.msra.mxu0 %v7385_v40  ;;  %4943 = vmatpush3.msra.mxu1 %v3047_v44  ;;  %v8739_v44 = vand.u32 4294901760, %v7504_v18 }
 0x1a2   : > { %2731 = vmatmul.mubr.f32.gmra.mxu0 %v9111_v59  ;;  %4897 = vmatprep.subr.mxu0 %v8854_v49 }
 0x1a3   : > { %4944 = vmatprep.subr.mxu1 %v8854_v49  ;;  %2861 = vmatprep.mubr.f32.mxu1 %v8854_v49  ;;  %v1181_v34 = vpop.f32.mrf.mxu1  ;;  %v3081_v19 = vsub.f32 %v7504_v18, %v8739_v44 }
 0x1a4   : > { %4898 = vmatpush3.msra.mxu0 %v7404_v57  ;;  %4945 = vmatpush3.msra.mxu1 %v3054_v3  ;;  %v3068_v3 = vand.u32 4294901760, %v3067_v30  ;;  %v3075_v30 = vand.u32 4294901760, %v3074_v27  ;;  %v9117_v27 = vand.u32 4294901760, %v7534_v46 }
 0x1a5   : > { %2863 = vmatmul.mubr.f32.gmra.mxu1 %v9111_v59  ;;  %4899 = vmatprep.subr.mxu0 %v8854_v49  ;;  %v1183_v31 = vpop.f32.mrf.mxu1  ;;  %v3082_v22 = vand.u32 4294901760, %v3081_v19  ;;  %v3102_v19 = vsub.f32 %v7546_v52, %v8740_v28  ;;  %v9119_v28 = vld [vmem:[#allocation39_spill] sm:$0xff] }
 0x1a6   : > { %4946 = vmatprep.subr.mxu1 %v8854_v49  ;;  %2736 = vmatprep.mubr.f32.mxu0 %v8854_v49  ;;  %v3095_v23 = vsub.f32 %v7534_v46, %v9117_v27  ;;  %v9121_v52 = vld [vmem:[#allocation31_spill] sm:$0xff] }
 0x1a7   : > { %4900 = vmatpush3.msra.mxu0 %v7425_v37  ;;  %4947 = vmatpush3.msra.mxu1 %v3061_v6  ;;  %v1456_v13 = vpop.f32.mrf.mxu1  ;;  %v9116_v6 = vand.u32 4294901760, %v7518_v61 }
 0x1a8   : > { %2738 = vmatmul.mubr.f32.gmra.mxu0 %v9115_v11  ;;  %4901 = vmatprep.subr.mxu0 %v8854_v49 }
 0x1a9   : > { %4948 = vmatprep.subr.mxu1 %v8854_v49  ;;  %2868 = vmatprep.mubr.f32.mxu1 %v8854_v49  ;;  %v3088_v44 = vsub.f32 %v7518_v61, %v9116_v6  ;;  %v1458_v21 = vpop.f32.mrf.mxu1 }
 0x1aa   : > { %4902 = vmatpush3.msra.mxu0 %v7444_v63  ;;  %4949 = vmatpush3.msra.mxu1 %v3068_v3 }
 0x1ab   : > { %2870 = vmatmul.mubr.f32.gmra.mxu1 %v9115_v11  ;;  %4903 = vmatprep.subr.mxu0 %v8854_v49  ;;  %v921_v15 = vpop.f32.mrf.mxu0  ;;  %v3089_v3 = vand.u32 4294901760, %v3088_v44  ;;  %v1156_v11 = vadd.f32 %v9120_v62, %v9119_v28  ;;  %v1163_v28 = vadd.f32 %v7256_v16, %v7254_v10 }
 0x1ac   : > { %4950 = vmatprep.subr.mxu1 %v8854_v49  ;;  %4904 = vmatpush3.msra.mxu0 %v7464_v12  ;;  %v7582_v8 = vadd.f32 %v1181_v34, %v921_v15  ;;  %v3096_v15 = vand.u32 4294901760, %v3095_v23  ;;  %v9118_v34 = vand.u32 4294901760, %v7558_v4  ;;  %v9122_v23 = vand.u32 4294901760, %v7571_v33 }
 0x1ad   : > { %4951 = vmatpush3.msra.mxu1 %v3075_v30  ;;  %4905 = vmatprep.subr.mxu0 %v8854_v49  ;;  %v923_v27 = vpop.f32.mrf.mxu0  ;;  %v1465_v5 = vpop.f32.mrf.mxu1 }
 0x1ae   : > { %4952 = vmatprep.subr.mxu1 %v8854_v49  ;;  %4906 = vmatpush3.msra.mxu0 %v7476_v50  ;;  %v7591_v6 = vadd.f32 %v1183_v31, %v923_v27  ;;  %v3109_v44 = vsub.f32 %v7558_v4, %v9118_v34  ;;  %v3116_v31 = vsub.f32 %v7571_v33, %v9122_v23 }
 0x1af   : > { %4953 = vmatpush3.msra.mxu1 %v3082_v22  ;;  %4907 = vmatprep.subr.mxu0 %v8854_v49  ;;  %v1318_v30 = vpop.f32.mrf.mxu0  ;;  %v3103_v22 = vand.u32 4294901760, %v3102_v19  ;;  %v1467_v34 = vpop.f32.mrf.mxu1 }
 0x1b0   : > { %4954 = vmatprep.subr.mxu1 %v8854_v49  ;;  %4908 = vmatpush3.msra.mxu0 %v7491_v20  ;;  %v1319_v46 = vadd.f32 %v1318_v30, %v9121_v52  ;;  %v3110_v62 = vand.u32 4294901760, %v3109_v44  ;;  %v9123_v30 = vld [vmem:[#allocation48_spill] sm:$0xff] }
 0x1b1   : > { %4955 = vmatpush3.msra.mxu1 %v3089_v3  ;;  %4909 = vmatprep.subr.mxu0 %v8854_v49  ;;  %v1320_v27 = vpop.f32.mrf.mxu0 }
 0x1b2   : > { %4956 = vmatprep.subr.mxu1 %v8854_v49  ;;  %4910 = vmatpush3.msra.mxu0 %v7506_v38  ;;  %v7608_v4 = vadd.f32 %v1456_v13, %v1319_v46  ;;  %v1321_v59 = vadd.f32 %v1320_v27, %v1156_v11  ;;  %v3117_v11 = vand.u32 4294901760, %v3116_v31  ;;  %v1474_v46 = vpop.f32.mrf.mxu1 }
 0x1b3   : > { %4957 = vmatpush3.msra.mxu1 %v3096_v15  ;;  %4911 = vmatprep.subr.mxu0 %v8854_v49  ;;  %v1326_v52 = vpop.f32.mrf.mxu0 }
 0x1b4   : > { %4958 = vmatprep.subr.mxu1 %v8854_v49  ;;  %4912 = vmatpush3.msra.mxu0 %v7520_v58  ;;  %v7615_v3 = vadd.f32 %v1458_v21, %v1321_v59  ;;  %v1327_v19 = vadd.f32 %v1326_v52, %v7213_v56  ;;  %v1170_v56 = vadd.f32 %v7411_v39, %v7409_v47  ;;  %v1476_v59 = vpop.f32.mrf.mxu1 }
 0x1b5   : > { %4959 = vmatpush3.msra.mxu1 %v3103_v22  ;;  %4913 = vmatprep.subr.mxu0 %v8854_v49  ;;  %v1328_v13 = vpop.f32.mrf.mxu0  ;;  %v1177_v47 = vadd.f32 %v7508_v9, %v7560_v53 }
 0x1b6   : > { %4960 = vmatprep.subr.mxu1 %v8854_v49  ;;  %4914 = vmatpush3.msra.mxu0 %v7536_v29  ;;  %v1329_v15 = vadd.f32 %v1328_v13, %v1163_v28  ;;  %v7621_v44 = vadd.f32 %v1465_v5, %v1327_v19 }
 0x1b7   : > { %4961 = vmatpush3.msra.mxu1 %v3110_v62  ;;  %4915 = vmatprep.subr.mxu0 %v8854_v49  ;;  %v1334_v10 = vpop.f32.mrf.mxu0 }
 0x1b8   : > { %4962 = vmatprep.subr.mxu1 %v8854_v49  ;;  %4916 = vmatpush3.msra.mxu0 %v7548_v17  ;;  %v1335_v16 = vadd.f32 %v1334_v10, %v7271_v2  ;;  %v7629_v21 = vadd.f32 %v1467_v34, %v1329_v15  ;;  %v9125_v10 = vld [vmem:[#allocation8_spill] sm:$0xff] }
 0x1b9   : > { %4917 = vmatprep.mubr.msk.f32.mxu0 %vm5520_vm1, %v8854_v49  ;;  %4963 = vmatpush3.msra.mxu1 %v3117_v11  ;;  %v1336_v5 = vpop.f32.mrf.mxu0 }
 0x1ba   : > { %4918 = vmatmul.mubr.f32.vlgmr.msra.gmra.mxu0 %v9123_v30  ;;  %4964 = vmatprep.mubr.msk.f32.mxu1 %vm5520_vm1, %v8854_v49  ;;  %v1337_v22 = vadd.f32 %v1336_v5, %v1170_v56  ;;  %v7636_v23 = vadd.f32 %v1474_v46, %v1335_v16 }
 0x1bb   : > { %4979 = vmatprep.subr.mxu0 %v8854_v49  ;;  %5026 = vmatprep.subr.mxu1 %v8854_v49  ;;  %v1342_v2 = vpop.f32.mrf.mxu0 }
 0x1bc   : > { %4965 = vmatmul.mubr.f32.vlgmr.msra.gmra.mxu1 %v9108_v0  ;;  %4980 = vmatpush3.msra.mxu0 %v7320_v14  ;;  %v1343_v39 = vadd.f32 %v1342_v2, %v7437_v51  ;;  %v7645_v31 = vadd.f32 %v1476_v59, %v1337_v22 }
 0x1bd   : > { %5027 = vmatpush3.msra.mxu1 %v7300_v1  ;;  %4981 = vmatprep.subr.mxu0 %v8854_v49  ;;  %v1344_v27 = vpop.f32.mrf.mxu0  ;;  %v1483_v34 = vpop.f32.mrf.mxu1 }
 0x1be   : > { %5028 = vmatprep.subr.mxu1 %v8854_v49  ;;  %4982 = vmatpush3.msra.mxu0 %v7334_v36  ;;  %v1345_v62 = vadd.f32 %v1344_v27, %v1177_v47  ;;  %v7651_v52 = vadd.f32 %v1483_v34, %v1343_v39  ;;  %v9127_v34 = vld [vmem:[#allocation10_spill] sm:$0xff] }
 0x1bf   : > { %5029 = vmatpush3.msra.mxu1 %v7308_v43  ;;  %4983 = vmatprep.subr.mxu0 %v8854_v49  ;;  %v1485_v53 = vpop.f32.mrf.mxu1 }
 0x1c0   : > { %5030 = vmatprep.subr.mxu1 %v8854_v49  ;;  %4984 = vmatpush3.msra.mxu0 %v7352_v32  ;;  %v1350_v51 = vpop.f32.mrf.mxu0  ;;  %v7657_v9 = vadd.f32 %v1485_v53, %v1345_v62  ;;  %v9128_v62 = vld [vmem:[#allocation40_spill] sm:$0xff] }
 0x1c1   : > { %5031 = vmatpush3.msra.mxu1 %v7325_v60  ;;  %4985 = vmatprep.subr.mxu0 %v8854_v49  ;;  %v1351_v28 = vadd.f32 %v1350_v51, %v7582_v8 }
 0x1c2   : > { %5032 = vmatprep.subr.mxu1 %v8854_v49  ;;  %4986 = vmatpush3.msra.mxu0 %v7373_v41  ;;  %v1352_v19 = vpop.f32.mrf.mxu0 }
 0x1c3   : > { %5033 = vmatpush3.msra.mxu1 %v7343_v25  ;;  %4987 = vmatprep.subr.mxu0 %v8854_v49  ;;  %v1353_v11 = vadd.f32 %v1352_v19, %v7591_v6  ;;  %v1492_v13 = vpop.f32.mrf.mxu1  ;;  %v9124_v6 = vld [vmem:[#allocation4_spill] sm:$0xff] }
 0x1c4   : > { %5034 = vmatprep.subr.mxu1 %v8854_v49  ;;  %4988 = vmatpush3.msra.mxu0 %v7394_v35  ;;  %v7669_v46 = vadd.f32 %v1492_v13, %v1351_v28  ;;  %v9130_v13 = vld [vmem:[#allocation33_spill] sm:$0xff] }
 0x1c5   : > { %5035 = vmatpush3.msra.mxu1 %v7361_v42  ;;  %4989 = vmatprep.subr.mxu0 %v8854_v49  ;;  %v1494_v8 = vpop.f32.mrf.mxu1 }
 0x1c6   : > { %5036 = vmatprep.subr.mxu1 %v8854_v49  ;;  %4990 = vmatpush3.msra.mxu0 %v7416_v24  ;;  %v7675_v15 = vadd.f32 %v1494_v8, %v1353_v11  ;;  %v9129_v11 = vld [vmem:[#allocation2_spill] sm:$0xff] }
 0x1c7   : > { %5037 = vmatpush3.msra.mxu1 %v7385_v40  ;;  %4991 = vmatprep.subr.mxu0 %v8854_v49 }
 0x1c8   : > { %5038 = vmatprep.subr.mxu1 %v8854_v49  ;;  %4992 = vmatpush3.msra.mxu0 %v7433_v45 }
 0x1c9   : > { %5039 = vmatpush3.msra.mxu1 %v7404_v57  ;;  %4920 = vmatprep.mubr.msk.f32.mxu0 %vm5520_vm1, %v8854_v49 }
 0x1ca   : > { %4993 = vmatprep.subr.mxu0 %v8854_v49  ;;  %5040 = vmatprep.subr.mxu1 %v8854_v49 }
 0x1cb   : > { %4921 = vmatmul.mubr.f32.gmra.mxu0 %v9124_v6  ;;  %5041 = vmatpush3.msra.mxu1 %v7425_v37 }
 0x1cc   : > { %4994 = vmatpush3.msra.mxu0 %v7452_v54  ;;  %4967 = vmatprep.mubr.msk.f32.mxu1 %vm5520_vm1, %v8854_v49 }
 0x1cd   : > { %4995 = vmatprep.subr.mxu0 %v8854_v49  ;;  %5042 = vmatprep.subr.mxu1 %v8854_v49 }
 0x1ce   : > { %4968 = vmatmul.mubr.f32.gmra.mxu1 %v9109_v48  ;;  %4996 = vmatpush3.msra.mxu0 %v7469_v55 }
 0x1cf   : > { %5043 = vmatpush3.msra.mxu1 %v7444_v63  ;;  %4923 = vmatprep.mubr.msk.f32.mxu0 %vm5520_vm1, %v8854_v49 }
 0x1d0   : > { %4997 = vmatprep.subr.mxu0 %v8854_v49  ;;  %5044 = vmatprep.subr.mxu1 %v8854_v49 }
 0x1d1   : > { %4924 = vmatmul.mubr.f32.gmra.mxu0 %v9125_v10  ;;  %5045 = vmatpush3.msra.mxu1 %v7464_v12  ;;  %v9131_v10 = vld [vmem:[#allocation23_spill] sm:$0xff] }
 0x1d2   : > { %4998 = vmatpush3.msra.mxu0 %v7489_v7  ;;  %4970 = vmatprep.mubr.msk.f32.mxu1 %vm5520_vm1, %v8854_v49  ;;  %v1660_v56 = vpop.f32.mrf.mxu0 }
 0x1d3   : > { %4999 = vmatprep.subr.mxu0 %v8854_v49  ;;  %5046 = vmatprep.subr.mxu1 %v8854_v49  ;;  %v1661_v16 = vadd.f32 %v1660_v56, %v7608_v4  ;;  %v9126_v4 = vld [vmem:[#allocation21_spill] sm:$0xff]  ;;  %v9132_v56 = vld [vmem:[#allocation42_spill] sm:$0xff] }
 0x1d4   : > { %4971 = vmatmul.mubr.f32.gmra.mxu1 %v9110_v26  ;;  %5000 = vmatpush3.msra.mxu0 %v7504_v18  ;;  %v1792_v5 = vpop.f32.mrf.mxu1  ;;  %v1662_v59 = vpop.f32.mrf.mxu0 }
 0x1d5   : > { %5047 = vmatpush3.msra.mxu1 %v7476_v50  ;;  %4926 = vmatprep.mubr.msk.f32.mxu0 %vm5520_vm1, %v8854_v49  ;;  %v1793_v30 = vadd.f32 %v1792_v5, %v1661_v16  ;;  %v1663_v22 = vadd.f32 %v1662_v59, %v7615_v3 }
 0x1d6   : > { %5001 = vmatprep.subr.mxu0 %v8854_v49  ;;  %5048 = vmatprep.subr.mxu1 %v8854_v49  ;;  %v1794_v2 = vpop.f32.mrf.mxu1 }
 0x1d7   : > { %4927 = vmatmul.mubr.f32.gmra.mxu0 %v9126_v4  ;;  %5049 = vmatpush3.msra.mxu1 %v7491_v20  ;;  %v1795_v47 = vadd.f32 %v1794_v2, %v1663_v22  ;;  %v9133_v2 = vld [vmem:[#allocation46_spill] sm:$0xff] }
 0x1d8   : > { %5002 = vmatpush3.msra.mxu0 %v7518_v61  ;;  %4973 = vmatprep.mubr.msk.f32.mxu1 %vm5520_vm1, %v8854_v49  ;;  %v1667_v39 = vpop.f32.mrf.mxu0 }
 0x1d9   : > { %5003 = vmatprep.subr.mxu0 %v8854_v49  ;;  %5050 = vmatprep.subr.mxu1 %v8854_v49  ;;  %v7723_v3 = vmul.f32 %v1795_v47, %v1793_v30  ;;  %v1668_v27 = vadd.f32 %v1667_v39, %v7621_v44  ;;  %v9134_v39 = vld [vmem:[#allocation47_spill] sm:$0xff] }
 0x1da   : > { %4974 = vmatmul.mubr.f32.gmra.mxu1 %v9127_v34  ;;  %5004 = vmatpush3.msra.mxu0 %v9128_v62  ;;  %v1669_v53 = vpop.f32.mrf.mxu0 }
 0x1db   : > { %5051 = vmatpush3.msra.mxu1 %v7506_v38  ;;  %4929 = vmatprep.mubr.msk.f32.mxu0 %vm5520_vm1, %v8854_v49  ;;  %v1670_v51 = vadd.f32 %v1669_v53, %v7629_v21  ;;  %v1799_v28 = vpop.f32.mrf.mxu1 }
 0x1dc   : > { %5005 = vmatprep.subr.mxu0 %v8854_v49  ;;  %5052 = vmatprep.subr.mxu1 %v8854_v49  ;;  %v1800_v19 = vadd.f32 %v1799_v28, %v1668_v27  ;;  %v9135_v27 = vand.u32 4294901760, %v7320_v14 }
 0x1dd   : > { %4930 = vmatmul.mubr.f32.gmra.mxu0 %v9129_v11  ;;  %5053 = vmatpush3.msra.mxu1 %v7520_v58  ;;  %v1801_v44 = vpop.f32.mrf.mxu1  ;;  %v9136_v11 = vand.u32 4294901760, %v7334_v36 }
 0x1de   : > { %5006 = vmatpush3.msra.mxu0 %v9130_v13  ;;  %4976 = vmatprep.mubr.msk.f32.mxu1 %vm5520_vm1, %v8854_v49  ;;  %v1674_v8 = vpop.f32.mrf.mxu0  ;;  %v1802_v6 = vadd.f32 %v1801_v44, %v1670_v51  ;;  %v9137_v44 = vld [vmem:[#allocation50_spill] sm:$0xff] }
 0x1df   : > { %5007 = vmatprep.subr.mxu0 %v8854_v49  ;;  %5054 = vmatprep.subr.mxu1 %v8854_v49  ;;  %v1675_v21 = vadd.f32 %v1674_v8, %v7636_v23 }
 0x1e0   : > { %4977 = vmatmul.mubr.f32.gmra.mxu1 %v9131_v10  ;;  %5008 = vmatpush3.msra.mxu0 %v9132_v56  ;;  %v7744_v16 = vmul.f32 %v1802_v6, %v1800_v19  ;;  %v1676_v5 = vpop.f32.mrf.mxu0  ;;  %v9138_v6 = vand.u32 4294901760, %v7352_v32  ;;  %v9140_v32 = vand.u32 4294901760, %v7373_v41 }
 0x1e1   : > { %5055 = vmatpush3.msra.mxu1 %v7536_v29  ;;  %5009 = vmatprep.subr.mxu0 %v8854_v49  ;;  %v1677_v59 = vadd.f32 %v1676_v5, %v7645_v31  ;;  %v1806_v30 = vpop.f32.mrf.mxu1 }
 0x1e2   : > { %5056 = vmatprep.subr.mxu1 %v8854_v49  ;;  %5010 = vmatpush3.msra.mxu0 %v7571_v33  ;;  %v1807_v22 = vadd.f32 %v1806_v30, %v1675_v21  ;;  %v9139_v21 = vld [vmem:[#allocation51_spill] sm:$0xff]  ;;  %v9141_v30 = vld [vmem:[#allocation6_spill] sm:$0xff] }
 0x1e3   : > { %5011 = vmatprep.mubr.msk.f32.mxu0 %vm5520_vm1, %v8854_v49  ;;  %5057 = vmatpush3.msra.mxu1 %v7548_v17  ;;  %v1808_v23 = vpop.f32.mrf.mxu1 }
 0x1e4   : > { %5012 = vmatmul.mubr.f32.vlgmr.msra.gmra.mxu0 %v9133_v2  ;;  %5058 = vmatprep.mubr.msk.f32.mxu1 %vm5520_vm1, %v8854_v49  ;;  %v1681_v4 = vpop.f32.mrf.mxu0  ;;  %v1809_v47 = vadd.f32 %v1808_v23, %v1677_v59  ;;  %v9143_v23 = vld [vmem:[#allocation7_spill] sm:$0xff]  ;;  %v9147_v2 = vld [vmem:[#allocation22_spill] sm:$0xff] }
 0x1e5   : > { %5073 = vmatprep.subr.mxu0 %v8854_v49  ;;  %5120 = vmatprep.subr.mxu1 %v8854_v49  ;;  %v1682_v31 = vadd.f32 %v1681_v4, %v7651_v52  ;;  %v9150_v4 = vand.u32 4294901760, %v7469_v55  ;;  %v9154_v55 = vand.u32 4294901760, %v7518_v61 }
 0x1e6   : > { %5059 = vmatmul.mubr.f32.vlgmr.msra.gmra.mxu1 %v9134_v39  ;;  %5074 = vmatpush3.msra.mxu0 %v9135_v27  ;;  %v7763_v53 = vmul.f32 %v1809_v47, %v1807_v22  ;;  %v1683_v51 = vpop.f32.mrf.mxu0  ;;  %v9152_v39 = vand.u32 4294901760, %v7489_v7  ;;  %v9157_v7 = vand.u32 4294901760, %v9132_v56 }
 0x1e7   : > { %5121 = vmatpush3.msra.mxu1 %v7300_v1  ;;  %5075 = vmatprep.subr.mxu0 %v8854_v49  ;;  %v1684_v28 = vadd.f32 %v1683_v51, %v7657_v9  ;;  %v1813_v19 = vpop.f32.mrf.mxu1 }
 0x1e8   : > { %5122 = vmatprep.subr.mxu1 %v8854_v49  ;;  %5014 = vmatprep.mubr.msk.f32.mxu0 %vm5520_vm1, %v8854_v49  ;;  %v1814_v52 = vadd.f32 %v1813_v19, %v1682_v31 }
 0x1e9   : > { %5076 = vmatpush3.msra.mxu0 %v9136_v11  ;;  %5123 = vmatpush3.msra.mxu1 %v7308_v43  ;;  %v1815_v14 = vpop.f32.mrf.mxu1 }
 0x1ea   : > { %5015 = vmatmul.mubr.f32.gmra.mxu0 %v9137_v44  ;;  %5077 = vmatprep.subr.mxu0 %v8854_v49  ;;  %v1688_v1 = vpop.f32.mrf.mxu0  ;;  %v1816_v8 = vadd.f32 %v1815_v14, %v1684_v28 }
 0x1eb   : > { %5124 = vmatprep.subr.mxu1 %v8854_v49  ;;  %5061 = vmatprep.mubr.msk.f32.mxu1 %vm5520_vm1, %v8854_v49  ;;  %v1689_v9 = vadd.f32 %v1688_v1, %v7669_v46 }
 0x1ec   : > { %5078 = vmatpush3.msra.mxu0 %v9138_v6  ;;  %5125 = vmatpush3.msra.mxu1 %v7325_v60  ;;  %v7783_v43 = vmul.f32 %v1816_v8, %v1814_v52  ;;  %v1690_v36 = vpop.f32.mrf.mxu0 }
 0x1ed   : > { %5062 = vmatmul.mubr.f32.gmra.mxu1 %v9139_v21  ;;  %5079 = vmatprep.subr.mxu0 %v8854_v49  ;;  %v1691_v5 = vadd.f32 %v1690_v36, %v7675_v15  ;;  %v1820_v59 = vpop.f32.mrf.mxu1  ;;  %v9142_v15 = vand.u32 4294901760, %v7394_v35  ;;  %v9145_v35 = vld [vmem:[#allocation17_spill] sm:$0xff] }
 0x1ee   : > { %5126 = vmatprep.subr.mxu1 %v8854_v49  ;;  %5017 = vmatprep.mubr.msk.f32.mxu0 %vm5520_vm1, %v8854_v49  ;;  %v1821_v46 = vadd.f32 %v1820_v59, %v1689_v9 }
 0x1ef   : > { %5080 = vmatpush3.msra.mxu0 %v9140_v32  ;;  %5127 = vmatpush3.msra.mxu1 %v7343_v25  ;;  %v1822_v60 = vpop.f32.mrf.mxu1  ;;  %v9144_v25 = vand.u32 4294901760, %v7416_v24  ;;  %v9149_v24 = vld [vmem:[#allocation24_spill] sm:$0xff] }
 0x1f0   : > { %5018 = vmatmul.mubr.f32.gmra.mxu0 %v9141_v30  ;;  %5081 = vmatprep.subr.mxu0 %v8854_v49  ;;  %v1823_v22 = vadd.f32 %v1822_v60, %v1691_v5 }
 0x1f1   : > { %5128 = vmatprep.subr.mxu1 %v8854_v49  ;;  %5064 = vmatprep.mubr.msk.f32.mxu1 %vm5520_vm1, %v8854_v49 }
 0x1f2   : > { %5082 = vmatpush3.msra.mxu0 %v9142_v15  ;;  %5129 = vmatpush3.msra.mxu1 %v7361_v42  ;;  %v7802_v41 = vmul.f32 %v1823_v22, %v1821_v46  ;;  %v9146_v42 = vand.u32 4294901760, %v7433_v45  ;;  %v3724_v22 = vld [vmem:[%s8506_s2 + $0x78] sm:$0xff] }
 0x1f3   : > { %5065 = vmatmul.mubr.f32.gmra.mxu1 %v9143_v23  ;;  %5083 = vmatprep.subr.mxu0 %v8854_v49  ;;  %v7929_v23 = vand.u32 4294901760, %v3724_v22 }
 0x1f4   : > { %5130 = vmatprep.subr.mxu1 %v8854_v49  ;;  %5020 = vmatprep.mubr.msk.f32.mxu0 %vm5520_vm1, %v8854_v49 }
 0x1f5   : > { %5084 = vmatpush3.msra.mxu0 %v9144_v25  ;;  %5131 = vmatpush3.msra.mxu1 %v7385_v40  ;;  %v9148_v40 = vand.u32 4294901760, %v7452_v54 }
 0x1f6   : > { %5021 = vmatmul.mubr.f32.gmra.mxu0 %v9145_v35  ;;  %5085 = vmatprep.subr.mxu0 %v8854_v49 }
 0x1f7   : > { %5132 = vmatprep.subr.mxu1 %v8854_v49  ;;  %5067 = vmatprep.mubr.msk.f32.mxu1 %vm5520_vm1, %v8854_v49 }
 0x1f8   : > { %5086 = vmatpush3.msra.mxu0 %v9146_v42  ;;  %5133 = vmatpush3.msra.mxu1 %v7404_v57  ;;  %v3723_v42 = vld [vmem:[%s8506_s2 + $0x70] sm:$0xff] }
 0x1f9   : > { %5068 = vmatmul.mubr.f32.gmra.mxu1 %v9147_v2  ;;  %5087 = vmatprep.subr.mxu0 %v8854_v49 }
 0x1fa   : > { %5134 = vmatprep.subr.mxu1 %v8854_v49  ;;  %5023 = vmatprep.mubr.msk.f32.mxu0 %vm5520_vm1, %v8854_v49 }
 0x1fb   : > { %5088 = vmatpush3.msra.mxu0 %v9148_v40  ;;  %5135 = vmatpush3.msra.mxu1 %v7425_v37  ;;  %v9151_v37 = vld [vmem:[#allocation26_spill] sm:$0xff]  ;;  %v7937_v40 = vsub.f32 %v3724_v22, %v7929_v23 }
 0x1fc   : > { %5024 = vmatmul.mubr.f32.gmra.mxu0 %v9149_v24  ;;  %5089 = vmatprep.subr.mxu0 %v8854_v49  ;;  %v1928_v45 = vpop.f32.mrf.mxu0  ;;  %v7939_v24 = vand.u32 4294901760, %v3723_v42 }
 0x1fd   : > { %5136 = vmatprep.subr.mxu1 %v8854_v49  ;;  %5070 = vmatprep.mubr.msk.f32.mxu1 %vm5520_vm1, %v8854_v49  ;;  %v2204_v57 = vpop.f32.mrf.mxu1 }
 0x1fe   : > { %5090 = vmatpush3.msra.mxu0 %v9150_v4  ;;  %5137 = vmatpush3.msra.mxu1 %v7444_v63  ;;  %v7836_v54 = vadd.f32 %v2204_v57, %v1928_v45  ;;  %v1930_v47 = vpop.f32.mrf.mxu0  ;;  %v9153_v63 = vand.u32 4294901760, %v7504_v18  ;;  %v3722_v57 = vld [vmem:[%s8506_s2 + $0x68] sm:$0xff] }
 0x1ff   : > { %5071 = vmatmul.mubr.f32.gmra.mxu1 %v9151_v37  ;;  %5091 = vmatprep.subr.mxu0 %v8854_v49  ;;  %v2206_v31 = vpop.f32.mrf.mxu1  ;;  %v7950_v37 = vsub.f32 %v3723_v42, %v7939_v24 }
 0x200   : > { %5138 = vmatprep.subr.mxu1 %v8854_v49  ;;  %5092 = vmatpush3.msra.mxu0 %v9152_v39  ;;  %v7843_v27 = vadd.f32 %v2206_v31, %v1930_v47  ;;  %v8764_v47 = vand.u32 4294901760, %v7937_v40  ;;  %v7952_v31 = vand.u32 4294901760, %v3722_v57 }
 0x201   : > { %5139 = vmatpush3.msra.mxu1 %v7464_v12  ;;  %5093 = vmatprep.subr.mxu0 %v8854_v49  ;;  %v9155_v12 = vand.u32 4294901760, %v9128_v62 }
 0x202   : > { %5140 = vmatprep.subr.mxu1 %v8854_v49  ;;  %5094 = vmatpush3.msra.mxu0 %v9153_v63 }
 0x203   : > { %5141 = vmatpush3.msra.mxu1 %v7476_v50  ;;  %5095 = vmatprep.subr.mxu0 %v8854_v49  ;;  %v9156_v50 = vand.u32 4294901760, %v9130_v13 }
 0x204   : > { %5142 = vmatprep.subr.mxu1 %v8854_v49  ;;  %5096 = vmatpush3.msra.mxu0 %v9154_v55  ;;  %v3860_v55 = vsub.f32 %v7937_v40, %v8764_v47 }
 0x205   : > { %5143 = vmatpush3.msra.mxu1 %v7491_v20  ;;  %5097 = vmatprep.subr.mxu0 %v8854_v49  ;;  %v9158_v20 = vand.u32 4294901760, %v7571_v33 }
 0x206   : > { %5144 = vmatprep.subr.mxu1 %v8854_v49  ;;  %5098 = vmatpush3.msra.mxu0 %v9155_v12  ;;  %v8762_v12 = vand.u32 4294901760, %v7950_v37 }
 0x207   : > { %5145 = vmatpush3.msra.mxu1 %v7506_v38  ;;  %5099 = vmatprep.subr.mxu0 %v8854_v49 }
 0x208   : > { %5146 = vmatprep.subr.mxu1 %v8854_v49  ;;  %5100 = vmatpush3.msra.mxu0 %v9156_v50  ;;  %v7964_v50 = vsub.f32 %v3722_v57, %v7952_v31 }
 0x209   : > { %5147 = vmatpush3.msra.mxu1 %v7520_v58  ;;  %5101 = vmatprep.subr.mxu0 %v8854_v49 }
 0x20a   : > { %5148 = vmatprep.subr.mxu1 %v8854_v49  ;;  %5102 = vmatpush3.msra.mxu0 %v9157_v7 }
 0x20b   : > { %5149 = vmatpush3.msra.mxu1 %v7536_v29  ;;  %5103 = vmatprep.subr.mxu0 %v8854_v49 }
 0x20c   : > { %5150 = vmatprep.subr.mxu1 %v8854_v49  ;;  %5104 = vmatpush3.msra.mxu0 %v9158_v20 }
 0x20d   : > { %5105 = vmatprep.mubr.msk.f32.mxu0 %vm5520_vm1, %v8854_v49  ;;  %5151 = vmatpush3.msra.mxu1 %v7548_v17  ;;  %v1939_v58 = vpop.f32.mrf.mxu0 }
 0x20e   : > { %5152 = vmatprep.mubr.msk.f32.mxu1 %vm5520_vm1, %v8854_v49  ;;  %5106 = vmatmul.mubr.f32.vlgmr.msra.gmra.mxu0 %v9108_v0  ;;  %v2211_v18 = vpop.f32.mrf.mxu1 }
 0x20f   : > { %5153 = vmatmul.mubr.f32.vlgmr.msra.gmra.mxu1 %v9108_v0  ;;  %5108 = vmatprep.mubr.msk.f32.mxu0 %vm5520_vm1, %v8854_v49  ;;  %v2212_v29 = vadd.f32 %v2211_v18, %v1939_v58  ;;  %v1941_v38 = vpop.f32.mrf.mxu0  ;;  %v3720_v18 = vld [vmem:[%s8506_s2 + $0x58] sm:$0xff] }
 0x210   : > { %5155 = vmatprep.mubr.msk.f32.mxu1 %vm5520_vm1, %v8854_v49  ;;  %v2213_v61 = vpop.f32.mrf.mxu1  ;;  %5214 = vmatprep.subr.mxu1 %v8854_v49 }
 0x211   : > { %v2214_v17 = vadd.f32 %v2213_v61, %v1941_v38  ;;  %5167 = vmatprep.subr.mxu0 %v8854_v49  ;;  %v3861_v38 = vand.u32 4294901760, %v3860_v55  ;;  %v3867_v61 = vsub.f32 %v7950_v37, %v8762_v12 }
 0x212   : > { %5109 = vmatmul.mubr.f32.gmra.mxu0 %v9109_v48 }
 0x213   : > { %5156 = vmatmul.mubr.f32.gmra.mxu1 %v9109_v48  ;;  %5111 = vmatprep.mubr.msk.f32.mxu0 %vm5520_vm1, %v8854_v49  ;;  %v1950_v0 = vpop.f32.mrf.mxu0 }
 0x214   : > { %5158 = vmatprep.mubr.msk.f32.mxu1 %vm5520_vm1, %v8854_v49  ;;  %v2218_v33 = vpop.f32.mrf.mxu1  ;;  %5168 = vmatpush3.msra.mxu0 %v7929_v23 }
 0x215   : > { %v2219_v62 = vadd.f32 %v2218_v33, %v1950_v0  ;;  %v1952_v13 = vpop.f32.mrf.mxu0  ;;  %5169 = vmatprep.subr.mxu0 %v8854_v49  ;;  %5215 = vmatpush3.msra.mxu1 %v3861_v38 }
 0x216   : > { %5112 = vmatmul.mubr.f32.gmra.mxu0 %v9110_v26  ;;  %v2220_v56 = vpop.f32.mrf.mxu1  ;;  %5216 = vmatprep.subr.mxu1 %v8854_v49 }
 0x217   : > { %5159 = vmatmul.mubr.f32.gmra.mxu1 %v9110_v26  ;;  %5114 = vmatprep.mubr.msk.f32.mxu0 %vm5520_vm1, %v8854_v49  ;;  %v2221_v51 = vadd.f32 %v2220_v56, %v1952_v13  ;;  %v3719_v13 = vld [vmem:[%s8506_s2 + $0x50] sm:$0xff] }
 0x218   : > { %5161 = vmatprep.mubr.msk.f32.mxu1 %vm5520_vm1, %v8854_v49  ;;  %5170 = vmatpush3.msra.mxu0 %v7939_v24 }
 0x219   : > { %v1961_v48 = vpop.f32.mrf.mxu0  ;;  %5171 = vmatprep.subr.mxu0 %v8854_v49 }
 0x21a   : > { %5115 = vmatmul.mubr.f32.gmra.mxu0 %v9127_v34  ;;  %v2225_v28 = vpop.f32.mrf.mxu1 }
 0x21b   : > { %5162 = vmatmul.mubr.f32.gmra.mxu1 %v9127_v34  ;;  %5117 = vmatprep.mubr.msk.f32.mxu0 %vm5520_vm1, %v8854_v49  ;;  %v7904_v19 = vadd.f32 %v2225_v28, %v1961_v48  ;;  %v1963_v52 = vpop.f32.mrf.mxu0  ;;  %v3868_v48 = vand.u32 4294901760, %v3867_v61 }
 0x21c   : > { %5164 = vmatprep.mubr.msk.f32.mxu1 %vm5520_vm1, %v8854_v49  ;;  %v2227_v26 = vpop.f32.mrf.mxu1  ;;  %5172 = vmatpush3.msra.mxu0 %v7952_v31 }
 0x21d   : > { %v7908_v11 = vadd.f32 %v2227_v26, %v1963_v52  ;;  %5173 = vmatprep.subr.mxu0 %v8854_v49  ;;  %v7994_v52 = vand.u32 4294901760, %v3719_v13  ;;  %5217 = vmatpush3.msra.mxu1 %v3868_v48 }
 0x21e   : > { %5118 = vmatmul.mubr.f32.gmra.mxu0 %v9131_v10  ;;  %5218 = vmatprep.subr.mxu1 %v8854_v49 }
 0x21f   : > { %5165 = vmatmul.mubr.f32.gmra.mxu1 %v9131_v10  ;;  %v1972_v14 = vpop.f32.mrf.mxu0  ;;  %5199 = vmatprep.mubr.msk.f32.mxu0 %vm5520_vm1, %v8854_v49 }
 0x220   : > { %v2232_v34 = vpop.f32.mrf.mxu1  ;;  %5246 = vmatprep.mubr.msk.f32.mxu1 %vm5520_vm1, %v8854_v49 }
 0x221   : > { %v7916_v44 = vadd.f32 %v2232_v34, %v1972_v14  ;;  %v1974_v1 = vpop.f32.mrf.mxu0 }
 0x222   : > { %v2234_v8 = vpop.f32.mrf.mxu1 }
 0x223   : > { %v7918_v9 = vadd.f32 %v2234_v8, %v1974_v1  ;;  %v3718_v1 = vld [vmem:[%s8506_s2 + $0x48] sm:$0xff] }
 0x226   : > { %v2369_v6 = vpop.f32.mrf.mxu0 }
 0x227   : > { %v2370_v36 = vadd.f32 %v2369_v6, %v7836_v54 }
 0x228   : > { %v2507_v21 = vpop.f32.mrf.mxu1  ;;  %v2371_v5 = vpop.f32.mrf.mxu0 }
 0x229   : > { %v7921_v10 = vadd.f32 %v2507_v21, %v2370_v36  ;;  %v2372_v59 = vadd.f32 %v2371_v5, %v7843_v27  ;;  %v3721_v27 = vld [vmem:[%s8506_s2 + $0x60] sm:$0xff]  ;;  %v8007_v36 = vsub.f32 %v3719_v13, %v7994_v52 }
 0x22a   : > { %v2509_v46 = vpop.f32.mrf.mxu1  ;;  %v7966_v7 = vand.u32 4294901760, %v3721_v27 }
 0x22b   : > { %v7924_v32 = vadd.f32 %v2509_v46, %v2372_v59 }
 0x22c   : > { %v2377_v60 = vpop.f32.mrf.mxu0  ;;  %5174 = vmatpush3.msra.mxu0 %v7966_v7  ;;  %v7981_v33 = vsub.f32 %v3721_v27, %v7966_v7 }
 0x22d   : > { %v2378_v30 = vadd.f32 %v2377_v60, %v2212_v29  ;;  %5175 = vmatprep.subr.mxu0 %v8854_v49  ;;  %v3717_v60 = vld [vmem:[%s8506_s2 + $0x40] sm:$0xff] }
 0x22e   : > { %v2379_v15 = vpop.f32.mrf.mxu0  ;;  %v8759_v14 = vand.u32 4294901760, %v7981_v33 }
 0x22f   : > { %v2380_v25 = vadd.f32 %v2379_v15, %v2214_v17  ;;  %v2516_v35 = vpop.f32.mrf.mxu1  ;;  %v8761_v17 = vand.u32 4294901760, %v7964_v50  ;;  %v8028_v15 = vand.u32 4294901760, %v3717_v60 }
 0x230   : > { %v7934_v2 = vadd.f32 %v2516_v35, %v2378_v30  ;;  %v3881_v59 = vsub.f32 %v7981_v33, %v8759_v14 }
 0x231   : > { %v2518_v45 = vpop.f32.mrf.mxu1  ;;  %v3874_v28 = vsub.f32 %v7964_v50, %v8761_v17 }
 0x232   : > { %v2385_v4 = vpop.f32.mrf.mxu0  ;;  %v7946_v54 = vadd.f32 %v2518_v45, %v2380_v25  ;;  %v3882_v35 = vand.u32 4294901760, %v3881_v59  ;;  %v3716_v45 = vld [vmem:[%s8506_s2 + $0x38] sm:$0xff] }
 0x233   : > { %v2386_v39 = vadd.f32 %v2385_v4, %v2219_v62  ;;  %v7983_v62 = vand.u32 4294901760, %v3720_v18  ;;  %v3875_v6 = vand.u32 4294901760, %v3874_v28 }
 0x234   : > { %v2387_v63 = vpop.f32.mrf.mxu0 }
 0x235   : > { %v2388_v20 = vadd.f32 %v2387_v63, %v2221_v51  ;;  %v2525_v58 = vpop.f32.mrf.mxu1  ;;  %v8000_v34 = vsub.f32 %v3720_v18, %v7983_v62  ;;  %5176 = vmatpush3.msra.mxu0 %v7983_v62  ;;  %5219 = vmatpush3.msra.mxu1 %v3875_v6  ;;  %v8046_v63 = vsub.f32 %v3717_v60, %v8028_v15  ;;  %v3715_v18 = vld [vmem:[%s8506_s2 + $0x30] sm:$0xff] }
 0x236   : > { %v7973_v29 = vadd.f32 %v2525_v58, %v2386_v39  ;;  %5177 = vmatprep.subr.mxu0 %v8854_v49  ;;  %5220 = vmatprep.subr.mxu1 %v8854_v49  ;;  %v8050_v58 = vand.u32 4294901760, %v3716_v45  ;;  %v8061_v13 = vand.u32 4294901760, %v3715_v18 }
 0x237   : > { %v2527_v0 = vpop.f32.mrf.mxu1  ;;  %v8758_v46 = vand.u32 4294901760, %v8000_v34  ;;  %5178 = vmatpush3.msra.mxu0 %v7994_v52  ;;  %5221 = vmatpush3.msra.mxu1 %v3882_v35 }
 0x238   : > { %v2393_v56 = vpop.f32.mrf.mxu0  ;;  %v7989_v51 = vadd.f32 %v2527_v0, %v2388_v20  ;;  %5179 = vmatprep.subr.mxu0 %v8854_v49  ;;  %5222 = vmatprep.subr.mxu1 %v8854_v49 }
 0x239   : > { %v2394_v26 = vadd.f32 %v2393_v56, %v7904_v19  ;;  %v8009_v19 = vand.u32 4294901760, %v3718_v1  ;;  %v3888_v42 = vsub.f32 %v8000_v34, %v8758_v46  ;;  %v3714_v56 = vld [vmem:[%s8506_s2 + $0x28] sm:$0xff] }
 0x23a   : > { %v2395_v8 = vpop.f32.mrf.mxu0 }
 0x23b   : > { %v2396_v21 = vadd.f32 %v2395_v8, %v7908_v11  ;;  %v2534_v5 = vpop.f32.mrf.mxu1  ;;  %v8757_v11 = vand.u32 4294901760, %v8007_v36  ;;  %v8026_v22 = vsub.f32 %v3718_v1, %v8009_v19  ;;  %5180 = vmatpush3.msra.mxu0 %v8009_v19  ;;  %v3889_v20 = vand.u32 4294901760, %v3888_v42  ;;  %v3713_v8 = vld [vmem:[%s8506_s2 + $0x20] sm:$0xff] }
 0x23c   : > { %v8022_v30 = vadd.f32 %v2534_v5, %v2394_v26  ;;  %5181 = vmatprep.subr.mxu0 %v8854_v49  ;;  %v8069_v26 = vsub.f32 %v3716_v45, %v8050_v58  ;;  %v8071_v1 = vand.u32 4294901760, %v3714_v56  ;;  %v8084_v5 = vsub.f32 %v3715_v18, %v8061_v13  ;;  %v3712_v18 = vld [vmem:[%s8506_s2 + $0x18] sm:$0xff] }
 0x23d   : > { %v2536_v25 = vpop.f32.mrf.mxu1  ;;  %v3895_v39 = vsub.f32 %v8007_v36, %v8757_v11  ;;  %v8756_v27 = vand.u32 4294901760, %v8026_v22  ;;  %5182 = vmatpush3.msra.mxu0 %v8028_v15  ;;  %5223 = vmatpush3.msra.mxu1 %v3889_v20  ;;  %v8091_v35 = vand.u32 4294901760, %v3713_v8 }
 0x23e   : > { %v2401_v57 = vpop.f32.mrf.mxu0  ;;  %v8039_v4 = vadd.f32 %v2536_v25, %v2396_v21  ;;  %5183 = vmatprep.subr.mxu0 %v8854_v49  ;;  %9159 = vst [vmem:[#allocation37_spill] sm:$0xff] %v8069_v26  ;;  %5224 = vmatprep.subr.mxu1 %v8854_v49  ;;  %9160 = vst [vmem:[#allocation43_spill] sm:$0xff] %v8084_v5  ;;  %v8752_v60 = vand.u32 4294901760, %v8069_v26  ;;  %v8089_v25 = vsub.f32 %v3714_v56, %v8071_v1 }
 0x23f   : > { %v2402_v55 = vadd.f32 %v2401_v57, %v7916_v44  ;;  %v3896_v61 = vand.u32 4294901760, %v3895_v39  ;;  %v3902_v0 = vsub.f32 %v8026_v22, %v8756_v27  ;;  %v8754_v44 = vand.u32 4294901760, %v8046_v63  ;;  %5184 = vmatpush3.msra.mxu0 %v8050_v58 }
 0x240   : > { %v2403_v38 = vpop.f32.mrf.mxu0  ;;  %5185 = vmatprep.subr.mxu0 %v8854_v49  ;;  %9161 = vst [vmem:[#allocation41_spill] sm:$0xff] %v8089_v25  ;;  %v8751_v57 = vand.u32 4294901760, %v8084_v5  ;;  %v3916_v39 = vsub.f32 %v8069_v26, %v8752_v60  ;;  %v8104_v20 = vsub.f32 %v3713_v8, %v8091_v35 }
 0x241   : > { %v2404_v48 = vadd.f32 %v2403_v38, %v7918_v9  ;;  %v2543_v28 = vpop.f32.mrf.mxu1  ;;  %v3903_v21 = vand.u32 4294901760, %v3902_v0  ;;  %v3909_v9 = vsub.f32 %v8046_v63, %v8754_v44  ;;  %5225 = vmatpush3.msra.mxu1 %v3896_v61  ;;  %5186 = vmatpush3.msra.mxu0 %v8061_v13  ;;  %v8114_v61 = vand.u32 4294901760, %v3712_v18 }
 0x242   : > { %v8077_v6 = vadd.f32 %v2543_v28, %v2402_v55  ;;  %5226 = vmatprep.subr.mxu1 %v8854_v49  ;;  %5187 = vmatprep.subr.mxu0 %v8854_v49  ;;  %v8749_v55 = vand.u32 4294901760, %v8089_v25  ;;  %9162 = vst [vmem:[#allocation3_spill] sm:$0xff] %v8104_v20  ;;  %v3923_v38 = vsub.f32 %v8084_v5, %v8751_v57  ;;  %v3917_v0 = vand.u32 4294901760, %v3916_v39  ;;  %v3711_v28 = vld [vmem:[%s8506_s2 + $0x10] sm:$0xff]  ;;  %v3710_v39 = vld [vmem:[%s8506_s2 + $0x8] sm:$0xff] }
 0x243   : > { %v2545_v59 = vpop.f32.mrf.mxu1  ;;  %v3910_v45 = vand.u32 4294901760, %v3909_v9  ;;  %5227 = vmatpush3.msra.mxu1 %v3903_v21  ;;  %5188 = vmatpush3.msra.mxu0 %v8071_v1  ;;  %9163 = vst [vmem:[#allocation18_spill] sm:$0xff] %v8114_v61  ;;  %v8127_v21 = vsub.f32 %v3712_v18, %v8114_v61  ;;  %v8129_v9 = vand.u32 4294901760, %v3711_v28 }
 0x244   : > { %v8094_v42 = vadd.f32 %v2545_v59, %v2404_v48  ;;  %5228 = vmatprep.subr.mxu1 %v8854_v49  ;;  %5189 = vmatprep.subr.mxu0 %v8854_v49  ;;  %v3930_v56 = vsub.f32 %v8089_v25, %v8749_v55  ;;  %v8750_v48 = vand.u32 4294901760, %v8104_v20  ;;  %v3924_v8 = vand.u32 4294901760, %v3923_v38 }
 0x245   : > { %5229 = vmatpush3.msra.mxu1 %v3910_v45  ;;  %5190 = vmatpush3.msra.mxu0 %v8091_v35  ;;  %9164 = vst [vmem:[#allocation44_spill] sm:$0xff] %v8127_v21  ;;  %9165 = vst [vmem:[#allocation13_spill] sm:$0xff] %v8129_v9  ;;  %v8753_v18 = vand.u32 4294901760, %v8127_v21  ;;  %v8142_v38 = vsub.f32 %v3711_v28, %v8129_v9  ;;  %v8144_v55 = vand.u32 4294901760, %v3710_v39 }
 0x246   : > { %5230 = vmatprep.subr.mxu1 %v8854_v49  ;;  %5191 = vmatprep.subr.mxu0 %v8854_v49  ;;  %v3931_v59 = vand.u32 4294901760, %v3930_v56  ;;  %v3937_v45 = vsub.f32 %v8104_v20, %v8750_v48  ;;  %v3709_v56 = vld [vmem:[%s8506_s2] sm:$0xff] }
 0x247   : > { %5231 = vmatpush3.msra.mxu1 %v3917_v0  ;;  %5192 = vmatpush3.msra.mxu0 %v8114_v61  ;;  %9166 = vst [vmem:[#allocation11_spill] sm:$0xff] %v8142_v38  ;;  %9167 = vst [vmem:[#allocation20_spill] sm:$0xff] %v8144_v55  ;;  %v3944_v48 = vsub.f32 %v8127_v21, %v8753_v18  ;;  %v8755_v28 = vand.u32 4294901760, %v8142_v38  ;;  %v8157_v57 = vsub.f32 %v3710_v39, %v8144_v55 }
 0x248   : > { %5232 = vmatprep.subr.mxu1 %v8854_v49  ;;  %5193 = vmatprep.subr.mxu0 %v8854_v49  ;;  %v3938_v0 = vand.u32 4294901760, %v3937_v45  ;;  %v8159_v60 = vand.u32 4294901760, %v3709_v56 }
 0x249   : > { %5233 = vmatpush3.msra.mxu1 %v3924_v8  ;;  %5194 = vmatpush3.msra.mxu0 %v8129_v9  ;;  %9168 = vst [vmem:[#allocation9_spill] sm:$0xff] %v8157_v57  ;;  %v3945_v8 = vand.u32 4294901760, %v3944_v48  ;;  %v3951_v45 = vsub.f32 %v8142_v38, %v8755_v28  ;;  %v8760_v18 = vand.u32 4294901760, %v8157_v57 }
 0x24a   : > { %5234 = vmatprep.subr.mxu1 %v8854_v49  ;;  %9169 = vst [vmem:[#allocation15_spill] sm:$0xff] %v8159_v60  ;;  %5195 = vmatprep.subr.mxu0 %v8854_v49  ;;  %v8169_v44 = vsub.f32 %v3709_v56, %v8159_v60 }
 0x24b   : > { %5235 = vmatpush3.msra.mxu1 %v3931_v59  ;;  %5196 = vmatpush3.msra.mxu0 %v8144_v55  ;;  %v3952_v39 = vand.u32 4294901760, %v3951_v45  ;;  %v3958_v48 = vsub.f32 %v8157_v57, %v8760_v18 }
 0x24c   : > { %5236 = vmatprep.subr.mxu1 %v8854_v49  ;;  %9170 = vst [vmem:[#allocation12_spill] sm:$0xff] %v8169_v44  ;;  %5197 = vmatprep.subr.mxu0 %v8854_v49  ;;  %v8763_v28 = vand.u32 4294901760, %v8169_v44 }
 0x24d   : > { %5237 = vmatpush3.msra.mxu1 %v3938_v0  ;;  %5198 = vmatpush3.msra.mxu0 %v8159_v60  ;;  %v3959_v0 = vand.u32 4294901760, %v3958_v48 }
 0x24e   : > { %5238 = vmatprep.subr.mxu1 %v8854_v49  ;;  %5261 = vmatprep.subr.mxu0 %v8854_v49  ;;  %v3965_v45 = vsub.f32 %v8169_v44, %v8763_v28 }
 0x24f   : > { %5239 = vmatpush3.msra.mxu1 %v3945_v8 }
 0x250   : > { %v2711_v59 = vpop.f32.mrf.mxu0  ;;  %5240 = vmatprep.subr.mxu1 %v8854_v49  ;;  %v3966_v17 = vand.u32 4294901760, %v3965_v45 }
 0x251   : > { %v2712_v56 = vadd.f32 %v2711_v59, %v7921_v10  ;;  %5241 = vmatpush3.msra.mxu1 %v3952_v39 }
 0x252   : > { %v2843_v27 = vpop.f32.mrf.mxu1  ;;  %v2713_v11 = vpop.f32.mrf.mxu0  ;;  %5242 = vmatprep.subr.mxu1 %v8854_v49 }
 0x253   : > { %v2844_v46 = vadd.f32 %v2843_v27, %v2712_v56  ;;  %v2714_v14 = vadd.f32 %v2713_v11, %v7924_v32  ;;  %5243 = vmatpush3.msra.mxu1 %v3959_v0 }
 0x254   : > { %v2845_v18 = vpop.f32.mrf.mxu1  ;;  %5244 = vmatprep.subr.mxu1 %v8854_v49 }
 0x255   : > { %v3694_v10 = vmul.f32 %v7723_v3, %v2844_v46  ;;  %v2846_v8 = vadd.f32 %v2845_v18, %v2714_v14  ;;  %5245 = vmatpush3.msra.mxu1 %v3966_v17 }
 0x256   : > { %v2718_v59 = vpop.f32.mrf.mxu0  ;;  %5308 = vmatprep.subr.mxu1 %v8854_v49 }
 0x257   : > { %v8188_v48 = vmul.f32 %v3694_v10, %v2846_v8  ;;  %v2719_v12 = vadd.f32 %v2718_v59, %v7934_v2 }
 0x258   : > { %v2720_v27 = vpop.f32.mrf.mxu0 }
 0x259   : > { %v2721_v32 = vadd.f32 %v2720_v27, %v7946_v54  ;;  %v2850_v11 = vpop.f32.mrf.mxu1 }
 0x25a   : > { %v2851_v39 = vadd.f32 %v2850_v11, %v2719_v12 }
 0x25b   : > { %v2852_v56 = vpop.f32.mrf.mxu1 }
 0x25c   : > { %v3695_v3 = vmul.f32 %v7744_v16, %v2851_v39  ;;  %v2725_v14 = vpop.f32.mrf.mxu0  ;;  %v2853_v46 = vadd.f32 %v2852_v56, %v2721_v32 }
 0x25d   : > { %v2726_v18 = vadd.f32 %v2725_v14, %v7973_v29 }
 0x25e   : > { %v8195_v0 = vmul.f32 %v3695_v3, %v2853_v46  ;;  %v2727_v45 = vpop.f32.mrf.mxu0 }
 0x25f   : > { %v2728_v2 = vadd.f32 %v2727_v45, %v7989_v51  ;;  %v2857_v17 = vpop.f32.mrf.mxu1 }
 0x260   : > { %v2858_v10 = vadd.f32 %v2857_v17, %v2726_v18 }
 0x261   : > { %v2859_v8 = vpop.f32.mrf.mxu1 }
 0x262   : > { %v3696_v59 = vmul.f32 %v7763_v53, %v2858_v10  ;;  %v2732_v54 = vpop.f32.mrf.mxu0  ;;  %v2860_v27 = vadd.f32 %v2859_v8, %v2728_v2 }
 0x263   : > { %v2733_v12 = vadd.f32 %v2732_v54, %v8022_v30 }
 0x264   : > { %v8200_v11 = vmul.f32 %v3696_v59, %v2860_v27  ;;  %v2734_v16 = vpop.f32.mrf.mxu0 }
 0x265   : > { %v2735_v32 = vadd.f32 %v2734_v16, %v8039_v4  ;;  %v2864_v29 = vpop.f32.mrf.mxu1 }
 0x266   : > { %v2865_v39 = vadd.f32 %v2864_v29, %v2733_v12 }
 0x267   : > { %v2866_v56 = vpop.f32.mrf.mxu1 }
 0x268   : > { %v3697_v3 = vmul.f32 %v7783_v43, %v2865_v39  ;;  %v2739_v51 = vpop.f32.mrf.mxu0  ;;  %v2867_v14 = vadd.f32 %v2866_v56, %v2735_v32 }
 0x269   : > { %v2740_v46 = vadd.f32 %v2739_v51, %v8077_v6 }
 0x26a   : > { %v8205_v18 = vmul.f32 %v3697_v3, %v2867_v14  ;;  %v2741_v53 = vpop.f32.mrf.mxu0 }
 0x26b   : > { %v2742_v45 = vadd.f32 %v2741_v53, %v8094_v42  ;;  %v2871_v30 = vpop.f32.mrf.mxu1 }
 0x26c   : > { %v2872_v2 = vadd.f32 %v2871_v30, %v2740_v46 }
 0x26d   : > { %v2873_v17 = vpop.f32.mrf.mxu1 }
 0x26e   : > { %v3698_v10 = vmul.f32 %v7802_v41, %v2872_v2  ;;  %v2874_v4 = vadd.f32 %v2873_v17, %v2742_v45 }
 0x270   : > { %v8209_v8 = vmul.f32 %v3698_v10, %v2874_v4 }
 0x27a   : > { %v2963_v59 = vpop.f32.mrf.mxu0 }
 0x27c   : > { %v3154_v54 = vpop.f32.mrf.mxu1  ;;  %v4919_v43 = vpop.f32.mrf.mxu0 }
 0x27d   : > { %v3155_v27 = vadd.f32 %v3154_v54, %v2963_v59 }
 0x27e   : > { %v4966_v12 = vpop.f32.mrf.mxu1 }
 0x28b   : > { %v2973_v16 = vpop.f32.mrf.mxu0 }
 0x28d   : > { %v4922_v6 = vpop.f32.mrf.mxu0 }
 0x28e   : > { %v3160_v32 = vpop.f32.mrf.mxu1 }
 0x28f   : > { %v3161_v60 = vadd.f32 %v3160_v32, %v2973_v16 }
 0x290   : > { %v4969_v29 = vpop.f32.mrf.mxu1 }
 0x291   : > { %v2983_v39 = vpop.f32.mrf.mxu0 }
 0x293   : > { %v4925_v56 = vpop.f32.mrf.mxu0 }
 0x294   : > { %v3166_v42 = vpop.f32.mrf.mxu1 }
 0x296   : > { %v4972_v3 = vpop.f32.mrf.mxu1 }
 0x297   : > { %v2993_v51 = vpop.f32.mrf.mxu0 }
 0x299   : > { %v4928_v14 = vpop.f32.mrf.mxu0 }
 0x29a   : > { %v3172_v46 = vpop.f32.mrf.mxu1 }
 0x29b   : > { %v3173_v61 = vadd.f32 %v3172_v46, %v2993_v51 }
 0x29c   : > { %v4975_v41 = vpop.f32.mrf.mxu1 }
 0x29d   : > { %v3003_v53 = vpop.f32.mrf.mxu0 }
 0x29f   : > { %v4931_v45 = vpop.f32.mrf.mxu0 }
 0x2a0   : > { %v3178_v30 = vpop.f32.mrf.mxu1 }
 0x2a2   : > { %v4978_v2 = vpop.f32.mrf.mxu1 }
 0x2a4   : > { %v3282_v17 = vpop.f32.mrf.mxu0 }
 0x2a5   : > { %v3283_v21 = vadd.f32 %v3282_v17, %v3155_v27 }
 0x2a6   : > { %v3399_v10 = vpop.f32.mrf.mxu1  ;;  %v5013_v4 = vpop.f32.mrf.mxu0 }
 0x2a7   : > { %v3400_v4 = vadd.f32 %v3399_v10, %v3283_v21 }
 0x2a8   : > { %v5060_v59 = vpop.f32.mrf.mxu1 }
 0x2aa   : > { %v3289_v54 = vpop.f32.mrf.mxu0 }
 0x2ab   : > { %v3290_v59 = vadd.f32 %v3289_v54, %v3161_v60 }
 0x2ac   : > { %v5016_v43 = vpop.f32.mrf.mxu0 }
 0x2ad   : > { %v3407_v12 = vpop.f32.mrf.mxu1  ;;  %v3167_v43 = vadd.f32 %v3166_v42, %v2983_v39 }
 0x2af   : > { %v5063_v6 = vpop.f32.mrf.mxu1 }
 0x2b0   : > { %v3296_v29 = vpop.f32.mrf.mxu0 }
 0x2b1   : > { %v3297_v9 = vadd.f32 %v3296_v29, %v3167_v43 }
 0x2b2   : > { %v5019_v56 = vpop.f32.mrf.mxu0 }
 0x2b3   : > { %v3415_v28 = vpop.f32.mrf.mxu1  ;;  %v3408_v56 = vadd.f32 %v3407_v12, %v3290_v59 }
 0x2b4   : > { %v3416_v27 = vadd.f32 %v3415_v28, %v3297_v9 }
 0x2b5   : > { %v5066_v3 = vpop.f32.mrf.mxu1 }
 0x2b6   : > { %v3303_v47 = vpop.f32.mrf.mxu0 }
 0x2b7   : > { %v3304_v16 = vadd.f32 %v3303_v47, %v3173_v61 }
 0x2b8   : > { %v5022_v14 = vpop.f32.mrf.mxu0 }
 0x2b9   : > { %v3423_v44 = vpop.f32.mrf.mxu1 }
 0x2ba   : > { %v3424_v47 = vadd.f32 %v3423_v44, %v3304_v16 }
 0x2bb   : > { %v5069_v41 = vpop.f32.mrf.mxu1 }
 0x2bc   : > { %v3310_v57 = vpop.f32.mrf.mxu0 }
 0x2be   : > { %v5025_v45 = vpop.f32.mrf.mxu0 }
 0x2bf   : > { %v3431_v38 = vpop.f32.mrf.mxu1 }
 0x2c1   : > { %v5072_v2 = vpop.f32.mrf.mxu1 }
 0x2ce   : > { %v3550_v20 = vpop.f32.mrf.mxu0 }
 0x2cf   : > { %v3551_v55 = vadd.f32 %v3550_v20, %v3400_v4  ;;  %v3661_v6 = vpop.f32.mrf.mxu1  ;;  %v3179_v20 = vadd.f32 %v3178_v30, %v3003_v53 }
 0x2d0   : > { %v5107_v25 = vpop.f32.mrf.mxu0 }
 0x2d1   : > { %v3662_v3 = vadd.f32 %v3661_v6, %v3551_v55  ;;  %v5154_v5 = vpop.f32.mrf.mxu1  ;;  %v3311_v42 = vadd.f32 %v3310_v57, %v3179_v20 }
 0x2d2   : > { %v3556_v14 = vpop.f32.mrf.mxu0 }
 0x2d3   : > { %v3704_v41 = vmul.f32 %v8188_v48, %v3662_v3  ;;  %v3557_v45 = vadd.f32 %v3556_v14, %v3408_v56  ;;  %v3667_v26 = vpop.f32.mrf.mxu1  ;;  %v3432_v17 = vadd.f32 %v3431_v38, %v3311_v42 }
 0x2d4   : > { %v5110_v2 = vpop.f32.mrf.mxu0 }
 0x2d5   : > { %v8212_v21 = vand.u32 4294901760, %v3704_v41  ;;  %v3668_v60 = vadd.f32 %v3667_v26, %v3557_v45  ;;  %v5157_v32 = vpop.f32.mrf.mxu1 }
 0x2d6   : > { %v3562_v39 = vpop.f32.mrf.mxu0 }
 0x2d7   : > { %v8215_v25 = vsub.f32 %v3704_v41, %v8212_v21  ;;  %v3705_v5 = vmul.f32 %v8195_v0, %v3668_v60  ;;  %v3563_v55 = vadd.f32 %v3562_v39, %v3416_v27  ;;  %5247 = vmatmul.mubr.f32.vlgmr.msra.gmra.mxu1 %v8212_v21  ;;  %v3673_v48 = vpop.f32.mrf.mxu1 }
 0x2d8   : > { %5309 = vmatpush3.msra.mxu1 %v7929_v23  ;;  %v5113_v9 = vpop.f32.mrf.mxu0  ;;  %5249 = vmatprep.mubr.msk.f32.mxu1 %vm5520_vm1, %v8854_v49 }
 0x2d9   : > { %v3808_v26 = vand.u32 4294901760, %v8215_v25  ;;  %v8223_v61 = vand.u32 4294901760, %v3705_v5  ;;  %v3674_v28 = vadd.f32 %v3673_v48, %v3563_v55  ;;  %5310 = vmatprep.subr.mxu1 %v8854_v49  ;;  %v5160_v0 = vpop.f32.mrf.mxu1 }
 0x2da   : > { %5311 = vmatpush3.msra.mxu1 %v7939_v24  ;;  %v3568_v51 = vpop.f32.mrf.mxu0  ;;  %v9172_v0 = vld [vmem:[#allocation18_spill] sm:$0xff] }
 0x2db   : > { %v3809_v57 = vsub.f32 %v8215_v25, %v3808_v26  ;;  %v8231_v46 = vsub.f32 %v3705_v5, %v8223_v61  ;;  %v3706_v44 = vmul.f32 %v8200_v11, %v3674_v28  ;;  %v3569_v53 = vadd.f32 %v3568_v51, %v3424_v47  ;;  %5312 = vmatprep.subr.mxu1 %v8854_v49  ;;  %v3679_v30 = vpop.f32.mrf.mxu1  ;;  %v9171_v28 = vld [vmem:[#allocation37_spill] sm:$0xff]  ;;  %v9173_v51 = vld [vmem:[#allocation43_spill] sm:$0xff] }
 0x2dc   : > { %5250 = vmatmul.mubr.f32.gmra.mxu1 %v8223_v61  ;;  %v5116_v10 = vpop.f32.mrf.mxu0 }
 0x2dd   : > { %v3810_v54 = vand.u32 4294901760, %v3809_v57  ;;  %v8236_v12 = vand.u32 4294901760, %v3706_v44  ;;  %5313 = vmatpush3.msra.mxu1 %v7952_v31  ;;  %v3680_v29 = vadd.f32 %v3679_v30, %v3569_v53  ;;  %v5163_v4 = vpop.f32.mrf.mxu1  ;;  %5252 = vmatprep.mubr.msk.f32.mxu1 %vm5520_vm1, %v8854_v49  ;;  %v3818_v11 = vand.u32 4294901760, %v8231_v46  ;;  %v9174_v57 = vld [vmem:[#allocation13_spill] sm:$0xff]  ;;  %v9176_v53 = vld [vmem:[#allocation20_spill] sm:$0xff]  ;;  %v9177_v30 = vld [vmem:[#allocation3_spill] sm:$0xff] }
 0x2de   : > { %5314 = vmatprep.subr.mxu1 %v8854_v49  ;;  %v3574_v59 = vpop.f32.mrf.mxu0  ;;  %v9179_v10 = vld [vmem:[#allocation44_spill] sm:$0xff] }
 0x2df   : > { %v8244_v38 = vsub.f32 %v3706_v44, %v8236_v12  ;;  %v3707_v43 = vmul.f32 %v8205_v18, %v3680_v29  ;;  %5315 = vmatpush3.msra.mxu1 %v7966_v7  ;;  %v3575_v6 = vadd.f32 %v3574_v59, %v3432_v17  ;;  %5200 = vmatmul.mubr.f32.vlgmr.msra.gmra.mxu0 %v3810_v54  ;;  %v3685_v56 = vpop.f32.mrf.mxu1  ;;  %v9175_v44 = vld [vmem:[#allocation41_spill] sm:$0xff]  ;;  %v9178_v17 = vld [vmem:[#allocation15_spill] sm:$0xff] }
 0x2e0   : > { %5316 = vmatprep.subr.mxu1 %v8854_v49  ;;  %5253 = vmatmul.mubr.f32.gmra.mxu1 %v8236_v12  ;;  %v3819_v3 = vsub.f32 %v8231_v46, %v3818_v11  ;;  %v5119_v14 = vpop.f32.mrf.mxu0  ;;  %v9180_v54 = vld [vmem:[#allocation11_spill] sm:$0xff] }
 0x2e1   : > { %v8253_v41 = vand.u32 4294901760, %v3707_v43  ;;  %5262 = vmatpush3.msra.mxu0 %v7937_v40  ;;  %5317 = vmatpush3.msra.mxu1 %v7983_v62  ;;  %v3686_v18 = vadd.f32 %v3685_v56, %v3575_v6  ;;  %v3828_v45 = vand.u32 4294901760, %v8244_v38  ;;  %v5166_v2 = vpop.f32.mrf.mxu1 }
 0x2e2   : > { %5263 = vmatprep.subr.mxu0 %v8854_v49  ;;  %5318 = vmatprep.subr.mxu1 %v8854_v49  ;;  %v3820_v27 = vand.u32 4294901760, %v3819_v3 }
 0x2e3   : > { %v8261_v16 = vsub.f32 %v3707_v43, %v8253_v41  ;;  %v3708_v60 = vmul.f32 %v8209_v8, %v3686_v18  ;;  %5264 = vmatpush3.msra.mxu0 %v7950_v37  ;;  %5319 = vmatpush3.msra.mxu1 %v7994_v52  ;;  %v3829_v32 = vsub.f32 %v8244_v38, %v3828_v45 }
 0x2e4   : > { %5202 = vmatprep.mubr.msk.f32.mxu0 %vm5520_vm1, %v8854_v49  ;;  %5255 = vmatprep.mubr.msk.f32.mxu1 %vm5520_vm1, %v8854_v49 }
 0x2e5   : > { %v8273_v20 = vand.u32 4294901760, %v3708_v60  ;;  %5265 = vmatprep.subr.mxu0 %v8854_v49  ;;  %5320 = vmatprep.subr.mxu1 %v8854_v49  ;;  %v3838_v8 = vand.u32 4294901760, %v8261_v16  ;;  %v3830_v5 = vand.u32 4294901760, %v3829_v32 }
 0x2e6   : > { %5203 = vmatmul.mubr.f32.gmra.mxu0 %v3820_v27  ;;  %5256 = vmatmul.mubr.f32.gmra.mxu1 %v8253_v41 }
 0x2e7   : > { %v8280_v39 = vsub.f32 %v3708_v60, %v8273_v20  ;;  %5266 = vmatpush3.msra.mxu0 %v7964_v50  ;;  %5321 = vmatpush3.msra.mxu1 %v8009_v19  ;;  %v3839_v55 = vsub.f32 %v8261_v16, %v3838_v8 }
 0x2e8   : > { %5267 = vmatprep.subr.mxu0 %v8854_v49  ;;  %5322 = vmatprep.subr.mxu1 %v8854_v49 }
 0x2e9   : > { %5268 = vmatpush3.msra.mxu0 %v7981_v33  ;;  %5323 = vmatpush3.msra.mxu1 %v8028_v15  ;;  %v3848_v48 = vand.u32 4294901760, %v8280_v39  ;;  %v3840_v42 = vand.u32 4294901760, %v3839_v55 }
 0x2ea   : > { %5205 = vmatprep.mubr.msk.f32.mxu0 %vm5520_vm1, %v8854_v49  ;;  %5258 = vmatprep.mubr.msk.f32.mxu1 %vm5520_vm1, %v8854_v49 }
 0x2eb   : > { %5269 = vmatprep.subr.mxu0 %v8854_v49  ;;  %5324 = vmatprep.subr.mxu1 %v8854_v49  ;;  %v3849_v9 = vsub.f32 %v8280_v39, %v3848_v48 }
 0x2ec   : > { %5206 = vmatmul.mubr.f32.gmra.mxu0 %v3830_v5  ;;  %5259 = vmatmul.mubr.f32.gmra.mxu1 %v8273_v20 }
 0x2ed   : > { %5270 = vmatpush3.msra.mxu0 %v8000_v34  ;;  %5325 = vmatpush3.msra.mxu1 %v8050_v58  ;;  %v3850_v47 = vand.u32 4294901760, %v3849_v9 }
 0x2ee   : > { %5271 = vmatprep.subr.mxu0 %v8854_v49  ;;  %5326 = vmatprep.subr.mxu1 %v8854_v49 }
 0x2ef   : > { %5272 = vmatpush3.msra.mxu0 %v8007_v36  ;;  %5327 = vmatpush3.msra.mxu1 %v8061_v13 }
 0x2f0   : > { %5208 = vmatprep.mubr.msk.f32.mxu0 %vm5520_vm1, %v8854_v49  ;;  %5273 = vmatprep.subr.mxu0 %v8854_v49 }
 0x2f1   : > { %5328 = vmatprep.subr.mxu1 %v8854_v49  ;;  %5209 = vmatmul.mubr.f32.gmra.mxu0 %v3840_v42 }
 0x2f2   : > { %5274 = vmatpush3.msra.mxu0 %v8026_v22  ;;  %5329 = vmatpush3.msra.mxu1 %v8071_v1 }
 0x2f3   : > { %5275 = vmatprep.subr.mxu0 %v8854_v49  ;;  %5330 = vmatprep.subr.mxu1 %v8854_v49 }
 0x2f4   : > { %5276 = vmatpush3.msra.mxu0 %v8046_v63  ;;  %5331 = vmatpush3.msra.mxu1 %v8091_v35 }
 0x2f5   : > { %5211 = vmatprep.mubr.msk.f32.mxu0 %vm5520_vm1, %v8854_v49  ;;  %5277 = vmatprep.subr.mxu0 %v8854_v49 }
 0x2f6   : > { %5332 = vmatprep.subr.mxu1 %v8854_v49  ;;  %5212 = vmatmul.mubr.f32.gmra.mxu0 %v3850_v47 }
 0x2f7   : > { %5278 = vmatpush3.msra.mxu0 %v9171_v28  ;;  %5333 = vmatpush3.msra.mxu1 %v9172_v0 }
 0x2f8   : > { %5279 = vmatprep.subr.mxu0 %v8854_v49  ;;  %5334 = vmatprep.subr.mxu1 %v8854_v49 }
 0x2f9   : > { %5280 = vmatpush3.msra.mxu0 %v9173_v51  ;;  %5335 = vmatpush3.msra.mxu1 %v9174_v57 }
 0x2fa   : > { %5281 = vmatprep.subr.mxu0 %v8854_v49  ;;  %5336 = vmatprep.subr.mxu1 %v8854_v49 }
 0x2fb   : > { %5282 = vmatpush3.msra.mxu0 %v9175_v44  ;;  %5337 = vmatpush3.msra.mxu1 %v9176_v53 }
 0x2fc   : > { %5283 = vmatprep.subr.mxu0 %v8854_v49  ;;  %5338 = vmatprep.subr.mxu1 %v8854_v49 }
 0x2fd   : > { %5284 = vmatpush3.msra.mxu0 %v9177_v30  ;;  %5339 = vmatpush3.msra.mxu1 %v9178_v17 }
 0x2fe   : > { %5340 = vmatprep.mubr.msk.f32.mxu1 %vm5520_vm1, %v8854_v49  ;;  %5285 = vmatprep.subr.mxu0 %v8854_v49 }
 0x2ff   : > { %5341 = vmatmul.mubr.f32.vlgmr.msra.gmra.mxu1 %v3808_v26  ;;  %5402 = vmatprep.subr.mxu1 %v8854_v49  ;;  %v9181_v26 = vld [vmem:[#allocation9_spill] sm:$0xff] }
 0x300   : > { %5286 = vmatpush3.msra.mxu0 %v9179_v10  ;;  %5403 = vmatpush3.msra.mxu1 %v7929_v23  ;;  %v9182_v23 = vld [vmem:[#allocation12_spill] sm:$0xff] }
 0x301   : > { %5287 = vmatprep.subr.mxu0 %v8854_v49  ;;  %5404 = vmatprep.subr.mxu1 %v8854_v49 }
 0x302   : > { %5288 = vmatpush3.msra.mxu0 %v9180_v54  ;;  %5343 = vmatprep.mubr.msk.f32.mxu1 %vm5520_vm1, %v8854_v49 }
 0x303   : > { %5405 = vmatpush3.msra.mxu1 %v7939_v24  ;;  %5289 = vmatprep.subr.mxu0 %v8854_v49  ;;  %v9183_v24 = vand.u32 4294901760, %v7937_v40  ;;  %v9185_v40 = vand.u32 4294901760, %v7964_v50  ;;  %v9187_v50 = vand.u32 4294901760, %v8000_v34  ;;  %v9192_v34 = vand.u32 4294901760, %v9173_v51 }
 0x304   : > { %5344 = vmatmul.mubr.f32.gmra.mxu1 %v3818_v11  ;;  %5406 = vmatprep.subr.mxu1 %v8854_v49 }
 0x305   : > { %5290 = vmatpush3.msra.mxu0 %v9181_v26  ;;  %5407 = vmatpush3.msra.mxu1 %v7952_v31  ;;  %v9184_v31 = vand.u32 4294901760, %v7950_v37  ;;  %v9186_v37 = vand.u32 4294901760, %v7981_v33  ;;  %v9189_v33 = vand.u32 4294901760, %v8026_v22  ;;  %v9195_v22 = vand.u32 4294901760, %v9179_v10 }
 0x306   : > { %5291 = vmatprep.subr.mxu0 %v8854_v49  ;;  %5408 = vmatprep.subr.mxu1 %v8854_v49 }
 0x307   : > { %5292 = vmatpush3.msra.mxu0 %v9182_v23  ;;  %5293 = vmatprep.mubr.msk.f32.mxu0 %vm5520_vm1, %v8854_v49 }
 0x308   : > { %5346 = vmatprep.mubr.msk.f32.mxu1 %vm5520_vm1, %v8854_v49  ;;  %5409 = vmatpush3.msra.mxu1 %v7966_v7  ;;  %v9188_v7 = vand.u32 4294901760, %v8007_v36  ;;  %v9193_v36 = vand.u32 4294901760, %v9175_v44 }
 0x309   : > { %5294 = vmatmul.mubr.f32.vlgmr.msra.gmra.mxu0 %v8215_v25  ;;  %5347 = vmatmul.mubr.f32.gmra.mxu1 %v3828_v45 }
 0x30a   : > { %5355 = vmatprep.subr.mxu0 %v8854_v49  ;;  %5410 = vmatprep.subr.mxu1 %v8854_v49 }
 0x30b   : > { %5356 = vmatpush3.msra.mxu0 %v9183_v24  ;;  %5411 = vmatpush3.msra.mxu1 %v7983_v62  ;;  %v9190_v62 = vand.u32 4294901760, %v8046_v63  ;;  %v9197_v63 = vand.u32 4294901760, %v9181_v26 }
 0x30c   : > { %5357 = vmatprep.subr.mxu0 %v8854_v49  ;;  %5412 = vmatprep.subr.mxu1 %v8854_v49 }
 0x30d   : > { %5296 = vmatprep.mubr.msk.f32.mxu0 %vm5520_vm1, %v8854_v49  ;;  %5349 = vmatprep.mubr.msk.f32.mxu1 %vm5520_vm1, %v8854_v49 }
 0x30e   : > { %5358 = vmatpush3.msra.mxu0 %v9184_v31  ;;  %5413 = vmatpush3.msra.mxu1 %v7994_v52  ;;  %v9191_v52 = vand.u32 4294901760, %v9171_v28 }
 0x30f   : > { %5297 = vmatmul.mubr.f32.gmra.mxu0 %v8231_v46  ;;  %5350 = vmatmul.mubr.f32.gmra.mxu1 %v3838_v8 }
 0x310   : > { %5359 = vmatprep.subr.mxu0 %v8854_v49  ;;  %5414 = vmatprep.subr.mxu1 %v8854_v49 }
 0x311   : > { %5360 = vmatpush3.msra.mxu0 %v9185_v40  ;;  %5415 = vmatpush3.msra.mxu1 %v8009_v19  ;;  %v9194_v19 = vand.u32 4294901760, %v9177_v30 }
 0x312   : > { %5361 = vmatprep.subr.mxu0 %v8854_v49  ;;  %5416 = vmatprep.subr.mxu1 %v8854_v49 }
 0x313   : > { %5299 = vmatprep.mubr.msk.f32.mxu0 %vm5520_vm1, %v8854_v49  ;;  %5352 = vmatprep.mubr.msk.f32.mxu1 %vm5520_vm1, %v8854_v49 }
 0x314   : > { %5362 = vmatpush3.msra.mxu0 %v9186_v37  ;;  %5417 = vmatpush3.msra.mxu1 %v8028_v15  ;;  %v9196_v15 = vand.u32 4294901760, %v9180_v54 }
 0x315   : > { %5300 = vmatmul.mubr.f32.gmra.mxu0 %v8244_v38  ;;  %5353 = vmatmul.mubr.f32.gmra.mxu1 %v3848_v48 }
 0x316   : > { %5363 = vmatprep.subr.mxu0 %v8854_v49  ;;  %5418 = vmatprep.subr.mxu1 %v8854_v49 }
 0x317   : > { %5364 = vmatpush3.msra.mxu0 %v9187_v50  ;;  %5419 = vmatpush3.msra.mxu1 %v8050_v58  ;;  %v9198_v58 = vand.u32 4294901760, %v9182_v23 }
 0x318   : > { %5365 = vmatprep.subr.mxu0 %v8854_v49  ;;  %5420 = vmatprep.subr.mxu1 %v8854_v49 }
 0x319   : > { %5302 = vmatprep.mubr.msk.f32.mxu0 %vm5520_vm1, %v8854_v49  ;;  %5366 = vmatpush3.msra.mxu0 %v9188_v7 }
 0x31a   : > { %5421 = vmatpush3.msra.mxu1 %v8061_v13  ;;  %5303 = vmatmul.mubr.f32.gmra.mxu0 %v8261_v16 }
 0x31b   : > { %5367 = vmatprep.subr.mxu0 %v8854_v49  ;;  %5422 = vmatprep.subr.mxu1 %v8854_v49 }
 0x31c   : > { %5368 = vmatpush3.msra.mxu0 %v9189_v33  ;;  %5423 = vmatpush3.msra.mxu1 %v8071_v1 }
 0x31d   : > { %5369 = vmatprep.subr.mxu0 %v8854_v49  ;;  %5424 = vmatprep.subr.mxu1 %v8854_v49 }
 0x31e   : > { %5305 = vmatprep.mubr.msk.f32.mxu0 %vm5520_vm1, %v8854_v49  ;;  %5370 = vmatpush3.msra.mxu0 %v9190_v62 }
 0x31f   : > { %5425 = vmatpush3.msra.mxu1 %v8091_v35  ;;  %5306 = vmatmul.mubr.f32.gmra.mxu0 %v8280_v39 }
 0x320   : > { %5371 = vmatprep.subr.mxu0 %v8854_v49  ;;  %5426 = vmatprep.subr.mxu1 %v8854_v49 }
 0x321   : > { %5372 = vmatpush3.msra.mxu0 %v9191_v52  ;;  %5427 = vmatpush3.msra.mxu1 %v9172_v0 }
 0x322   : > { %5373 = vmatprep.subr.mxu0 %v8854_v49  ;;  %5428 = vmatprep.subr.mxu1 %v8854_v49 }
 0x323   : > { %5374 = vmatpush3.msra.mxu0 %v9192_v34  ;;  %5429 = vmatpush3.msra.mxu1 %v9174_v57 }
 0x324   : > { %5375 = vmatprep.subr.mxu0 %v8854_v49  ;;  %5430 = vmatprep.subr.mxu1 %v8854_v49 }
 0x325   : > { %5376 = vmatpush3.msra.mxu0 %v9193_v36  ;;  %5431 = vmatpush3.msra.mxu1 %v9176_v53 }
 0x326   : > { %5377 = vmatprep.subr.mxu0 %v8854_v49  ;;  %5432 = vmatprep.subr.mxu1 %v8854_v49 }
 0x327   : > { %5378 = vmatpush3.msra.mxu0 %v9194_v19  ;;  %5433 = vmatpush3.msra.mxu1 %v9178_v17 }
 0x328   : > { %5434 = vmatprep.mubr.msk.f32.mxu1 %vm5520_vm1, %v8854_v49  ;;  %5379 = vmatprep.subr.mxu0 %v8854_v49 }
 0x329   : > { %5435 = vmatmul.mubr.f32.vlgmr.msra.gmra.mxu1 %v8212_v21  ;;  %5380 = vmatpush3.msra.mxu0 %v9195_v22 }
 0x32a   : > { %5381 = vmatprep.subr.mxu0 %v8854_v49  ;;  %5437 = vmatprep.mubr.msk.f32.mxu1 %vm5520_vm1, %v8854_v49 }
 0x32b   : > { %5382 = vmatpush3.msra.mxu0 %v9196_v15  ;;  %5387 = vmatprep.mubr.msk.f32.mxu0 %vm5520_vm1, %v8854_v49 }
 0x32c   : > { %5383 = vmatprep.subr.mxu0 %v8854_v49 }
 0x32d   : > { %5438 = vmatmul.mubr.f32.gmra.mxu1 %v8223_v61  ;;  %5384 = vmatpush3.msra.mxu0 %v9197_v63 }
 0x32e   : > { %5385 = vmatprep.subr.mxu0 %v8854_v49  ;;  %5440 = vmatprep.mubr.msk.f32.mxu1 %vm5520_vm1, %v8854_v49 }
 0x32f   : > { %5386 = vmatpush3.msra.mxu0 %v9198_v58 }
 0x330   : > { %5388 = vmatmul.mubr.f32.vlgmr.msra.gmra.mxu0 %v8212_v21 }
 0x331   : > { %5441 = vmatmul.mubr.f32.gmra.mxu1 %v8236_v12  ;;  %5390 = vmatprep.mubr.msk.f32.mxu0 %vm5520_vm1, %v8854_v49 }
 0x332   : > { %5443 = vmatprep.mubr.msk.f32.mxu1 %vm5520_vm1, %v8854_v49 }
 0x334   : > { %5391 = vmatmul.mubr.f32.gmra.mxu0 %v8223_v61 }
 0x335   : > { %5444 = vmatmul.mubr.f32.gmra.mxu1 %v8253_v41  ;;  %5393 = vmatprep.mubr.msk.f32.mxu0 %vm5520_vm1, %v8854_v49 }
 0x336   : > { %5446 = vmatprep.mubr.msk.f32.mxu1 %vm5520_vm1, %v8854_v49 }
 0x338   : > { %5394 = vmatmul.mubr.f32.gmra.mxu0 %v8236_v12 }
 0x339   : > { %5447 = vmatmul.mubr.f32.gmra.mxu1 %v8273_v20  ;;  %5396 = vmatprep.mubr.msk.f32.mxu0 %vm5520_vm1, %v8854_v49 }
 0x33c   : > { %5397 = vmatmul.mubr.f32.gmra.mxu0 %v8253_v41 }
 0x33d   : > { %5399 = vmatprep.mubr.msk.f32.mxu0 %vm5520_vm1, %v8854_v49 }
 0x340   : > { %5400 = vmatmul.mubr.f32.gmra.mxu0 %v8273_v20 }
 0x397   : > { %v4003_v13 = vpop.f32.mrf.mxu1 }
 0x399   : > { %v5248_v1 = vpop.f32.mrf.mxu1 }
 0x39c   : > { %v4009_v35 = vpop.f32.mrf.mxu1 }
 0x39e   : > { %v5251_v21 = vpop.f32.mrf.mxu1 }
 0x39f   : > { %v3812_v25 = vpop.f32.mrf.mxu0 }
 0x3a0   : > { %v4004_v61 = vadd.f32 %v4003_v13, %v3812_v25  ;;  %v4015_v46 = vpop.f32.mrf.mxu1 }
 0x3a1   : > { %v5201_v12 = vpop.f32.mrf.mxu0 }
 0x3a2   : > { %v5254_v29 = vpop.f32.mrf.mxu1 }
 0x3a6   : > { %v3822_v4 = vpop.f32.mrf.mxu0  ;;  %v4021_v11 = vpop.f32.mrf.mxu1 }
 0x3a7   : > { %v4010_v59 = vadd.f32 %v4009_v35, %v3822_v4 }
 0x3a8   : > { %v5204_v38 = vpop.f32.mrf.mxu0  ;;  %v5257_v43 = vpop.f32.mrf.mxu1 }
 0x3ac   : > { %v3832_v6 = vpop.f32.mrf.mxu0  ;;  %v4027_v56 = vpop.f32.mrf.mxu1 }
 0x3ad   : > { %v4016_v3 = vadd.f32 %v4015_v46, %v3832_v6 }
 0x3ae   : > { %v5207_v49 = vpop.f32.mrf.mxu0  ;;  %v5260_v14 = vpop.f32.mrf.mxu1 }
 0x3b1   : > { %v3842_v41 = vpop.f32.mrf.mxu0 }
 0x3b2   : > { %v4022_v18 = vadd.f32 %v4021_v11, %v3842_v41 }
 0x3b3   : > { %v5210_v45 = vpop.f32.mrf.mxu0 }
 0x3b6   : > { %v3852_v2 = vpop.f32.mrf.mxu0 }
 0x3b7   : > { %v4028_v27 = vadd.f32 %v4027_v56, %v3852_v2 }
 0x3b8   : > { %v5213_v16 = vpop.f32.mrf.mxu0 }
 0x3bf   : > { %v4248_v60 = vpop.f32.mrf.mxu1 }
 0x3c1   : > { %v5342_v32 = vpop.f32.mrf.mxu1 }
 0x3c4   : > { %v4256_v20 = vpop.f32.mrf.mxu1 }
 0x3c6   : > { %v5345_v8 = vpop.f32.mrf.mxu1 }
 0x3c9   : > { %v4131_v39 = vpop.f32.mrf.mxu0  ;;  %v4264_v5 = vpop.f32.mrf.mxu1 }
 0x3ca   : > { %v4132_v26 = vadd.f32 %v4131_v39, %v4004_v61 }
 0x3cb   : > { %v5295_v55 = vpop.f32.mrf.mxu0  ;;  %v5348_v48 = vpop.f32.mrf.mxu1 }
 0x3cc   : > { %v4249_v37 = vadd.f32 %v4248_v60, %v4132_v26 }
 0x3cf   : > { %v4138_v42 = vpop.f32.mrf.mxu0  ;;  %v4272_v9 = vpop.f32.mrf.mxu1 }
 0x3d0   : > { %v4139_v31 = vadd.f32 %v4138_v42, %v4010_v59 }
 0x3d1   : > { %v5298_v47 = vpop.f32.mrf.mxu0  ;;  %v5351_v28 = vpop.f32.mrf.mxu1 }
 0x3d2   : > { %v4257_v19 = vadd.f32 %v4256_v20, %v4139_v31 }
 0x3d5   : > { %v4145_v0 = vpop.f32.mrf.mxu0  ;;  %v4280_v51 = vpop.f32.mrf.mxu1 }
 0x3d6   : > { %v4146_v52 = vadd.f32 %v4145_v0, %v4016_v3 }
 0x3d7   : > { %v5301_v57 = vpop.f32.mrf.mxu0  ;;  %v5354_v44 = vpop.f32.mrf.mxu1 }
 0x3d8   : > { %v4265_v25 = vadd.f32 %v4264_v5, %v4146_v52 }
 0x3da   : > { %v4152_v53 = vpop.f32.mrf.mxu0 }
 0x3db   : > { %v4153_v1 = vadd.f32 %v4152_v53, %v4022_v18 }
 0x3dc   : > { %v5304_v30 = vpop.f32.mrf.mxu0 }
 0x3dd   : > { %v4273_v43 = vadd.f32 %v4272_v9, %v4153_v1 }
 0x3df   : > { %v4159_v17 = vpop.f32.mrf.mxu0 }
 0x3e0   : > { %v4160_v11 = vadd.f32 %v4159_v17, %v4028_v27 }
 0x3e1   : > { %v5307_v10 = vpop.f32.mrf.mxu0 }
 0x3e2   : > { %v4281_v41 = vadd.f32 %v4280_v51, %v4160_v11 }
 0x3e9   : > { %v4510_v54 = vpop.f32.mrf.mxu1 }
 0x3eb   : > { %v5436_v23 = vpop.f32.mrf.mxu1 }
 0x3ed   : > { %v4516_v24 = vpop.f32.mrf.mxu1 }
 0x3ef   : > { %v5439_v40 = vpop.f32.mrf.mxu1 }
 0x3f0   : > { %v4399_v50 = vpop.f32.mrf.mxu0 }
 0x3f1   : > { %v4400_v7 = vadd.f32 %v4399_v50, %v4249_v37  ;;  %v4522_v33 = vpop.f32.mrf.mxu1 }
 0x3f2   : > { %v5389_v62 = vpop.f32.mrf.mxu0 }
 0x3f3   : > { %v4511_v34 = vadd.f32 %v4510_v54, %v4400_v7  ;;  %v5442_v36 = vpop.f32.mrf.mxu1 }
 0x3f4   : > { %v4405_v22 = vpop.f32.mrf.mxu0 }
 0x3f5   : > { %v4538_v15 = vmul.f32 %v4511_v34, %v4511_v34  ;;  %v4406_v63 = vadd.f32 %v4405_v22, %v4257_v19  ;;  %v4528_v58 = vpop.f32.mrf.mxu1 }
 0x3f6   : > { %v5392_v13 = vpop.f32.mrf.mxu0 }
 0x3f7   : > { %4543 = vst [vmem:[%s8494_s17] sm:$0xff] %v4538_v15  ;;  %v4517_v35 = vadd.f32 %v4516_v24, %v4406_v63  ;;  %v5445_v21 = vpop.f32.mrf.mxu1 }
 0x3f8   : > { %v4411_v61 = vpop.f32.mrf.mxu0 }
 0x3f9   : > { %v4539_v46 = vmul.f32 %v4517_v35, %v4517_v35  ;;  %v4412_v12 = vadd.f32 %v4411_v61, %v4265_v25  ;;  %v4534_v29 = vpop.f32.mrf.mxu1 }
 0x3fa   : > { %v5395_v4 = vpop.f32.mrf.mxu0 }
 0x3fb   : > { %4544 = vst [vmem:[%s8494_s17 + $0x8] sm:$0xff] %v4539_v46  ;;  %v4523_v59 = vadd.f32 %v4522_v33, %v4412_v12  ;;  %v5448_v38 = vpop.f32.mrf.mxu1 }
 0x3fc   : > { %v4417_v6 = vpop.f32.mrf.mxu0 }
 0x3fd   : > { %v4540_v56 = vmul.f32 %v4523_v59, %v4523_v59  ;;  %v4418_v3 = vadd.f32 %v4417_v6, %v4273_v43 }
 0x3fe   : > { %v5398_v49 = vpop.f32.mrf.mxu0 }
 0x3ff   : > { %4545 = vst [vmem:[%s8494_s17 + $0x10] sm:$0xff] %v4540_v56  ;;  %v4529_v14 = vadd.f32 %v4528_v58, %v4418_v3 }
 0x400   : > { %v4423_v18 = vpop.f32.mrf.mxu0 }
 0x401   : > { %v4541_v45 = vmul.f32 %v4529_v14, %v4529_v14  ;;  %v4424_v2 = vadd.f32 %v4423_v18, %v4281_v41 }
 0x402   : > { %v5401_v16 = vpop.f32.mrf.mxu0 }
 0x403   : > { %4546 = vst [vmem:[%s8494_s17 + $0x18] sm:$0xff] %v4541_v45  ;;  %v4535_v60 = vadd.f32 %v4534_v29, %v4424_v2 }
 0x405   : > { %v4542_v27 = vmul.f32 %v4535_v60, %v4535_v60 }
 0x407   : > { %4547 = vst [vmem:[%s8494_s17 + $0x20] sm:$0xff] %v4542_v27 }
 0x408 PF: > { %s13_s12 = sadd.s32 1, %s5511_s12  }
 0x409   : > { %p10_p4 = scmp.ge.s32.totalorder %s13_s12, 4  }
 0x40b   :  { %12 = sbr.rel (!%p10_p4) target bundleno = 1 (0x1), region = 62 }

</bundles_post_ra>
